<compile_context>
chip_gen: v6e
topology: v6e:2x2x1
jax: 0.10.0
libtpu: 0.0.40
codegen_flags: <defaults>
</compile_context>

<pallas_src>
import functools

import jax
import jax.numpy as jnp
from jax.experimental import pallas as pl
from jax.experimental.pallas import tpu as pltpu

IN_DIM = 16
H1 = 512
H2 = 1024
OUT_DIM = 784
OUT_PAD = 896  # 7 * 128 -> lane-dense MXU N-dim for fc3


def _cdiv(a, b):
    return (a + b - 1) // b


def _round_up(x, m):
    return (x + m - 1) // m * m


def decoder_kernel(x_ref, w1_ref, b1_ref, w2_ref, b2_ref, w3_ref, b3_ref, o_ref):
    # fc1 -> relu   (K=16 underfills the MXU but is <1% of FLOPs)
    x = x_ref[...]  # already bf16
    h1 = jnp.dot(x, w1_ref[...], preferred_element_type=jnp.float32) + b1_ref[...]
    h1 = jnp.maximum(h1, 0.0).astype(jnp.bfloat16)
    # fc2 -> relu
    h2 = jnp.dot(h1, w2_ref[...], preferred_element_type=jnp.float32) + b2_ref[...]
    h2 = jnp.maximum(h2, 0.0).astype(jnp.bfloat16)
    # fc3 -> sigmoid: matmul on the padded 896-wide N, but the transcendental
    # (EUP) and the store only touch the valid 784 columns.
    z = jnp.dot(h2, w3_ref[...], preferred_element_type=jnp.float32) + b3_ref[...]
    o_ref[...] = jax.nn.sigmoid(z[:, :OUT_DIM])


def prepare_params(w1, b1, w2, b2, w3, b3):
    """One-time weight prep (do at init, NOT per forward call):
    bf16 weights + fc3 padded 784 -> 896 output features."""
    w1b = w1.astype(jnp.bfloat16)
    w2b = w2.astype(jnp.bfloat16)
    w3b = jnp.pad(w3, ((0, 0), (0, OUT_PAD - OUT_DIM))).astype(jnp.bfloat16)
    b3p = jnp.pad(b3, ((0, 0), (0, OUT_PAD - OUT_DIM)))
    return w1b, b1, w2b, b2, w3b, b3p


@functools.partial(jax.jit, static_argnames=("tb_max",))
def decoder_forward(x, w1b, b1, w2b, b2, w3b, b3p, tb_max=512):
    B = x.shape[0]
    # Batch tile selection:
    #   - tiles no larger than tb_max (512) to stay well inside VMEM,
    #   - at least 2 grid steps when B allows (v7x dual-TensorCore sharding),
    #   - divide B as evenly as possible to minimize pad waste.
    steps = max(2, _cdiv(B, tb_max))
    tb = max(8, _round_up(_cdiv(B, steps), 8))
    pad_b = (-B) % tb
    Bp = B + pad_b
    xp = jnp.pad(x, ((0, pad_b), (0, 0))).astype(jnp.bfloat16)

    out = pl.pallas_call(
        decoder_kernel,
        out_shape=jax.ShapeDtypeStruct((Bp, OUT_DIM), jnp.float32),
        grid=(Bp // tb,),
        in_specs=[
            pl.BlockSpec((tb, IN_DIM), lambda i: (i, 0)),      # x tile (bf16)
            pl.BlockSpec((IN_DIM, H1), lambda i: (0, 0)),      # W1 (bf16, full)
            pl.BlockSpec((1, H1), lambda i: (0, 0)),           # b1 (f32)
            pl.BlockSpec((H1, H2), lambda i: (0, 0)),          # W2 (bf16, full)
            pl.BlockSpec((1, H2), lambda i: (0, 0)),           # b2 (f32)
            pl.BlockSpec((H2, OUT_PAD), lambda i: (0, 0)),     # W3 (bf16, padded)
            pl.BlockSpec((1, OUT_PAD), lambda i: (0, 0)),      # b3 (f32, padded)
        ],
        out_specs=pl.BlockSpec((tb, OUT_DIM), lambda i: (i, 0)),
        compiler_params=pltpu.CompilerParams(
            dimension_semantics=("parallel",),
            vmem_limit_bytes=64 * 1024 * 1024,
        ),
    )(xp, w1b, b1, w2b, b2, w3b, b3p)
    if pad_b == 0:
        return out
    return out[:B]


def init_linear(key, fan_in, fan_out):
    # Deterministic init mimicking PyTorch nn.Linear default:
    # U(-1/sqrt(fan_in), 1/sqrt(fan_in))
    kw, kb = jax.random.split(key)
    bound = 1.0 / jnp.sqrt(jnp.float32(fan_in))
    w = jax.random.uniform(kw, (fan_in, fan_out), jnp.float32, -bound, bound)
    b = jax.random.uniform(kb, (1, fan_out), jnp.float32, -bound, bound)
    return w, b


def reference_forward(x, w1, b1, w2, b2, w3, b3):
    h1 = jnp.maximum(x @ w1 + b1, 0.0)
    h2 = jnp.maximum(h1 @ w2 + b2, 0.0)
    return jax.nn.sigmoid(h2 @ w3 + b3)


if __name__ == "__main__":
    key = jax.random.PRNGKey(0)
    kx, k1, k2, k3 = jax.random.split(key, 4)

    batch = 64
    x = jax.random.normal(kx, (batch, IN_DIM), jnp.float32)

    w1, b1 = init_linear(k1, IN_DIM, H1)
    w2, b2 = init_linear(k2, H1, H2)
    w3, b3 = init_linear(k3, H2, OUT_DIM)

    # One-time weight prep (bf16 cast + fc3 pad) done outside the forward.
    params = prepare_params(w1, b1, w2, b2, w3, b3)
    params = jax.block_until_ready(params)

    out = decoder_forward(x, *params)
    out = jax.block_until_ready(out)

    ref = reference_forward(x, w1, b1, w2, b2, w3, b3)
    assert out.shape == (batch, OUT_DIM), out.shape
    # bf16 weights/activations (f32 accumulation) vs. pure-f32 reference.
    assert jnp.allclose(out, ref, atol=2e-2, rtol=2e-2), (
        "mismatch vs reference, max abs diff = %g" % float(jnp.max(jnp.abs(out - ref)))
    )

    print("KERNEL_OK")
</pallas_src>

<mosaic_0001>
module attributes {stable_mosaic.version = 11 : i64} {
  func.func @decoder_kernel(%arg0: i32, %arg1: memref<32x16xbf16, #tpu.memory_space<vmem>>, %arg2: memref<16x512xbf16, #tpu.memory_space<vmem>>, %arg3: memref<1x512xf32, #tpu.memory_space<vmem>>, %arg4: memref<512x1024xbf16, #tpu.memory_space<vmem>>, %arg5: memref<1x1024xf32, #tpu.memory_space<vmem>>, %arg6: memref<1024x896xbf16, #tpu.memory_space<vmem>>, %arg7: memref<1x896xf32, #tpu.memory_space<vmem>>, %arg8: memref<32x784xf32, #tpu.memory_space<vmem>>) attributes {dimension_semantics = [#tpu.dimension_semantics<parallel>], iteration_bounds = array<i64: 2>, scalar_prefetch = 0 : i64, scratch_operands = 0 : i64, tpu.core_type = #tpu.core_type<tc>, window_params = [{transform_indices = @transform_0, window_bounds = array<i64: 32, 16>}, {pipeline_mode = #tpu.pipeline_mode<synchronous>, transform_indices = @transform_1, window_bounds = array<i64: 16, 512>}, {pipeline_mode = #tpu.pipeline_mode<synchronous>, transform_indices = @transform_2, window_bounds = array<i64: 1, 512>}, {pipeline_mode = #tpu.pipeline_mode<synchronous>, transform_indices = @transform_3, window_bounds = array<i64: 512, 1024>}, {pipeline_mode = #tpu.pipeline_mode<synchronous>, transform_indices = @transform_4, window_bounds = array<i64: 1, 1024>}, {pipeline_mode = #tpu.pipeline_mode<synchronous>, transform_indices = @transform_5, window_bounds = array<i64: 1024, 896>}, {pipeline_mode = #tpu.pipeline_mode<synchronous>, transform_indices = @transform_6, window_bounds = array<i64: 1, 896>}, {transform_indices = @transform_7, window_bounds = array<i64: 32, 784>}]} {
    %c0 = arith.constant 0 : index
    %c0_0 = arith.constant 0 : index
    %0 = vector.load %arg1[%c0, %c0_0] : memref<32x16xbf16, #tpu.memory_space<vmem>>, vector<32x16xbf16>
    %c0_1 = arith.constant 0 : index
    %c0_2 = arith.constant 0 : index
    %1 = vector.load %arg2[%c0_1, %c0_2] : memref<16x512xbf16, #tpu.memory_space<vmem>>, vector<16x512xbf16>
    %cst = arith.constant dense<0.000000e+00> : vector<32x512xf32>
    %2 = tpu.matmul %0, %1, %cst {dimension_numbers = #tpu.dot_dimension_numbers<[1], [0], [0], [1], [0, 0, 1, 1], [], []>} : vector<32x16xbf16>, vector<16x512xbf16>, vector<32x512xf32> -> vector<32x512xf32>
    %c0_3 = arith.constant 0 : index
    %c0_4 = arith.constant 0 : index
    %3 = vector.load %arg3[%c0_3, %c0_4] : memref<1x512xf32, #tpu.memory_space<vmem>>, vector<1x512xf32>
    %4 = vector.broadcast %3 : vector<1x512xf32> to vector<32x512xf32>
    %5 = arith.addf %2, %4 : vector<32x512xf32>
    %cst_5 = arith.constant 0.000000e+00 : f32
    %6 = vector.broadcast %cst_5 : f32 to vector<32x512xf32>
    %7 = arith.maximumf %5, %6 : vector<32x512xf32>
    %8 = arith.truncf %7 : vector<32x512xf32> to vector<32x512xbf16>
    %c0_6 = arith.constant 0 : index
    %c0_7 = arith.constant 0 : index
    %9 = vector.load %arg4[%c0_6, %c0_7] : memref<512x1024xbf16, #tpu.memory_space<vmem>>, vector<512x1024xbf16>
    %cst_8 = arith.constant dense<0.000000e+00> : vector<32x1024xf32>
    %10 = tpu.matmul %8, %9, %cst_8 {dimension_numbers = #tpu.dot_dimension_numbers<[1], [0], [0], [1], [0, 0, 1, 1], [], []>} : vector<32x512xbf16>, vector<512x1024xbf16>, vector<32x1024xf32> -> vector<32x1024xf32>
    %c0_9 = arith.constant 0 : index
    %c0_10 = arith.constant 0 : index
    %11 = vector.load %arg5[%c0_9, %c0_10] : memref<1x1024xf32, #tpu.memory_space<vmem>>, vector<1x1024xf32>
    %12 = vector.broadcast %11 : vector<1x1024xf32> to vector<32x1024xf32>
    %13 = arith.addf %10, %12 : vector<32x1024xf32>
    %cst_11 = arith.constant 0.000000e+00 : f32
    %14 = vector.broadcast %cst_11 : f32 to vector<32x1024xf32>
    %15 = arith.maximumf %13, %14 : vector<32x1024xf32>
    %16 = arith.truncf %15 : vector<32x1024xf32> to vector<32x1024xbf16>
    %c0_12 = arith.constant 0 : index
    %c0_13 = arith.constant 0 : index
    %17 = vector.load %arg6[%c0_12, %c0_13] : memref<1024x896xbf16, #tpu.memory_space<vmem>>, vector<1024x896xbf16>
    %cst_14 = arith.constant dense<0.000000e+00> : vector<32x896xf32>
    %18 = tpu.matmul %16, %17, %cst_14 {dimension_numbers = #tpu.dot_dimension_numbers<[1], [0], [0], [1], [0, 0, 1, 1], [], []>} : vector<32x1024xbf16>, vector<1024x896xbf16>, vector<32x896xf32> -> vector<32x896xf32>
    %c0_15 = arith.constant 0 : index
    %c0_16 = arith.constant 0 : index
    %19 = vector.load %arg7[%c0_15, %c0_16] : memref<1x896xf32, #tpu.memory_space<vmem>>, vector<1x896xf32>
    %20 = vector.broadcast %19 : vector<1x896xf32> to vector<32x896xf32>
    %21 = arith.addf %18, %20 : vector<32x896xf32>
    %22 = vector.extract_strided_slice %21 {offsets = [0, 0], sizes = [32, 784], strides = [1, 1]} : vector<32x896xf32> to vector<32x784xf32>
    %23 = arith.negf %22 : vector<32x784xf32>
    %24 = math.exp %23 : vector<32x784xf32>
    %cst_17 = arith.constant 1.000000e+00 : f32
    %25 = vector.broadcast %cst_17 : f32 to vector<32x784xf32>
    %26 = arith.addf %25, %24 : vector<32x784xf32>
    %27 = arith.divf %25, %26 : vector<32x784xf32>
    %c0_18 = arith.constant 0 : index
    %c0_19 = arith.constant 0 : index
    %28 = vector.load %arg8[%c0_18, %c0_19] : memref<32x784xf32, #tpu.memory_space<vmem>>, vector<32x784xf32>
    tpu.vector_store %arg8[%c0_18, %c0_19], %27 {strides = array<i32>} : memref<32x784xf32, #tpu.memory_space<vmem>>, vector<32x784xf32>,
    return
  }
  func.func @transform_0(%arg0: i32) -> (i32, i32) {
    %c0_i32 = arith.constant 0 : i32
    %c0_i32_0 = arith.constant 0 : i32
    return %arg0, %c0_i32 : i32, i32
  }
  func.func @transform_1(%arg0: i32) -> (i32, i32) {
    %c0_i32 = arith.constant 0 : i32
    %c0_i32_0 = arith.constant 0 : i32
    %c0_i32_1 = arith.constant 0 : i32
    return %c0_i32, %c0_i32_0 : i32, i32
  }
  func.func @transform_2(%arg0: i32) -> (i32, i32) {
    %c0_i32 = arith.constant 0 : i32
    %c0_i32_0 = arith.constant 0 : i32
    %c0_i32_1 = arith.constant 0 : i32
    return %c0_i32, %c0_i32_0 : i32, i32
  }
  func.func @transform_3(%arg0: i32) -> (i32, i32) {
    %c0_i32 = arith.constant 0 : i32
    %c0_i32_0 = arith.constant 0 : i32
    %c0_i32_1 = arith.constant 0 : i32
    return %c0_i32, %c0_i32_0 : i32, i32
  }
  func.func @transform_4(%arg0: i32) -> (i32, i32) {
    %c0_i32 = arith.constant 0 : i32
    %c0_i32_0 = arith.constant 0 : i32
    %c0_i32_1 = arith.constant 0 : i32
    return %c0_i32, %c0_i32_0 : i32, i32
  }
  func.func @transform_5(%arg0: i32) -> (i32, i32) {
    %c0_i32 = arith.constant 0 : i32
    %c0_i32_0 = arith.constant 0 : i32
    %c0_i32_1 = arith.constant 0 : i32
    return %c0_i32, %c0_i32_0 : i32, i32
  }
  func.func @transform_6(%arg0: i32) -> (i32, i32) {
    %c0_i32 = arith.constant 0 : i32
    %c0_i32_0 = arith.constant 0 : i32
    %c0_i32_1 = arith.constant 0 : i32
    return %c0_i32, %c0_i32_0 : i32, i32
  }
  func.func @transform_7(%arg0: i32) -> (i32, i32) {
    %c0_i32 = arith.constant 0 : i32
    %c0_i32_0 = arith.constant 0 : i32
    return %arg0, %c0_i32 : i32, i32
  }
}

</mosaic_0001>

<bundles_post_ra>
// kernel: decoder_forward.1
= control target key start
LH: loop header
LB: loop body
LE: loop exit
PB: predicated region body
PF: predicated region fallthrough
CT: control target
= control target key end

     0   :  { %12 = vsyncpa [#allocation3], 0  ;;  %s9242_s0 = inlined_call_operand.vmem [shape: bf16[64,16], index: 0, kind: input, shape index: {}]   ;;  %s9243_s1 = inlined_call_operand.hbm [shape: bf16[16,512], index: 1, kind: input, shape index: {}]   ;;  %s9244_s2 = inlined_call_operand.hbm [shape: f32[1,512], index: 2, kind: input, shape index: {}]   ;;  %s9245_s3 = inlined_call_operand.hbm [shape: bf16[512,1024], index: 3, kind: input, shape index: {}]   ;;  %s9246_s4 = inlined_call_operand.hbm [shape: f32[1,1024], index: 4, kind: input, shape index: {}]   ;;  %s9247_s5 = inlined_call_operand.hbm [shape: bf16[1024,896], index: 5, kind: input, shape index: {}]   ;;  %s9248_s6 = inlined_call_operand.hbm [shape: f32[1,896], index: 6, kind: input, shape index: {}]   ;;  %s9249_s7 = inlined_call_operand.hbm [shape: f32[64,784], index: 7, kind: output, shape index: {}]  }
   0x1   :  { %13 = vsyncpa [#allocation6], 0 }
   0x2   :  { %14 = vsyncpa [#allocation9], 0 }
   0x3   :  { %15 = vsyncpa [#allocation12], 0 }
   0x4   :  { %16 = vsyncpa [#allocation4], 0 }
   0x5   :  { %18 = vsyncpa [#allocation4 + $0x1], 0  ;;  %s8667_s24 = smov 0   ;;  %s8669_s25 = smov 0  }
   0x6   :  { %s8671_s26 = smov 0   ;;  %s8673_s27 = smov 0  }
   0x7 LB: > { %s8688_s28 = sadd.s32 4294967295, %s8609_s27   ;;  %s6628_s29 = sadd.s32 4294967294, %s8609_s27   ;;  %s8609_s27 = sphi %s8673_s27, %s9272_s27   ;;  %s8605_s26 = sphi %s8671_s26, %s9271_s26   ;;  %s8601_s25 = sphi %s8669_s25, %s9270_s25   ;;  %s8597_s24 = sphi %s8667_s24, %s9269_s24  }
   0x8   : > { %s8692_s30 = sadd.s32 1, %s8609_s27   ;;  %s183_s8 = sadd.s32 1, %s8605_s26 }
   0x9   : > { %s180_s9 = ssub.s32 %s8609_s27, %s8692_s30  ;;  %p193_p0 = scmp.ne.s32.totalorder %s8605_s26, %s8601_s25 }
   0xa   : > { %p181_p1 = scmp.eq.s32.totalorder %s180_s9, 0  ;;  %p194_p2 = scmp.eq.s32.totalorder %s8688_s28, 1 }
   0xb   : > { %p199_p3 = scmp.ne.s32.totalorder %s8601_s25, %s8597_s24  ;;  %p200_p4 = scmp.eq.s32.totalorder %s6628_s29, 1 }
   0xc   : > { %s8703_s10 = scalar_select %p181_p1, %s8605_s26, %s183_s8  }
   0xd   : > { %p8705_p5 = por %p194_p2, %p193_p0  ;;  %p8709_p6 = por %p200_p4, %p199_p3 }
   0xe   : > { %p6629_p7 = scmp.ge.s32.totalorder %s8609_s27, 1  ;;  %p207_p8 = scmp.lt.s32.totalorder %s8609_s27, 3 }
   0xf   : > { %s9253_s11 = scalar_select %p8705_p5, 1, 0 }
  0x10   : > { %s9254_s12 = scalar_select %p8709_p6, 1, 0 }
  0x11   : > { %p9250_p9 = scmp.eq.s32.totalorder %s8688_s28, 0  ;;  %p8716_p10 = pnand %p6629_p7, %p207_p8 }
  0x12   : > { %s8611_s14 = smov [#allocation5]   ;;  %s8612_s16 = smov [#allocation8]  }
  0x13   : > { %s9255_s13 = scalar_select %p8716_p10, 1, 0 }
  0x14   : > { %s233_s15 = sshll.u32 %s8611_s14, 4  ;;  %p7533_p11 = pneg %p8716_p10  ;;  %s234_s15 = int_to_ptr.vmem [resolvable:$true] %s233_s15 }
  0x15   : > { %s257_s17 = sshll.u32 %s8612_s16, 4  ;;  %s8613_s19 = smov [#allocation2]   ;;  %s258_s17 = int_to_ptr.vmem [resolvable:$true] %s257_s17 }
  0x16   : > { %p8724_p12 = pnand %p9250_p9, %p7533_p11  ;;  %s219_s20 = sshll.u32 %s8613_s19, 4  ;;  %s8728_s20 = int_to_ptr.vmem [resolvable:$true] %s219_s20 }
  0x17   : > { %s8388_s22 = scalar_lea.vmem %s234_s15, 64  ;;  %p8396_p3 = scmp.lt.s32.totalorder %s234_s15, %s234_s15 }
  0x18   : > { %p8732_p13 = pneg %p8724_p12  ;;  %p8389_p0 = scmp.ne.s32.totalorder %s234_s15, %s8388_s22 }
  0x19   : > { %p8397_p4 = scmp.lt.s32.totalorder %s8388_s22, %s8388_s22 }
  0x1a   : > { %p8391_p1 = pnand %p8389_p0, %p8732_p13 }
  0x1b   : > { %p8398_p7 = por %p8397_p4, %p8396_p3 }
  0x1c   : > { %p8392_p2 = pneg %p8391_p1 }
  0x1e   : > { %p8399_p8 = pnand %p8398_p7, %p8392_p2 }
  0x20   : > { %8402 = shalt.err (!%p8399_p8)
}
  0x21   : > { %7539 = dma.hbm_to_vmem [thread:$0]  (!%p8724_p12), %s9244_s2, 64, %s234_s15, [#allocation6]  }
  0x22   : > { %s8414_s8 = scalar_lea.vmem %s258_s17, 128  ;;  %p8422_p5 = scmp.lt.s32.totalorder %s258_s17, %s258_s17 }
  0x23   : > { %p8415_p11 = scmp.ne.s32.totalorder %s258_s17, %s8414_s8  ;;  %p8423_p0 = scmp.lt.s32.totalorder %s8414_s8, %s8414_s8 }
  0x25   : > { %p8417_p9 = pnand %p8415_p11, %p8732_p13  ;;  %p8424_p1 = por %p8423_p0, %p8422_p5 }
  0x27   : > { %p8418_p6 = pneg %p8417_p9 }
  0x29   : > { %p8425_p10 = pnand %p8424_p1, %p8418_p6 }
  0x2b   : > { %8428 = shalt.err (!%p8425_p10)
}
  0x2c   : > { %7545 = dma.hbm_to_vmem [thread:$0]  (!%p8724_p12), %s9246_s4, 128, %s258_s17, [#allocation9]  }
  0x2d   : > { %s8440_s15 = scalar_lea.vmem %s8728_s20, 512  ;;  %p8448_p4 = scmp.lt.s32.totalorder %s8728_s20, %s8728_s20 }
  0x2e   : > { %p8441_p2 = scmp.ne.s32.totalorder %s8728_s20, %s8440_s15  ;;  %p8449_p5 = scmp.lt.s32.totalorder %s8440_s15, %s8440_s15 }
  0x30   : > { %p8443_p3 = pnand %p8441_p2, %p8732_p13  ;;  %p8450_p6 = por %p8449_p5, %p8448_p4 }
  0x32   : > { %p8444_p9 = pneg %p8443_p3 }
  0x34   : > { %p8451_p10 = pnand %p8450_p6, %p8444_p9 }
  0x36   : > { %8454 = shalt.err (!%p8451_p10)
}
  0x37   : > { %s8614_s16 = smov 256   ;;  %s8615_s19 = smov 16  }
  0x38   : > { %7536 = dma.hbm_to_vmem [thread:$0]  (!%p8724_p12), %s9243_s1, 512, %s8728_s20, [#allocation3], %s8614_s16, %s8614_s16, %s8615_s19  }
  0x39   : > { %s8616_s17 = smov [#allocation7]  }
  0x3a   : > { %s243_s29 = sshll.u32 %s8616_s17, 4  ;;  %s244_s29 = int_to_ptr.vmem [resolvable:$true] %s243_s29 }
  0x3b   : > { %s8466_s8 = scalar_lea.vmem %s244_s29, 32768  ;;  %p8474_p0 = scmp.lt.s32.totalorder %s244_s29, %s244_s29 }
  0x3c   : > { %p8467_p7 = scmp.ne.s32.totalorder %s244_s29, %s8466_s8  ;;  %p8475_p1 = scmp.lt.s32.totalorder %s8466_s8, %s8466_s8 }
  0x3e   : > { %p8469_p8 = pnand %p8467_p7, %p8732_p13  ;;  %p8476_p2 = por %p8475_p1, %p8474_p0 }
  0x40   : > { %p8470_p11 = pneg %p8469_p8 }
  0x42   : > { %p8477_p3 = pnand %p8476_p2, %p8470_p11 }
  0x44   : > { %8480 = shalt.err (!%p8477_p3)
}
  0x45   : > { %s8617_s9 = smov 512   ;;  %s8618_s14 = smov 32  }
  0x46   : > { %7542 = dma.hbm_to_vmem [thread:$0]  (!%p8724_p12), %s9245_s3, 32768, %s244_s29, [#allocation6], %s8617_s9, %s8617_s9, %s8618_s14  }
  0x47   : > { %s8619_s16 = smov [#allocation10]  }
  0x48   : > { %s267_s19 = sshll.u32 %s8619_s16, 4  ;;  %s268_s19 = int_to_ptr.vmem [resolvable:$true] %s267_s19 }
  0x49   : > { %s8492_s22 = scalar_lea.vmem %s268_s19, 57344  ;;  %p8500_p6 = scmp.lt.s32.totalorder %s268_s19, %s268_s19 }
  0x4a   : > { %p8493_p9 = scmp.ne.s32.totalorder %s268_s19, %s8492_s22  ;;  %p8501_p10 = scmp.lt.s32.totalorder %s8492_s22, %s8492_s22 }
  0x4c   : > { %p8495_p4 = pnand %p8493_p9, %p8732_p13  ;;  %p8502_p7 = por %p8501_p10, %p8500_p6 }
  0x4e   : > { %p8496_p5 = pneg %p8495_p4 }
  0x50   : > { %p8503_p8 = pnand %p8502_p7, %p8496_p5 }
  0x52   : > { %8506 = shalt.err (!%p8503_p8)
}
  0x53   : > { %s8620_s23 = smov 448   ;;  %s8621_s17 = smov 28  }
  0x54   : > { %7548 = dma.hbm_to_vmem [thread:$0]  (!%p8724_p12), %s9247_s5, 57344, %s268_s19, [#allocation9], %s8620_s23, %s8620_s23, %s8621_s17  }
  0x55   : > { %s8622_s9 = smov [#allocation11]  }
  0x56   : > { %s281_s14 = sshll.u32 %s8622_s9, 4  ;;  %s282_s14 = int_to_ptr.vmem [resolvable:$true] %s281_s14 }
  0x57   : > { %s8518_s15 = scalar_lea.vmem %s282_s14, 112  ;;  %s8525_s20 = scalar_lea.vmem %s282_s14, 128 }
  0x58   : > { %p8519_p11 = scmp.ne.s32.totalorder %s282_s14, %s8518_s15  ;;  %p8526_p2 = scmp.lt.s32.totalorder %s282_s14, %s282_s14 }
  0x59   : > { %p8527_p3 = scmp.lt.s32.totalorder %s8525_s20, %s8518_s15 }
  0x5a   : > { %p8521_p0 = pnand %p8519_p11, %p8732_p13 }
  0x5b   : > { %p8528_p9 = por %p8527_p3, %p8526_p2 }
  0x5c   : > { %p8522_p1 = pneg %p8521_p0 }
  0x5e   : > { %p8529_p4 = pnand %p8528_p9, %p8522_p1 }
  0x60   : > { %8532 = shalt.err (!%p8529_p4)
}
  0x61   : > { %7551 = dma.hbm_to_vmem [thread:$0]  (!%p8724_p12), %s9248_s6, 112, %s282_s14, [#allocation12]  }
  0x62   : > { %p9258_p5 = scmp.ne.s32.totalorder %s9255_s13, 0 }
  0x63   : > { %p9259_p6 = scmp.eq.s32.totalorder (!%p9258_p5), %s8688_s28, 0 }
  0x64   : > { %303 = sbr.rel (%p9258_p5) target bundleno = 1311 (0x51f), region = 48 }
  0x69   : > { %8576 = dma.done.wait (%p9259_p6), [#allocation3], 512   ;;  %p9260_p13 = pmov %p9259_p6 }
  0x6a   : > { %p9261_p10 = pmov %p9259_p6 }
  0x6b   : > { %8578 = vsyncadd (%p9260_p13), [#allocation3], 4294966784 }
  0x6c   : > { %8580 = dma.done.wait (%p9261_p10), [#allocation6], 32832   ;;  %p9262_p7 = pmov %p9259_p6 }
  0x6d   : > { %p9263_p8 = pmov %p9259_p6 }
  0x6e   : > { %8582 = vsyncadd (%p9262_p7), [#allocation6], 4294934464 }
  0x6f   : > { %8584 = dma.done.wait (%p9263_p8), [#allocation9], 57472   ;;  %p9264_p12 = pmov %p9259_p6 }
  0x70   : > { %p9265_p11 = pmov %p9259_p6 }
  0x71   : > { %8586 = vsyncadd (%p9264_p12), [#allocation9], 4294909824 }
  0x72   : > { %8588 = dma.done.wait (%p9265_p11), [#allocation12], 112   ;;  %p9266_p0 = pmov %p9259_p6 }
  0x73   : > { %s6644_s13 = sshll.u32 %s8688_s28, 2  ;;  %v8623_v0 = vmov 0   ;;  %v7616_v1 = vld [vmem:[#allocation2 + $0x4] ss:$16 sps:$4 sm:$0xff]   ;;  %v7618_v2 = vld [vmem:[#allocation2 + $0xc] ss:$16 sps:$4 sm:$0xff]  }
  0x74   : > { %8590 = vsyncadd (%p9266_p0), [#allocation12], 4294967184  ;;  %462 = vmatprep.mubr.bf16.mxu0 %v8623_v0  ;;  %515 = vmatprep.mubr.bf16.mxu1 %v8623_v0  ;;  %p356_p1 = scmp.lt.s32.totalorder %s6644_s13, 7  ;;  %v7620_v3 = vld [vmem:[#allocation2] ss:$16 sps:$4 sm:$0xff]   ;;  %vm423_vm0 = vcmask 130048  }
  0x75   : > { %444 = vmatprep.subr.bf16.mxu0 %v7616_v1  ;;  %v7621_v4 = vld [vmem:[#allocation2 + $0x8] ss:$16 sps:$4 sm:$0xff]   ;;  %497 = vmatprep.subr.bf16.mxu1 %v7618_v2  ;;  %s352_s17 = sand.u32 1, %s8601_s25   ;;  %s7506_s9 = smul.u32 3584, %s8688_s28 }
  0x76   : > { %s9274_s13 = smov (!%p356_p1, %s6644_s13), 7  ;;  %445 = vmatpush1.bf16.msra.mxu0 %v7620_v3  ;;  %498 = vmatpush1.bf16.msra.mxu1 %v7621_v4  ;;  %v616_v6 = vld [vmem:[#allocation7 + $0x1c0] sm:$0xff]  ;;  %s7505_s8 = smul.u32 224, %s352_s17 }
  0x77   : > { %s6645_s18 = sshll.u32 %s9274_s13, 2  ;;  %v620_v7 = vld [vmem:[#allocation7 + $0x1e0] sm:$0xff]  ;;  %s9194_s16 = scalar_lea.hbm %s9249_s7, %s7506_s9 }
  0x78   : > { %s8805_s23 = scalar_lea.vmem %s9242_s0, %s6645_s18  ;;  %v744_v8 = vld [vmem:[#allocation7 + $0x5c0] sm:$0xff]  ;;  %v6712_v10 = vcombine.low %v616_v6, %v620_v7  ;;  %v6713_v11 = vcombine.high %v616_v6, %v620_v7  ;;  %s9127_s29 = scalar_lea.vmem [#allocation13], %s7505_s8 }
  0x79   : > { %v7622_v5 = vld [vmem:[%s8805_s23] sm:$0xff]   ;;  %v7623_v26 = vld [vmem:[%s8805_s23 + $0x8] sm:$0xff]   ;;  %s6506_s14 = sshll.u32 %s9127_s29, 4  ;;  %s9202_s22 = scalar_lea.sflag [#allocation4], %s352_s17  ;;  %s9196_s14 = int_to_ptr.vmem [resolvable:$true] %s6506_s14 }
  0x7a   : > { %v748_v9 = vld [vmem:[#allocation7 + $0x5e0] sm:$0xff]  ;;  %6652 = vmatmul.mubr.msk.bf16.vlgmr.msra.gmra.mxu0 %vm423_vm0, %v7622_v5  ;;  %6654 = vmatmul.mubr.msk.bf16.vlgmr.msra.gmra.mxu1 %vm423_vm0, %v7622_v5  ;;  %s8533_s28 = scalar_lea.vmem %s9196_s14, 3584  ;;  %p9267_p3 = scmp.ne.s32.totalorder %s9253_s11, 0 }
  0x7b   : > { %v6840_v12 = vcombine.low %v744_v8, %v748_v9  ;;  %v6841_v13 = vcombine.high %v744_v8, %v748_v9  ;;  %v608_v14 = vld [vmem:[#allocation7 + $0x180] sm:$0xff]  ;;  %472 = vmatprep.mubr.bf16.mxu0 %v8623_v0  ;;  %525 = vmatprep.mubr.bf16.mxu1 %v8623_v0  ;;  %p8534_p2 = scmp.ne.s32.totalorder %s9196_s14, %s8533_s28  ;;  %s8624_s13 = smov [#allocation13]  }
  0x7c   : > { %v612_v15 = vld [vmem:[#allocation7 + $0x1a0] sm:$0xff]  ;;  %2138 = vmatprep.subr.bf16.mxu0 %v6713_v11  ;;  %s8537_s18 = sshll.u32 %s8624_s13, 4  ;;  %s8538_s18 = int_to_ptr.vmem [resolvable:$false] %s8537_s18 }
  0x7d   : > { %v736_v16 = vld [vmem:[#allocation7 + $0x580] sm:$0xff]  ;;  %v6705_v17 = vcombine.high %v608_v14, %v612_v15  ;;  %2191 = vmatprep.subr.bf16.mxu1 %v6841_v13  ;;  %2139 = vmatpush1.bf16.msra.mxu0 %v6712_v10  ;;  %v6704_v24 = vcombine.low %v608_v14, %v612_v15  ;;  %p8535_p9 = pnand %p8534_p2, %p9267_p3  ;;  %s8539_s21 = scalar_lea.vmem %s8538_s18, 7168 }
  0x7e   : > { %v740_v18 = vld [vmem:[#allocation7 + $0x5a0] sm:$0xff]  ;;  %2192 = vmatpush1.bf16.msra.mxu1 %v6840_v12  ;;  %p8540_p5 = scmp.lt.s32.totalorder %s9196_s14, %s8538_s18  ;;  %p8541_p6 = scmp.lt.s32.totalorder %s8539_s21, %s8533_s28 }
  0x7f   : > { %v6833_v19 = vcombine.high %v736_v16, %v740_v18  ;;  %v600_v20 = vld [vmem:[#allocation7 + $0x140] sm:$0xff]  ;;  %v6832_v25 = vcombine.low %v736_v16, %v740_v18  ;;  %2140 = vmatprep.subr.bf16.mxu0 %v6705_v17  ;;  %p8536_p4 = pneg %p8535_p9 }
  0x80   : > { %v604_v21 = vld [vmem:[#allocation7 + $0x160] sm:$0xff]  ;;  %p8542_p13 = por %p8541_p6, %p8540_p5 }
  0x81   : > { %v728_v22 = vld [vmem:[#allocation7 + $0x540] sm:$0xff]  ;;  %2193 = vmatprep.subr.bf16.mxu1 %v6833_v19  ;;  %v6697_v28 = vcombine.high %v600_v20, %v604_v21  ;;  %2141 = vmatpush1.bf16.msra.mxu0 %v6704_v24  ;;  %v6696_v33 = vcombine.low %v600_v20, %v604_v21 }
  0x82   : > { %v732_v23 = vld [vmem:[#allocation7 + $0x560] sm:$0xff]  ;;  %2194 = vmatpush1.bf16.msra.mxu1 %v6832_v25  ;;  %6653 = vmatmul.mubr.msk.bf16.gmra.mxu0 %vm423_vm0, %v7623_v26  ;;  %p8543_p10 = pnand %p8542_p13, %p8536_p4 }
  0x83   : > { %v592_v27 = vld [vmem:[#allocation7 + $0x100] sm:$0xff]  ;;  %v6825_v29 = vcombine.high %v728_v22, %v732_v23  ;;  %v6824_v34 = vcombine.low %v728_v22, %v732_v23  ;;  %6655 = vmatmul.mubr.msk.bf16.gmra.mxu1 %vm423_vm0, %v7623_v26  ;;  %2142 = vmatprep.subr.bf16.mxu0 %v6697_v28 }
  0x84   : > { %v596_v30 = vld [vmem:[#allocation7 + $0x120] sm:$0xff] }
  0x85   : > { %v720_v31 = vld [vmem:[#allocation7 + $0x500] sm:$0xff]  ;;  %v6689_v35 = vcombine.high %v592_v27, %v596_v30  ;;  %2195 = vmatprep.subr.bf16.mxu1 %v6825_v29  ;;  %2143 = vmatpush1.bf16.msra.mxu0 %v6696_v33  ;;  %v6688_v41 = vcombine.low %v592_v27, %v596_v30 }
  0x86   : > { %v724_v32 = vld [vmem:[#allocation7 + $0x520] sm:$0xff]  ;;  %2196 = vmatpush1.bf16.msra.mxu1 %v6824_v34 }
  0x87   : > { %v6817_v36 = vcombine.high %v720_v31, %v724_v32  ;;  %v584_v37 = vld [vmem:[#allocation7 + $0xc0] sm:$0xff]  ;;  %v6816_v42 = vcombine.low %v720_v31, %v724_v32  ;;  %2144 = vmatprep.subr.bf16.mxu0 %v6689_v35 }
  0x88   : > { %v588_v38 = vld [vmem:[#allocation7 + $0xe0] sm:$0xff] }
  0x89   : > { %v712_v39 = vld [vmem:[#allocation7 + $0x4c0] sm:$0xff]  ;;  %2197 = vmatprep.subr.bf16.mxu1 %v6817_v36  ;;  %v6681_v43 = vcombine.high %v584_v37, %v588_v38  ;;  %2145 = vmatpush1.bf16.msra.mxu0 %v6688_v41  ;;  %v6680_v49 = vcombine.low %v584_v37, %v588_v38 }
  0x8a   : > { %v716_v40 = vld [vmem:[#allocation7 + $0x4e0] sm:$0xff]  ;;  %2198 = vmatpush1.bf16.msra.mxu1 %v6816_v42 }
  0x8b   : > { %v6809_v44 = vcombine.high %v712_v39, %v716_v40  ;;  %v576_v45 = vld [vmem:[#allocation7 + $0x80] sm:$0xff]  ;;  %v6808_v50 = vcombine.low %v712_v39, %v716_v40  ;;  %2146 = vmatprep.subr.bf16.mxu0 %v6681_v43 }
  0x8c   : > { %v580_v46 = vld [vmem:[#allocation7 + $0xa0] sm:$0xff] }
  0x8d   : > { %v704_v47 = vld [vmem:[#allocation7 + $0x480] sm:$0xff]  ;;  %2199 = vmatprep.subr.bf16.mxu1 %v6809_v44  ;;  %v6673_v55 = vcombine.high %v576_v45, %v580_v46  ;;  %2147 = vmatpush1.bf16.msra.mxu0 %v6680_v49  ;;  %v6672_v57 = vcombine.low %v576_v45, %v580_v46 }
  0x8e   : > { %v708_v48 = vld [vmem:[#allocation7 + $0x4a0] sm:$0xff]  ;;  %2200 = vmatpush1.bf16.msra.mxu1 %v6808_v50 }
  0x8f   : > { %v568_v51 = vld [vmem:[#allocation7 + $0x40] sm:$0xff]  ;;  %v6801_v56 = vcombine.high %v704_v47, %v708_v48  ;;  %v6800_v58 = vcombine.low %v704_v47, %v708_v48  ;;  %2148 = vmatprep.subr.bf16.mxu0 %v6673_v55 }
  0x90   : > { %v572_v52 = vld [vmem:[#allocation7 + $0x60] sm:$0xff] }
  0x91   : > { %v696_v53 = vld [vmem:[#allocation7 + $0x440] sm:$0xff]  ;;  %2201 = vmatprep.subr.bf16.mxu1 %v6801_v56  ;;  %v6665_v63 = vcombine.high %v568_v51, %v572_v52  ;;  %2149 = vmatpush1.bf16.msra.mxu0 %v6672_v57  ;;  %v6664_v1 = vcombine.low %v568_v51, %v572_v52 }
  0x92   : > { %v700_v54 = vld [vmem:[#allocation7 + $0x460] sm:$0xff]  ;;  %2202 = vmatpush1.bf16.msra.mxu1 %v6800_v58 }
  0x93   : > { %v560_v59 = vld [vmem:[#allocation7] sm:$0xff]  ;;  %v6793_v0 = vcombine.high %v696_v53, %v700_v54  ;;  %v6792_v2 = vcombine.low %v696_v53, %v700_v54  ;;  %2150 = vmatprep.subr.bf16.mxu0 %v6665_v63 }
  0x94   : > { %v564_v60 = vld [vmem:[#allocation7 + $0x20] sm:$0xff] }
  0x95   : > { %v688_v61 = vld [vmem:[#allocation7 + $0x400] sm:$0xff]  ;;  %2203 = vmatprep.subr.bf16.mxu1 %v6793_v0  ;;  %v6657_v7 = vcombine.high %v560_v59, %v564_v60  ;;  %2151 = vmatpush1.bf16.msra.mxu0 %v6664_v1  ;;  %v6656_v9 = vcombine.low %v560_v59, %v564_v60 }
  0x96   : > { %v692_v62 = vld [vmem:[#allocation7 + $0x420] sm:$0xff]  ;;  %2204 = vmatpush1.bf16.msra.mxu1 %v6792_v2 }
  0x97   : > { %v680_v3 = vld [vmem:[#allocation7 + $0x3c0] sm:$0xff]  ;;  %v6785_v8 = vcombine.high %v688_v61, %v692_v62  ;;  %v6784_v10 = vcombine.low %v688_v61, %v692_v62  ;;  %2152 = vmatprep.subr.bf16.mxu0 %v6657_v7  ;;  %v8813_v7 = vld [vmem:[#allocation7 + $0x1c8] sm:$0xff] }
  0x98   : > { %v684_v4 = vld [vmem:[#allocation7 + $0x3e0] sm:$0xff] }
  0x99   : > { %v808_v5 = vld [vmem:[#allocation7 + $0x7c0] sm:$0xff]  ;;  %2205 = vmatprep.subr.bf16.mxu1 %v6785_v8  ;;  %v6777_v15 = vcombine.high %v680_v3, %v684_v4  ;;  %2153 = vmatpush1.bf16.msra.mxu0 %v6656_v9  ;;  %v6776_v17 = vcombine.low %v680_v3, %v684_v4  ;;  %v8815_v8 = vld [vmem:[#allocation7 + $0x1e8] sm:$0xff] }
  0x9a   : > { %v812_v6 = vld [vmem:[#allocation7 + $0x7e0] sm:$0xff]  ;;  %2206 = vmatpush1.bf16.msra.mxu1 %v6784_v10  ;;  %v8817_v9 = vld [vmem:[#allocation7 + $0x5c8] sm:$0xff]  ;;  %v6715_v10 = vcombine.high %v8813_v7, %v8815_v8 }
  0x9b   : > { %v672_v11 = vld [vmem:[#allocation7 + $0x380] sm:$0xff]  ;;  %v6905_v16 = vcombine.high %v808_v5, %v812_v6  ;;  %v6904_v18 = vcombine.low %v808_v5, %v812_v6  ;;  %2154 = vmatprep.subr.bf16.mxu0 %v6777_v15  ;;  %v373_v15 = vlaneseq }
  0x9c   : > { %v676_v12 = vld [vmem:[#allocation7 + $0x3a0] sm:$0xff] }
  0x9d   : > { %v800_v13 = vld [vmem:[#allocation7 + $0x780] sm:$0xff]  ;;  %2207 = vmatprep.subr.bf16.mxu1 %v6905_v16  ;;  %v6769_v23 = vcombine.high %v672_v11, %v676_v12  ;;  %2155 = vmatpush2.bf16.msra.mxu0 %v6776_v17  ;;  %v6768_v25 = vcombine.low %v672_v11, %v676_v12  ;;  %v8821_v11 = vld [vmem:[#allocation7 + $0x5e8] sm:$0xff]  ;;  %v6714_v12 = vcombine.low %v8813_v7, %v8815_v8  ;;  %v8829_v16 = vshrl.u32 %v373_v15, 7 }
  0x9e   : > { %v804_v14 = vld [vmem:[#allocation7 + $0x7a0] sm:$0xff]  ;;  %2208 = vmatpush2.bf16.msra.mxu1 %v6904_v18  ;;  %v605_v15 = vld [vmem:[#allocation7 + $0x168] sm:$0xff] }
  0x9f   : > { %v664_v19 = vld [vmem:[#allocation7 + $0x340] sm:$0xff]  ;;  %v6897_v24 = vcombine.high %v800_v13, %v804_v14  ;;  %v6896_v26 = vcombine.low %v800_v13, %v804_v14  ;;  %2156 = vmatprep.subr.bf16.mxu0 %v6769_v23  ;;  %v6842_v13 = vcombine.low %v8817_v9, %v8821_v11  ;;  %v6843_v14 = vcombine.high %v8817_v9, %v8821_v11  ;;  %v725_v7 = vld [vmem:[#allocation7 + $0x528] sm:$0xff] }
  0xa0   : > { %v668_v20 = vld [vmem:[#allocation7 + $0x360] sm:$0xff]  ;;  %v8832_v17 = vsub.s32 0, %v8829_v16  ;;  %v8835_v18 = vsub.s32 1, %v8829_v16  ;;  %v585_v11 = vld [vmem:[#allocation7 + $0xc8] sm:$0xff] }
  0xa1   : > { %v792_v21 = vld [vmem:[#allocation7 + $0x740] sm:$0xff]  ;;  %2209 = vmatprep.subr.bf16.mxu1 %v6897_v24  ;;  %v6761_v31 = vcombine.high %v664_v19, %v668_v20  ;;  %2157 = vmatpush2.bf16.msra.mxu0 %v6768_v25  ;;  %v6760_v33 = vcombine.low %v664_v19, %v668_v20  ;;  %v371_v19 = vld [vmem:[#allocation5] sm:$0xf]  ;;  %v8838_v20 = vsub.s32 2, %v8829_v16 }
  0xa2   : > { %v796_v22 = vld [vmem:[#allocation7 + $0x760] sm:$0xff]  ;;  %2210 = vmatpush2.bf16.msra.mxu1 %v6896_v26  ;;  %v8845_v25 = vrot.slane %v371_v19, %v8835_v18 }
  0xa3   : > { %v656_v27 = vld [vmem:[#allocation7 + $0x300] sm:$0xff]  ;;  %v6889_v32 = vcombine.high %v792_v21, %v796_v22  ;;  %v6888_v34 = vcombine.low %v792_v21, %v796_v22  ;;  %2158 = vmatprep.subr.bf16.mxu0 %v6761_v31  ;;  %v8841_v21 = vsub.s32 3, %v8829_v16  ;;  %v376_v22 = vrot.slane %v371_v19, %v8832_v17 }
  0xa4   : > { %v660_v28 = vld [vmem:[#allocation7 + $0x320] sm:$0xff] }
  0xa5   : > { %v784_v29 = vld [vmem:[#allocation7 + $0x700] sm:$0xff]  ;;  %2211 = vmatprep.subr.bf16.mxu1 %v6889_v32  ;;  %v6753_v39 = vcombine.high %v656_v27, %v660_v28  ;;  %2159 = vmatpush2.bf16.msra.mxu0 %v6760_v33  ;;  %v6752_v41 = vcombine.low %v656_v27, %v660_v28  ;;  %v8848_v26 = vrot.slane %v371_v19, %v8841_v21 }
  0xa6   : > { %v788_v30 = vld [vmem:[#allocation7 + $0x720] sm:$0xff]  ;;  %2212 = vmatpush2.bf16.msra.mxu1 %v6888_v34  ;;  %v384_v27 = vrot.slane %v371_v19, %v8838_v20  ;;  %v8852_v34 = vld [vmem:[#allocation7 + $0x188] sm:$0xff] }
  0xa7   : > { %v648_v35 = vld [vmem:[#allocation7 + $0x2c0] sm:$0xff]  ;;  %v6881_v40 = vcombine.high %v784_v29, %v788_v30  ;;  %v6880_v42 = vcombine.low %v784_v29, %v788_v30  ;;  %2160 = vmatprep.subr.bf16.mxu0 %v6753_v39  ;;  %v8857_v39 = vld [vmem:[#allocation7 + $0x588] sm:$0xff] }
  0xa8   : > { %v652_v36 = vld [vmem:[#allocation7 + $0x2e0] sm:$0xff]  ;;  %v729_v19 = vld [vmem:[#allocation7 + $0x548] sm:$0xff] }
  0xa9   : > { %v776_v37 = vld [vmem:[#allocation7 + $0x6c0] sm:$0xff]  ;;  %2213 = vmatprep.subr.bf16.mxu1 %v6881_v40  ;;  %v6745_v43 = vcombine.high %v648_v35, %v652_v36  ;;  %2161 = vmatpush2.bf16.msra.mxu0 %v6752_v41  ;;  %v6744_v45 = vcombine.low %v648_v35, %v652_v36  ;;  %v8854_v35 = vld [vmem:[#allocation7 + $0x1a8] sm:$0xff] }
  0xaa   : > { %v780_v38 = vld [vmem:[#allocation7 + $0x6e0] sm:$0xff]  ;;  %2214 = vmatpush2.bf16.msra.mxu1 %v6880_v42 }
  0xab   : > { %v6873_v44 = vcombine.high %v776_v37, %v780_v38  ;;  %v6872_v46 = vcombine.low %v776_v37, %v780_v38  ;;  %2162 = vmatprep.subr.bf16.mxu0 %v6745_v43  ;;  %v640_v47 = vld [vmem:[#allocation7 + $0x280] sm:$0xff] }
  0xac   : > { %v644_v48 = vld [vmem:[#allocation7 + $0x2a0] sm:$0xff] }
  0xad   : > { %2215 = vmatprep.subr.bf16.mxu1 %v6873_v44  ;;  %2163 = vmatpush2.bf16.msra.mxu0 %v6744_v45  ;;  %v768_v49 = vld [vmem:[#allocation7 + $0x680] sm:$0xff]  ;;  %v6737_v50 = vcombine.high %v640_v47, %v644_v48  ;;  %v6736_v52 = vcombine.low %v640_v47, %v644_v48  ;;  %v8861_v45 = vld [vmem:[#allocation7 + $0x5a8] sm:$0xff] }
  0xae   : > { %2216 = vmatpush2.bf16.msra.mxu1 %v6872_v46  ;;  %v772_v51 = vld [vmem:[#allocation7 + $0x6a0] sm:$0xff] }
  0xaf   : > { %v6864_v53 = vcombine.low %v768_v49, %v772_v51  ;;  %v6865_v54 = vcombine.high %v768_v49, %v772_v51  ;;  %2164 = vmatprep.subr.bf16.mxu0 %v6737_v50  ;;  %v632_v55 = vld [vmem:[#allocation7 + $0x240] sm:$0xff] }
  0xb0   : > { %v636_v56 = vld [vmem:[#allocation7 + $0x260] sm:$0xff] }
  0xb1   : > { %2217 = vmatprep.subr.bf16.mxu1 %v6865_v54  ;;  %2165 = vmatpush2.bf16.msra.mxu0 %v6736_v52  ;;  %v760_v57 = vld [vmem:[#allocation7 + $0x640] sm:$0xff]  ;;  %v6729_v58 = vcombine.high %v632_v55, %v636_v56  ;;  %v6728_v60 = vcombine.low %v632_v55, %v636_v56  ;;  %v6707_v55 = vcombine.high %v8852_v34, %v8854_v35 }
  0xb2   : > { %2218 = vmatpush2.bf16.msra.mxu1 %v6864_v53  ;;  %v764_v59 = vld [vmem:[#allocation7 + $0x660] sm:$0xff] }
  0xb3   : > { %v6856_v61 = vcombine.low %v760_v57, %v764_v59  ;;  %v6857_v62 = vcombine.high %v760_v57, %v764_v59  ;;  %2166 = vmatprep.subr.bf16.mxu0 %v6729_v58  ;;  %v624_v63 = vld [vmem:[#allocation7 + $0x200] sm:$0xff] }
  0xb4   : > { %v628_v0 = vld [vmem:[#allocation7 + $0x220] sm:$0xff] }
  0xb5   : > { %2219 = vmatprep.subr.bf16.mxu1 %v6857_v62  ;;  %2167 = vmatpush2.bf16.msra.mxu0 %v6728_v60  ;;  %v752_v1 = vld [vmem:[#allocation7 + $0x600] sm:$0xff]  ;;  %v6721_v2 = vcombine.high %v624_v63, %v628_v0  ;;  %v6720_v4 = vcombine.low %v624_v63, %v628_v0 }
  0xb6   : > { %2220 = vmatpush2.bf16.msra.mxu1 %v6856_v61  ;;  %v756_v3 = vld [vmem:[#allocation7 + $0x620] sm:$0xff]  ;;  %v6835_v61 = vcombine.high %v8857_v39, %v8861_v45 }
  0xb7   : > { %v6848_v5 = vcombine.low %v752_v1, %v756_v3  ;;  %v6849_v6 = vcombine.high %v752_v1, %v756_v3  ;;  %2168 = vmatprep.subr.bf16.mxu0 %v6721_v2 }
  0xb9   : > { %2221 = vmatprep.subr.bf16.mxu1 %v6849_v6  ;;  %2169 = vmatpush2.bf16.msra.mxu0 %v6720_v4 }
  0xba   : > { %2222 = vmatpush2.bf16.msra.mxu1 %v6848_v5  ;;  %2244 = vmatprep.subr.bf16.mxu0 %v6715_v10 }
  0xbb   : > { %2297 = vmatprep.subr.bf16.mxu1 %v6843_v14  ;;  %v601_v14 = vld [vmem:[#allocation7 + $0x148] sm:$0xff] }
 0x13a   : > { %v464_v23 = vpop.f32.mrf.mxu0  ;;  %v517_v24 = vpop.f32.mrf.mxu1 }
 0x13b   : > { %v465_v30 = vadd.f32 %v464_v23, %v376_v22  ;;  %v518_v40 = vadd.f32 %v517_v24, %v384_v27 }
 0x13c   : > { %v466_v28 = vpop.f32.mrf.mxu0  ;;  %v519_v29 = vpop.f32.mrf.mxu1 }
 0x13d   : > { %v467_v31 = vadd.f32 %v466_v28, %v8845_v25  ;;  %v520_v36 = vadd.f32 %v519_v29, %v8848_v26  ;;  %v536_v46 = vmax.f32 %v465_v30, 0.0  ;;  %v538_v56 = vmax.f32 %v518_v40, 0.0  ;;  %v733_v30 = vld [vmem:[#allocation7 + $0x568] sm:$0xff] }
 0x13e   : > { %v468_v32 = vpop.f32.mrf.mxu0  ;;  %v521_v33 = vpop.f32.mrf.mxu1  ;;  %v6826_v9 = vcombine.low %v729_v19, %v733_v30 }
 0x13f   : > { %v469_v37 = vadd.f32 %v468_v32, %v376_v22  ;;  %v522_v38 = vadd.f32 %v521_v33, %v384_v27  ;;  %v537_v47 = vmax.f32 %v467_v31, 0.0  ;;  %v539_v52 = vmax.f32 %v520_v36, 0.0 }
 0x140   : > { %v470_v41 = vpop.f32.mrf.mxu0  ;;  %v523_v42 = vpop.f32.mrf.mxu1  ;;  %v6706_v33 = vcombine.low %v8852_v34, %v8854_v35  ;;  %v6834_v36 = vcombine.low %v8857_v39, %v8861_v45  ;;  %v6699_v34 = vcombine.high %v601_v14, %v605_v15  ;;  %v6827_v35 = vcombine.high %v729_v19, %v733_v30  ;;  %v565_v19 = vld [vmem:[#allocation7 + $0x28] sm:$0xff] }
 0x141   : > { %v471_v43 = vadd.f32 %v470_v41, %v8845_v25  ;;  %v524_v44 = vadd.f32 %v523_v42, %v8848_v26  ;;  %v540_v48 = vmax.f32 %v469_v37, 0.0  ;;  %v542_v49 = vmax.f32 %v522_v38, 0.0  ;;  %v593_v41 = vld [vmem:[#allocation7 + $0x108] sm:$0xff] }
 0x142   : > { %v474_v50 = vpop.f32.mrf.mxu0  ;;  %v597_v42 = vld [vmem:[#allocation7 + $0x128] sm:$0xff] }
 0x143   : > { %v527_v51 = vpop.f32.mrf.mxu1  ;;  %v541_v53 = vmax.f32 %v471_v43, 0.0  ;;  %v543_v54 = vmax.f32 %v524_v44, 0.0  ;;  %v475_v57 = vadd.f32 %v474_v50, %v376_v22  ;;  %v8873_v2 = vpack.c.bf16 %v540_v48, %v536_v46  ;;  %v721_v43 = vld [vmem:[#allocation7 + $0x508] sm:$0xff] }
 0x144   : > { %v528_v58 = vadd.f32 %v527_v51, %v384_v27  ;;  %v476_v59 = vpop.f32.mrf.mxu0  ;;  %v8875_v3 = vpack.c.bf16 %v542_v49, %v538_v56  ;;  %v6698_v44 = vcombine.low %v601_v14, %v605_v15  ;;  %v6819_v45 = vcombine.high %v721_v43, %v725_v7  ;;  %v589_v46 = vld [vmem:[#allocation7 + $0xe8] sm:$0xff] }
 0x145   : > { %v529_v60 = vpop.f32.mrf.mxu1  ;;  %v8867_v62 = vpack.c.bf16 %v541_v53, %v537_v47  ;;  %v8869_v63 = vpack.c.bf16 %v543_v54, %v539_v52  ;;  %v477_v0 = vadd.f32 %v476_v59, %v8845_v25  ;;  %v544_v4 = vmax.f32 %v475_v57, 0.0  ;;  %v713_v47 = vld [vmem:[#allocation7 + $0x4c8] sm:$0xff] }
 0x146   : > { %v530_v1 = vadd.f32 %v529_v60, %v8848_v26  ;;  %v546_v5 = vmax.f32 %v528_v58, 0.0  ;;  %v478_v6 = vpop.f32.mrf.mxu0  ;;  %v717_v48 = vld [vmem:[#allocation7 + $0x4e8] sm:$0xff]  ;;  %v6690_v49 = vcombine.low %v593_v41, %v597_v42  ;;  %v6818_v50 = vcombine.low %v721_v43, %v725_v7 }
 0x147   : > { %v531_v10 = vpop.f32.mrf.mxu1  ;;  %v545_v23 = vmax.f32 %v477_v0, 0.0  ;;  %v479_v28 = vadd.f32 %v478_v6, %v376_v22  ;;  %2170 = vmatprep.mubr.bf16.mxu0 %v8867_v62  ;;  %2223 = vmatprep.mubr.bf16.mxu1 %v8869_v63  ;;  %v577_v51 = vld [vmem:[#allocation7 + $0x88] sm:$0xff]  ;;  %v6683_v52 = vcombine.high %v585_v11, %v589_v46  ;;  %v6811_v53 = vcombine.high %v713_v47, %v717_v48 }
 0x148   : > { %v547_v24 = vmax.f32 %v530_v1, 0.0  ;;  %v532_v29 = vadd.f32 %v531_v10, %v384_v27  ;;  %v480_v31 = vpop.f32.mrf.mxu0  ;;  %2171 = vmatmul.mubr.bf16.vlgmr.msra.gmra.mxu0 %v8873_v2  ;;  %2224 = vmatmul.mubr.bf16.vlgmr.msra.gmra.mxu1 %v8875_v3  ;;  %v581_v54 = vld [vmem:[#allocation7 + $0xa8] sm:$0xff]  ;;  %v6682_v57 = vcombine.low %v585_v11, %v589_v46  ;;  %v6810_v58 = vcombine.low %v713_v47, %v717_v48 }
 0x149   : > { %v533_v32 = vpop.f32.mrf.mxu1  ;;  %v548_v37 = vmax.f32 %v479_v28, 0.0  ;;  %v481_v27 = vadd.f32 %v480_v31, %v8845_v25  ;;  %2245 = vmatpush1.bf16.msra.mxu0 %v6714_v12  ;;  %2298 = vmatpush1.bf16.msra.mxu1 %v6842_v13  ;;  %v6691_v13 = vcombine.high %v593_v41, %v597_v42  ;;  %v709_v56 = vld [vmem:[#allocation7 + $0x4a8] sm:$0xff]  ;;  %v6675_v60 = vcombine.high %v577_v51, %v581_v54 }
 0x14a   : > { %v550_v22 = vmax.f32 %v532_v29, 0.0  ;;  %v534_v38 = vadd.f32 %v533_v32, %v8848_v26  ;;  %2246 = vmatprep.subr.bf16.mxu0 %v6707_v55  ;;  %2299 = vmatprep.subr.bf16.mxu1 %v6835_v61  ;;  %v705_v55 = vld [vmem:[#allocation7 + $0x488] sm:$0xff] }
 0x14b   : > { %v549_v40 = vmax.f32 %v481_v27, 0.0  ;;  %v8893_v25 = vpack.c.bf16 %v548_v37, %v544_v4  ;;  %v569_v59 = vld [vmem:[#allocation7 + $0x48] sm:$0xff]  ;;  %v6803_v61 = vcombine.high %v705_v55, %v709_v56  ;;  %v6802_v6 = vcombine.low %v705_v55, %v709_v56 }
 0x14c   : > { %v551_v39 = vmax.f32 %v534_v38, 0.0  ;;  %v8895_v26 = vpack.c.bf16 %v550_v22, %v546_v5  ;;  %v573_v0 = vld [vmem:[#allocation7 + $0x68] sm:$0xff]  ;;  %v6674_v5 = vcombine.low %v577_v51, %v581_v54 }
 0x14d   : > { %v8897_v8 = vpack.c.bf16 %v549_v40, %v545_v23  ;;  %2247 = vmatpush1.bf16.msra.mxu0 %v6706_v33  ;;  %2300 = vmatpush1.bf16.msra.mxu1 %v6834_v36  ;;  %v697_v1 = vld [vmem:[#allocation7 + $0x448] sm:$0xff]  ;;  %v6667_v14 = vcombine.high %v569_v59, %v573_v0  ;;  %v6666_v28 = vcombine.low %v569_v59, %v573_v0 }
 0x14e   : > { %v8899_v12 = vpack.c.bf16 %v551_v39, %v547_v24  ;;  %2248 = vmatprep.subr.bf16.mxu0 %v6699_v34  ;;  %2301 = vmatprep.subr.bf16.mxu1 %v6827_v35  ;;  %v701_v4 = vld [vmem:[#allocation7 + $0x468] sm:$0xff] }
 0x14f   : > { %2180 = vmatprep.mubr.bf16.mxu0 %v8897_v8  ;;  %v561_v10 = vld [vmem:[#allocation7 + $0x8] sm:$0xff]  ;;  %v6795_v15 = vcombine.high %v697_v1, %v701_v4  ;;  %v6794_v29 = vcombine.low %v697_v1, %v701_v4 }
 0x150   : > { %2233 = vmatprep.mubr.bf16.mxu1 %v8899_v12  ;;  %2181 = vmatmul.mubr.bf16.gmra.mxu0 %v8893_v25  ;;  %v689_v23 = vld [vmem:[#allocation7 + $0x408] sm:$0xff]  ;;  %v6659_v31 = vcombine.high %v561_v10, %v565_v19  ;;  %v6658_v22 = vcombine.low %v561_v10, %v565_v19 }
 0x151   : > { %2234 = vmatmul.mubr.bf16.gmra.mxu1 %v8895_v26  ;;  %2249 = vmatpush1.bf16.msra.mxu0 %v6698_v44  ;;  %v693_v24 = vld [vmem:[#allocation7 + $0x428] sm:$0xff] }
 0x152   : > { %2302 = vmatpush1.bf16.msra.mxu1 %v6826_v9  ;;  %2276 = vmatprep.mubr.bf16.mxu0 %v8867_v62  ;;  %v681_v30 = vld [vmem:[#allocation7 + $0x3c8] sm:$0xff]  ;;  %v6787_v32 = vcombine.high %v689_v23, %v693_v24  ;;  %v6786_v27 = vcombine.low %v689_v23, %v693_v24 }
 0x153   : > { %2329 = vmatprep.mubr.bf16.mxu1 %v8869_v63  ;;  %2250 = vmatprep.subr.bf16.mxu0 %v6691_v13  ;;  %v685_v33 = vld [vmem:[#allocation7 + $0x3e8] sm:$0xff] }
 0x154   : > { %2303 = vmatprep.subr.bf16.mxu1 %v6819_v45  ;;  %v809_v36 = vld [vmem:[#allocation7 + $0x7c8] sm:$0xff]  ;;  %v6779_v34 = vcombine.high %v681_v30, %v685_v33  ;;  %v6778_v42 = vcombine.low %v681_v30, %v685_v33 }
 0x155   : > { %2251 = vmatpush1.bf16.msra.mxu0 %v6690_v49  ;;  %v813_v37 = vld [vmem:[#allocation7 + $0x7e8] sm:$0xff] }
 0x156   : > { %2304 = vmatpush1.bf16.msra.mxu1 %v6818_v50  ;;  %2252 = vmatprep.subr.bf16.mxu0 %v6683_v52  ;;  %v673_v38 = vld [vmem:[#allocation7 + $0x388] sm:$0xff]  ;;  %v6907_v35 = vcombine.high %v809_v36, %v813_v37  ;;  %v6906_v43 = vcombine.low %v809_v36, %v813_v37 }
 0x157   : > { %2305 = vmatprep.subr.bf16.mxu1 %v6811_v53  ;;  %v677_v40 = vld [vmem:[#allocation7 + $0x3a8] sm:$0xff] }
 0x158   : > { %v801_v39 = vld [vmem:[#allocation7 + $0x788] sm:$0xff]  ;;  %v6771_v7 = vcombine.high %v673_v38, %v677_v40  ;;  %v6770_v46 = vcombine.low %v673_v38, %v677_v40 }
 0x159   : > { %2253 = vmatpush1.bf16.msra.mxu0 %v6682_v57  ;;  %v805_v41 = vld [vmem:[#allocation7 + $0x7a8] sm:$0xff] }
 0x15a   : > { %2306 = vmatpush1.bf16.msra.mxu1 %v6810_v58  ;;  %2254 = vmatprep.subr.bf16.mxu0 %v6675_v60  ;;  %v665_v44 = vld [vmem:[#allocation7 + $0x348] sm:$0xff]  ;;  %v6899_v9 = vcombine.high %v801_v39, %v805_v41  ;;  %v6898_v47 = vcombine.low %v801_v39, %v805_v41 }
 0x15b   : > { %2307 = vmatprep.subr.bf16.mxu1 %v6803_v61  ;;  %v669_v11 = vld [vmem:[#allocation7 + $0x368] sm:$0xff] }
 0x15c   : > { %v793_v13 = vld [vmem:[#allocation7 + $0x748] sm:$0xff]  ;;  %v6763_v49 = vcombine.high %v665_v44, %v669_v11  ;;  %v6762_v54 = vcombine.low %v665_v44, %v669_v11  ;;  %v622_v44 = vld [vmem:[#allocation7 + $0x1f0] sm:$0xff] }
 0x15d   : > { %2255 = vmatpush1.bf16.msra.mxu0 %v6674_v5  ;;  %v797_v45 = vld [vmem:[#allocation7 + $0x768] sm:$0xff] }
 0x15e   : > { %2308 = vmatpush1.bf16.msra.mxu1 %v6802_v6  ;;  %2256 = vmatprep.subr.bf16.mxu0 %v6667_v14  ;;  %v657_v48 = vld [vmem:[#allocation7 + $0x308] sm:$0xff]  ;;  %v6891_v50 = vcombine.high %v793_v13, %v797_v45  ;;  %v6890_v55 = vcombine.low %v793_v13, %v797_v45 }
 0x15f   : > { %2309 = vmatprep.subr.bf16.mxu1 %v6795_v15  ;;  %v661_v51 = vld [vmem:[#allocation7 + $0x328] sm:$0xff] }
 0x160   : > { %v785_v52 = vld [vmem:[#allocation7 + $0x708] sm:$0xff]  ;;  %v6755_v57 = vcombine.high %v657_v48, %v661_v51  ;;  %v6754_v0 = vcombine.low %v657_v48, %v661_v51  ;;  %v614_v48 = vld [vmem:[#allocation7 + $0x1b0] sm:$0xff] }
 0x161   : > { %2257 = vmatpush1.bf16.msra.mxu0 %v6666_v28  ;;  %v789_v53 = vld [vmem:[#allocation7 + $0x728] sm:$0xff] }
 0x162   : > { %2310 = vmatpush1.bf16.msra.mxu1 %v6794_v29  ;;  %2258 = vmatprep.subr.bf16.mxu0 %v6659_v31  ;;  %v649_v56 = vld [vmem:[#allocation7 + $0x2c8] sm:$0xff]  ;;  %v6883_v58 = vcombine.high %v785_v52, %v789_v53  ;;  %v6882_v1 = vcombine.low %v785_v52, %v789_v53 }
 0x163   : > { %2311 = vmatprep.subr.bf16.mxu1 %v6787_v32  ;;  %v653_v59 = vld [vmem:[#allocation7 + $0x2e8] sm:$0xff] }
 0x164   : > { %v777_v60 = vld [vmem:[#allocation7 + $0x6c8] sm:$0xff]  ;;  %v6747_v4 = vcombine.high %v649_v56, %v653_v59  ;;  %v6746_v19 = vcombine.low %v649_v56, %v653_v59  ;;  %v606_v56 = vld [vmem:[#allocation7 + $0x170] sm:$0xff] }
 0x165   : > { %2259 = vmatpush1.bf16.msra.mxu0 %v6658_v22  ;;  %v781_v61 = vld [vmem:[#allocation7 + $0x6e8] sm:$0xff] }
 0x166   : > { %2312 = vmatpush1.bf16.msra.mxu1 %v6786_v27  ;;  %2260 = vmatprep.subr.bf16.mxu0 %v6779_v34  ;;  %v6875_v5 = vcombine.high %v777_v60, %v781_v61  ;;  %v641_v6 = vld [vmem:[#allocation7 + $0x288] sm:$0xff]  ;;  %v6874_v23 = vcombine.low %v777_v60, %v781_v61 }
 0x167   : > { %2313 = vmatprep.subr.bf16.mxu1 %v6907_v35  ;;  %v645_v10 = vld [vmem:[#allocation7 + $0x2a8] sm:$0xff] }
 0x168   : > { %v769_v14 = vld [vmem:[#allocation7 + $0x688] sm:$0xff]  ;;  %v6739_v24 = vcombine.high %v641_v6, %v645_v10  ;;  %v6738_v33 = vcombine.low %v641_v6, %v645_v10  ;;  %v726_v6 = vld [vmem:[#allocation7 + $0x530] sm:$0xff] }
 0x169   : > { %2261 = vmatpush2.bf16.msra.mxu0 %v6778_v42  ;;  %v773_v15 = vld [vmem:[#allocation7 + $0x6a8] sm:$0xff] }
 0x16a   : > { %2314 = vmatpush2.bf16.msra.mxu1 %v6906_v43  ;;  %2262 = vmatprep.subr.bf16.mxu0 %v6771_v7  ;;  %v6867_v28 = vcombine.high %v769_v14, %v773_v15  ;;  %v633_v29 = vld [vmem:[#allocation7 + $0x248] sm:$0xff]  ;;  %v6866_v36 = vcombine.low %v769_v14, %v773_v15  ;;  %v618_v43 = vld [vmem:[#allocation7 + $0x1d0] sm:$0xff] }
 0x16b   : > { %2315 = vmatprep.subr.bf16.mxu1 %v6899_v9  ;;  %v637_v30 = vld [vmem:[#allocation7 + $0x268] sm:$0xff]  ;;  %v746_v7 = vld [vmem:[#allocation7 + $0x5d0] sm:$0xff]  ;;  %v6717_v45 = vcombine.high %v618_v43, %v622_v44  ;;  %v6716_v51 = vcombine.low %v618_v43, %v622_v44 }
 0x16c   : > { %v761_v31 = vld [vmem:[#allocation7 + $0x648] sm:$0xff]  ;;  %v6731_v37 = vcombine.high %v633_v29, %v637_v30  ;;  %v6730_v40 = vcombine.low %v633_v29, %v637_v30  ;;  %v750_v9 = vld [vmem:[#allocation7 + $0x5f0] sm:$0xff] }
 0x16d   : > { %2263 = vmatpush2.bf16.msra.mxu0 %v6770_v46  ;;  %v765_v32 = vld [vmem:[#allocation7 + $0x668] sm:$0xff]  ;;  %v6845_v46 = vcombine.high %v746_v7, %v750_v9  ;;  %v6844_v52 = vcombine.low %v746_v7, %v750_v9  ;;  %v718_v29 = vld [vmem:[#allocation7 + $0x4f0] sm:$0xff] }
 0x16e   : > { %2316 = vmatpush2.bf16.msra.mxu1 %v6898_v47  ;;  %2264 = vmatprep.subr.bf16.mxu0 %v6763_v49  ;;  %v6859_v22 = vcombine.high %v761_v31, %v765_v32  ;;  %v625_v27 = vld [vmem:[#allocation7 + $0x208] sm:$0xff]  ;;  %v6858_v39 = vcombine.low %v761_v31, %v765_v32  ;;  %v610_v47 = vld [vmem:[#allocation7 + $0x190] sm:$0xff] }
 0x16f   : > { %2317 = vmatprep.subr.bf16.mxu1 %v6891_v50  ;;  %v629_v38 = vld [vmem:[#allocation7 + $0x228] sm:$0xff]  ;;  %v738_v49 = vld [vmem:[#allocation7 + $0x590] sm:$0xff]  ;;  %v6709_v53 = vcombine.high %v610_v47, %v614_v48  ;;  %v6708_v59 = vcombine.low %v610_v47, %v614_v48 }
 0x170   : > { %v753_v34 = vld [vmem:[#allocation7 + $0x608] sm:$0xff]  ;;  %v6723_v41 = vcombine.high %v625_v27, %v629_v38  ;;  %v6722_v11 = vcombine.low %v625_v27, %v629_v38  ;;  %v742_v50 = vld [vmem:[#allocation7 + $0x5b0] sm:$0xff] }
 0x171   : > { %2265 = vmatpush2.bf16.msra.mxu0 %v6762_v54  ;;  %v757_v35 = vld [vmem:[#allocation7 + $0x628] sm:$0xff]  ;;  %v6837_v54 = vcombine.high %v738_v49, %v742_v50  ;;  %v6836_v60 = vcombine.low %v738_v49, %v742_v50  ;;  %v710_v27 = vld [vmem:[#allocation7 + $0x4b0] sm:$0xff] }
 0x172   : > { %2318 = vmatpush2.bf16.msra.mxu1 %v6890_v55  ;;  %2266 = vmatprep.subr.bf16.mxu0 %v6755_v57  ;;  %v6851_v42 = vcombine.high %v753_v34, %v757_v35  ;;  %v6850_v13 = vcombine.low %v753_v34, %v757_v35  ;;  %v602_v55 = vld [vmem:[#allocation7 + $0x150] sm:$0xff] }
 0x173   : > { %2319 = vmatprep.subr.bf16.mxu1 %v6883_v58  ;;  %v730_v57 = vld [vmem:[#allocation7 + $0x550] sm:$0xff]  ;;  %v6701_v61 = vcombine.high %v602_v55, %v606_v56  ;;  %v6700_v10 = vcombine.low %v602_v55, %v606_v56 }
 0x174   : > { %v734_v58 = vld [vmem:[#allocation7 + $0x570] sm:$0xff] }
 0x175   : > { %2267 = vmatpush2.bf16.msra.mxu0 %v6754_v0  ;;  %v6829_v0 = vcombine.high %v730_v57, %v734_v58  ;;  %v6828_v14 = vcombine.low %v730_v57, %v734_v58  ;;  %v702_v43 = vld [vmem:[#allocation7 + $0x470] sm:$0xff] }
 0x176   : > { %2320 = vmatpush2.bf16.msra.mxu1 %v6882_v1  ;;  %2268 = vmatprep.subr.bf16.mxu0 %v6747_v4  ;;  %v594_v1 = vld [vmem:[#allocation7 + $0x110] sm:$0xff] }
 0x177   : > { %2321 = vmatprep.subr.bf16.mxu1 %v6875_v5  ;;  %v598_v4 = vld [vmem:[#allocation7 + $0x130] sm:$0xff] }
 0x178   : > { %v722_v5 = vld [vmem:[#allocation7 + $0x510] sm:$0xff]  ;;  %v6693_v15 = vcombine.high %v594_v1, %v598_v4  ;;  %v6692_v30 = vcombine.low %v594_v1, %v598_v4 }
 0x179   : > { %2269 = vmatpush2.bf16.msra.mxu0 %v6746_v19  ;;  %v6821_v19 = vcombine.high %v722_v5, %v726_v6  ;;  %v6820_v31 = vcombine.low %v722_v5, %v726_v6  ;;  %v694_v47 = vld [vmem:[#allocation7 + $0x430] sm:$0xff] }
 0x17a   : > { %2322 = vmatpush2.bf16.msra.mxu1 %v6874_v23  ;;  %2270 = vmatprep.subr.bf16.mxu0 %v6739_v24  ;;  %v586_v23 = vld [vmem:[#allocation7 + $0xd0] sm:$0xff] }
 0x17b   : > { %2323 = vmatprep.subr.bf16.mxu1 %v6867_v28  ;;  %v590_v24 = vld [vmem:[#allocation7 + $0xf0] sm:$0xff] }
 0x17c   : > { %v714_v28 = vld [vmem:[#allocation7 + $0x4d0] sm:$0xff]  ;;  %v6685_v32 = vcombine.high %v586_v23, %v590_v24  ;;  %v6684_v38 = vcombine.low %v586_v23, %v590_v24 }
 0x17d   : > { %2271 = vmatpush2.bf16.msra.mxu0 %v6738_v33  ;;  %v6813_v33 = vcombine.high %v714_v28, %v718_v29  ;;  %v6812_v34 = vcombine.low %v714_v28, %v718_v29  ;;  %v814_v55 = vld [vmem:[#allocation7 + $0x7f0] sm:$0xff] }
 0x17e   : > { %2324 = vmatpush2.bf16.msra.mxu1 %v6866_v36  ;;  %2272 = vmatprep.subr.bf16.mxu0 %v6731_v37  ;;  %v578_v36 = vld [vmem:[#allocation7 + $0x90] sm:$0xff] }
 0x17f   : > { %2325 = vmatprep.subr.bf16.mxu1 %v6859_v22  ;;  %v582_v37 = vld [vmem:[#allocation7 + $0xb0] sm:$0xff] }
 0x180   : > { %v706_v22 = vld [vmem:[#allocation7 + $0x490] sm:$0xff]  ;;  %v6677_v35 = vcombine.high %v578_v36, %v582_v37  ;;  %v6676_v44 = vcombine.low %v578_v36, %v582_v37 }
 0x181   : > { %2273 = vmatpush2.bf16.msra.mxu0 %v6730_v40  ;;  %v6805_v40 = vcombine.high %v706_v22, %v710_v27  ;;  %v6804_v7 = vcombine.low %v706_v22, %v710_v27  ;;  %v806_v1 = vld [vmem:[#allocation7 + $0x7b0] sm:$0xff] }
 0x182   : > { %2326 = vmatpush2.bf16.msra.mxu1 %v6858_v39  ;;  %2274 = vmatprep.subr.bf16.mxu0 %v6723_v41  ;;  %v570_v39 = vld [vmem:[#allocation7 + $0x50] sm:$0xff] }
 0x183   : > { %2327 = vmatprep.subr.bf16.mxu1 %v6851_v42  ;;  %v574_v41 = vld [vmem:[#allocation7 + $0x70] sm:$0xff] }
 0x184   : > { %v698_v42 = vld [vmem:[#allocation7 + $0x450] sm:$0xff]  ;;  %v6669_v9 = vcombine.high %v570_v39, %v574_v41  ;;  %v6668_v48 = vcombine.low %v570_v39, %v574_v41 }
 0x185   : > { %2275 = vmatpush2.bf16.msra.mxu0 %v6722_v11  ;;  %v6797_v11 = vcombine.high %v698_v42, %v702_v43  ;;  %v6796_v49 = vcombine.low %v698_v42, %v702_v43  ;;  %v798_v23 = vld [vmem:[#allocation7 + $0x770] sm:$0xff] }
 0x186   : > { %2328 = vmatpush2.bf16.msra.mxu1 %v6850_v13  ;;  %2350 = vmatprep.subr.bf16.mxu0 %v6717_v45  ;;  %v562_v13 = vld [vmem:[#allocation7 + $0x10] sm:$0xff] }
 0x187   : > { %2403 = vmatprep.subr.bf16.mxu1 %v6845_v46  ;;  %v566_v45 = vld [vmem:[#allocation7 + $0x30] sm:$0xff] }
 0x188   : > { %2277 = vmatmul.mubr.bf16.vlgmr.msra.gmra.mxu0 %v8873_v2  ;;  %v690_v46 = vld [vmem:[#allocation7 + $0x410] sm:$0xff]  ;;  %v6661_v50 = vcombine.high %v562_v13, %v566_v45  ;;  %v6660_v56 = vcombine.low %v562_v13, %v566_v45 }
 0x189   : > { %2330 = vmatmul.mubr.bf16.vlgmr.msra.gmra.mxu1 %v8875_v3  ;;  %2286 = vmatprep.mubr.bf16.mxu0 %v8897_v8  ;;  %v6788_v57 = vcombine.low %v690_v46, %v694_v47  ;;  %v790_v36 = vld [vmem:[#allocation7 + $0x730] sm:$0xff] }
 0x18a   : > { %2339 = vmatprep.mubr.bf16.mxu1 %v8899_v12  ;;  %2351 = vmatpush1.bf16.msra.mxu0 %v6716_v51  ;;  %v6789_v51 = vcombine.high %v690_v46, %v694_v47  ;;  %v782_v39 = vld [vmem:[#allocation7 + $0x6f0] sm:$0xff] }
 0x18b   : > { %2404 = vmatpush1.bf16.msra.mxu1 %v6844_v52  ;;  %2352 = vmatprep.subr.bf16.mxu0 %v6709_v53  ;;  %v682_v52 = vld [vmem:[#allocation7 + $0x3d0] sm:$0xff] }
 0x18c   : > { %2405 = vmatprep.subr.bf16.mxu1 %v6837_v54  ;;  %v686_v53 = vld [vmem:[#allocation7 + $0x3f0] sm:$0xff] }
 0x18d   : > { %v810_v54 = vld [vmem:[#allocation7 + $0x7d0] sm:$0xff]  ;;  %v6781_v58 = vcombine.high %v682_v52, %v686_v53  ;;  %v6780_v4 = vcombine.low %v682_v52, %v686_v53 }
 0x18e   : > { %2353 = vmatpush1.bf16.msra.mxu0 %v6708_v59  ;;  %v6909_v59 = vcombine.high %v810_v54, %v814_v55  ;;  %v6908_v5 = vcombine.low %v810_v54, %v814_v55  ;;  %v774_v13 = vld [vmem:[#allocation7 + $0x6b0] sm:$0xff] }
 0x18f   : > { %2406 = vmatpush1.bf16.msra.mxu1 %v6836_v60  ;;  %2354 = vmatprep.subr.bf16.mxu0 %v6701_v61  ;;  %v674_v60 = vld [vmem:[#allocation7 + $0x390] sm:$0xff] }
 0x190   : > { %2407 = vmatprep.subr.bf16.mxu1 %v6829_v0  ;;  %2287 = vmatmul.mubr.bf16.gmra.mxu0 %v8893_v25  ;;  %v678_v61 = vld [vmem:[#allocation7 + $0x3b0] sm:$0xff] }
 0x191   : > { %2340 = vmatmul.mubr.bf16.gmra.mxu1 %v8895_v26  ;;  %2382 = vmatprep.mubr.bf16.mxu0 %v8867_v62  ;;  %v802_v0 = vld [vmem:[#allocation7 + $0x790] sm:$0xff]  ;;  %v6773_v6 = vcombine.high %v674_v60, %v678_v61  ;;  %v6772_v24 = vcombine.low %v674_v60, %v678_v61 }
 0x192   : > { %2435 = vmatprep.mubr.bf16.mxu1 %v8869_v63  ;;  %2355 = vmatpush1.bf16.msra.mxu0 %v6700_v10  ;;  %v6901_v10 = vcombine.high %v802_v0, %v806_v1  ;;  %v6900_v28 = vcombine.low %v802_v0, %v806_v1  ;;  %v766_v52 = vld [vmem:[#allocation7 + $0x670] sm:$0xff] }
 0x193   : > { %2408 = vmatpush1.bf16.msra.mxu1 %v6828_v14  ;;  %2356 = vmatprep.subr.bf16.mxu0 %v6693_v15  ;;  %v666_v14 = vld [vmem:[#allocation7 + $0x350] sm:$0xff] }
 0x194   : > { %2409 = vmatprep.subr.bf16.mxu1 %v6821_v19  ;;  %v670_v15 = vld [vmem:[#allocation7 + $0x370] sm:$0xff] }
 0x195   : > { %v794_v19 = vld [vmem:[#allocation7 + $0x750] sm:$0xff]  ;;  %v6765_v29 = vcombine.high %v666_v14, %v670_v15  ;;  %v6764_v37 = vcombine.low %v666_v14, %v670_v15  ;;  %v751_v14 = vld [vmem:[#allocation7 + $0x5f8] sm:$0xff] }
 0x196   : > { %2357 = vmatpush1.bf16.msra.mxu0 %v6692_v30  ;;  %v6893_v30 = vcombine.high %v794_v19, %v798_v23  ;;  %v6892_v22 = vcombine.low %v794_v19, %v798_v23  ;;  %v758_v60 = vld [vmem:[#allocation7 + $0x630] sm:$0xff] }
 0x197   : > { %2410 = vmatpush1.bf16.msra.mxu1 %v6820_v31  ;;  %2358 = vmatprep.subr.bf16.mxu0 %v6685_v32  ;;  %v658_v31 = vld [vmem:[#allocation7 + $0x310] sm:$0xff] }
 0x198   : > { %2411 = vmatprep.subr.bf16.mxu1 %v6813_v33  ;;  %v662_v32 = vld [vmem:[#allocation7 + $0x330] sm:$0xff] }
 0x199   : > { %v786_v33 = vld [vmem:[#allocation7 + $0x710] sm:$0xff]  ;;  %v6757_v27 = vcombine.high %v658_v31, %v662_v32  ;;  %v6756_v41 = vcombine.low %v658_v31, %v662_v32  ;;  %v743_v31 = vld [vmem:[#allocation7 + $0x5b8] sm:$0xff] }
 0x19a   : > { %2359 = vmatpush1.bf16.msra.mxu0 %v6684_v38  ;;  %v6885_v38 = vcombine.high %v786_v33, %v790_v36  ;;  %v6884_v42 = vcombine.low %v786_v33, %v790_v36 }
 0x19b   : > { %2412 = vmatpush1.bf16.msra.mxu1 %v6812_v34  ;;  %2360 = vmatprep.subr.bf16.mxu0 %v6677_v35  ;;  %v650_v34 = vld [vmem:[#allocation7 + $0x2d0] sm:$0xff] }
 0x19c   : > { %2413 = vmatprep.subr.bf16.mxu1 %v6805_v40  ;;  %v654_v35 = vld [vmem:[#allocation7 + $0x2f0] sm:$0xff] }
 0x19d   : > { %v778_v40 = vld [vmem:[#allocation7 + $0x6d0] sm:$0xff]  ;;  %v6749_v43 = vcombine.high %v650_v34, %v654_v35  ;;  %v6748_v45 = vcombine.low %v650_v34, %v654_v35  ;;  %v735_v34 = vld [vmem:[#allocation7 + $0x578] sm:$0xff] }
 0x19e   : > { %2361 = vmatpush1.bf16.msra.mxu0 %v6676_v44  ;;  %v6877_v44 = vcombine.high %v778_v40, %v782_v39  ;;  %v6876_v46 = vcombine.low %v778_v40, %v782_v39 }
 0x19f   : > { %2414 = vmatpush1.bf16.msra.mxu1 %v6804_v7  ;;  %2362 = vmatprep.subr.bf16.mxu0 %v6669_v9  ;;  %v642_v7 = vld [vmem:[#allocation7 + $0x290] sm:$0xff] }
 0x1a0   : > { %2415 = vmatprep.subr.bf16.mxu1 %v6797_v11  ;;  %v646_v9 = vld [vmem:[#allocation7 + $0x2b0] sm:$0xff] }
 0x1a1   : > { %v770_v11 = vld [vmem:[#allocation7 + $0x690] sm:$0xff]  ;;  %v6741_v47 = vcombine.high %v642_v7, %v646_v9  ;;  %v6740_v53 = vcombine.low %v642_v7, %v646_v9  ;;  %v727_v7 = vld [vmem:[#allocation7 + $0x538] sm:$0xff] }
 0x1a2   : > { %2363 = vmatpush1.bf16.msra.mxu0 %v6668_v48  ;;  %v6869_v48 = vcombine.high %v770_v11, %v774_v13  ;;  %v6868_v54 = vcombine.low %v770_v11, %v774_v13 }
 0x1a3   : > { %2416 = vmatpush1.bf16.msra.mxu1 %v6796_v49  ;;  %2364 = vmatprep.subr.bf16.mxu0 %v6661_v50  ;;  %v634_v49 = vld [vmem:[#allocation7 + $0x250] sm:$0xff] }
 0x1a4   : > { %2417 = vmatprep.subr.bf16.mxu1 %v6789_v51  ;;  %v638_v50 = vld [vmem:[#allocation7 + $0x270] sm:$0xff] }
 0x1a5   : > { %v762_v51 = vld [vmem:[#allocation7 + $0x650] sm:$0xff]  ;;  %v6733_v55 = vcombine.high %v634_v49, %v638_v50  ;;  %v6732_v61 = vcombine.low %v634_v49, %v638_v50  ;;  %v719_v49 = vld [vmem:[#allocation7 + $0x4f8] sm:$0xff] }
 0x1a6   : > { %2365 = vmatpush1.bf16.msra.mxu0 %v6660_v56  ;;  %v6861_v56 = vcombine.high %v762_v51, %v766_v52  ;;  %v6860_v0 = vcombine.low %v762_v51, %v766_v52 }
 0x1a7   : > { %2418 = vmatpush1.bf16.msra.mxu1 %v6788_v57  ;;  %2366 = vmatprep.subr.bf16.mxu0 %v6781_v58  ;;  %v626_v57 = vld [vmem:[#allocation7 + $0x210] sm:$0xff] }
 0x1a8   : > { %2419 = vmatprep.subr.bf16.mxu1 %v6909_v59  ;;  %v630_v58 = vld [vmem:[#allocation7 + $0x230] sm:$0xff] }
 0x1a9   : > { %v754_v59 = vld [vmem:[#allocation7 + $0x610] sm:$0xff]  ;;  %v6725_v1 = vcombine.high %v626_v57, %v630_v58  ;;  %v6724_v15 = vcombine.low %v626_v57, %v630_v58  ;;  %v711_v57 = vld [vmem:[#allocation7 + $0x4b8] sm:$0xff] }
 0x1aa   : > { %2367 = vmatpush2.bf16.msra.mxu0 %v6780_v4  ;;  %v6853_v4 = vcombine.high %v754_v59, %v758_v60  ;;  %v6852_v19 = vcombine.low %v754_v59, %v758_v60  ;;  %v571_v60 = vld [vmem:[#allocation7 + $0x58] sm:$0xff] }
 0x1ab   : > { %2420 = vmatpush2.bf16.msra.mxu1 %v6908_v5  ;;  %2368 = vmatprep.subr.bf16.mxu0 %v6773_v6  ;;  %v619_v5 = vld [vmem:[#allocation7 + $0x1d8] sm:$0xff] }
 0x1ac   : > { %2421 = vmatprep.subr.bf16.mxu1 %v6901_v10  ;;  %v623_v6 = vld [vmem:[#allocation7 + $0x1f8] sm:$0xff] }
 0x1ad   : > { %v747_v10 = vld [vmem:[#allocation7 + $0x5d8] sm:$0xff]  ;;  %v6719_v23 = vcombine.high %v619_v5, %v623_v6  ;;  %v6718_v32 = vcombine.low %v619_v5, %v623_v6 }
 0x1ae   : > { %2369 = vmatpush2.bf16.msra.mxu0 %v6772_v24  ;;  %v6847_v24 = vcombine.high %v747_v10, %v751_v14  ;;  %v6846_v33 = vcombine.low %v747_v10, %v751_v14  ;;  %v563_v14 = vld [vmem:[#allocation7 + $0x18] sm:$0xff] }
 0x1af   : > { %2422 = vmatpush2.bf16.msra.mxu1 %v6900_v28  ;;  %2370 = vmatprep.subr.bf16.mxu0 %v6765_v29  ;;  %v611_v28 = vld [vmem:[#allocation7 + $0x198] sm:$0xff] }
 0x1b0   : > { %2423 = vmatprep.subr.bf16.mxu1 %v6893_v30  ;;  %v615_v29 = vld [vmem:[#allocation7 + $0x1b8] sm:$0xff] }
 0x1b1   : > { %v739_v30 = vld [vmem:[#allocation7 + $0x598] sm:$0xff]  ;;  %v6711_v36 = vcombine.high %v611_v28, %v615_v29  ;;  %v6710_v35 = vcombine.low %v611_v28, %v615_v29 }
 0x1b2   : > { %2371 = vmatpush2.bf16.msra.mxu0 %v6764_v37  ;;  %v6839_v37 = vcombine.high %v739_v30, %v743_v31  ;;  %v6838_v40 = vcombine.low %v739_v30, %v743_v31  ;;  %v683_v31 = vld [vmem:[#allocation7 + $0x3d8] sm:$0xff] }
 0x1b3   : > { %2424 = vmatpush2.bf16.msra.mxu1 %v6892_v22  ;;  %2372 = vmatprep.subr.bf16.mxu0 %v6757_v27  ;;  %v603_v22 = vld [vmem:[#allocation7 + $0x158] sm:$0xff] }
 0x1b4   : > { %2425 = vmatprep.subr.bf16.mxu1 %v6885_v38  ;;  %v607_v27 = vld [vmem:[#allocation7 + $0x178] sm:$0xff] }
 0x1b5   : > { %v731_v38 = vld [vmem:[#allocation7 + $0x558] sm:$0xff]  ;;  %v6703_v39 = vcombine.high %v603_v22, %v607_v27  ;;  %v6702_v9 = vcombine.low %v603_v22, %v607_v27 }
 0x1b6   : > { %2373 = vmatpush2.bf16.msra.mxu0 %v6756_v41  ;;  %v6831_v41 = vcombine.high %v731_v38, %v735_v34  ;;  %v6830_v11 = vcombine.low %v731_v38, %v735_v34  ;;  %v675_v34 = vld [vmem:[#allocation7 + $0x398] sm:$0xff] }
 0x1b7   : > { %2426 = vmatpush2.bf16.msra.mxu1 %v6884_v42  ;;  %2374 = vmatprep.subr.bf16.mxu0 %v6749_v43  ;;  %v595_v42 = vld [vmem:[#allocation7 + $0x118] sm:$0xff] }
 0x1b8   : > { %2427 = vmatprep.subr.bf16.mxu1 %v6877_v44  ;;  %v599_v43 = vld [vmem:[#allocation7 + $0x138] sm:$0xff] }
 0x1b9   : > { %v723_v44 = vld [vmem:[#allocation7 + $0x518] sm:$0xff]  ;;  %v6695_v13 = vcombine.high %v595_v42, %v599_v43  ;;  %v6694_v50 = vcombine.low %v595_v42, %v599_v43 }
 0x1ba   : > { %2375 = vmatpush2.bf16.msra.mxu0 %v6748_v45  ;;  %v6823_v45 = vcombine.high %v723_v44, %v727_v7  ;;  %v6822_v51 = vcombine.low %v723_v44, %v727_v7  ;;  %v667_v7 = vld [vmem:[#allocation7 + $0x358] sm:$0xff] }
 0x1bb   : > { %2428 = vmatpush2.bf16.msra.mxu1 %v6876_v46  ;;  %2376 = vmatprep.subr.bf16.mxu0 %v6741_v47  ;;  %v587_v46 = vld [vmem:[#allocation7 + $0xd8] sm:$0xff] }
 0x1bc   : > { %2429 = vmatprep.subr.bf16.mxu1 %v6869_v48  ;;  %v591_v47 = vld [vmem:[#allocation7 + $0xf8] sm:$0xff] }
 0x1bd   : > { %v715_v48 = vld [vmem:[#allocation7 + $0x4d8] sm:$0xff]  ;;  %v6687_v52 = vcombine.high %v587_v46, %v591_v47  ;;  %v6686_v58 = vcombine.low %v587_v46, %v591_v47 }
 0x1be   : > { %2377 = vmatpush2.bf16.msra.mxu0 %v6740_v53  ;;  %v6815_v53 = vcombine.high %v715_v48, %v719_v49  ;;  %v6814_v59 = vcombine.low %v715_v48, %v719_v49  ;;  %v659_v49 = vld [vmem:[#allocation7 + $0x318] sm:$0xff] }
 0x1bf   : > { %2430 = vmatpush2.bf16.msra.mxu1 %v6868_v54  ;;  %2378 = vmatprep.subr.bf16.mxu0 %v6733_v55  ;;  %v579_v54 = vld [vmem:[#allocation7 + $0x98] sm:$0xff] }
 0x1c0   : > { %2431 = vmatprep.subr.bf16.mxu1 %v6861_v56  ;;  %v583_v55 = vld [vmem:[#allocation7 + $0xb8] sm:$0xff] }
 0x1c1   : > { %v707_v56 = vld [vmem:[#allocation7 + $0x498] sm:$0xff] }
 0x1c2   : > { %2379 = vmatpush2.bf16.msra.mxu0 %v6732_v61  ;;  %v575_v61 = vld [vmem:[#allocation7 + $0x78] sm:$0xff]  ;;  %v6806_v5 = vcombine.low %v707_v56, %v711_v57 }
 0x1c3   : > { %2432 = vmatpush2.bf16.msra.mxu1 %v6860_v0  ;;  %2380 = vmatprep.subr.bf16.mxu0 %v6725_v1  ;;  %v699_v0 = vld [vmem:[#allocation7 + $0x458] sm:$0xff]  ;;  %v6671_v6 = vcombine.high %v571_v60, %v575_v61 }
 0x1c4   : > { %2433 = vmatprep.subr.bf16.mxu1 %v6853_v4  ;;  %v703_v1 = vld [vmem:[#allocation7 + $0x478] sm:$0xff]  ;;  %v6678_v4 = vcombine.low %v579_v54, %v583_v55 }
 0x1c5   : > { %v6799_v10 = vcombine.high %v699_v0, %v703_v1  ;;  %v6798_v28 = vcombine.low %v699_v0, %v703_v1  ;;  %v643_v1 = vld [vmem:[#allocation7 + $0x298] sm:$0xff] }
 0x1c6   : > { %2381 = vmatpush2.bf16.msra.mxu0 %v6724_v15  ;;  %v567_v15 = vld [vmem:[#allocation7 + $0x38] sm:$0xff] }
 0x1c7   : > { %2434 = vmatpush2.bf16.msra.mxu1 %v6852_v19  ;;  %2456 = vmatprep.subr.bf16.mxu0 %v6719_v23  ;;  %v691_v19 = vld [vmem:[#allocation7 + $0x418] sm:$0xff]  ;;  %v6663_v29 = vcombine.high %v563_v14, %v567_v15 }
 0x1c8   : > { %2509 = vmatprep.subr.bf16.mxu1 %v6847_v24  ;;  %v695_v23 = vld [vmem:[#allocation7 + $0x438] sm:$0xff]  ;;  %v6670_v24 = vcombine.low %v571_v60, %v575_v61 }
 0x1c9   : > { %2383 = vmatmul.mubr.bf16.vlgmr.msra.gmra.mxu0 %v8873_v2  ;;  %v6791_v30 = vcombine.high %v691_v19, %v695_v23  ;;  %v6790_v22 = vcombine.low %v691_v19, %v695_v23  ;;  %v635_v23 = vld [vmem:[#allocation7 + $0x258] sm:$0xff] }
 0x1ca   : > { %2436 = vmatmul.mubr.bf16.vlgmr.msra.gmra.mxu1 %v8875_v3  ;;  %2392 = vmatprep.mubr.bf16.mxu0 %v8897_v8 }
 0x1cb   : > { %2445 = vmatprep.mubr.bf16.mxu1 %v8899_v12  ;;  %2457 = vmatpush1.bf16.msra.mxu0 %v6718_v32  ;;  %v687_v32 = vld [vmem:[#allocation7 + $0x3f8] sm:$0xff] }
 0x1cc   : > { %2510 = vmatpush1.bf16.msra.mxu1 %v6846_v33  ;;  %2458 = vmatprep.subr.bf16.mxu0 %v6711_v36  ;;  %v811_v33 = vld [vmem:[#allocation7 + $0x7d8] sm:$0xff]  ;;  %v6783_v27 = vcombine.high %v683_v31, %v687_v32 }
 0x1cd   : > { %2511 = vmatprep.subr.bf16.mxu1 %v6839_v37  ;;  %v815_v36 = vld [vmem:[#allocation7 + $0x7f8] sm:$0xff]  ;;  %v6662_v37 = vcombine.low %v563_v14, %v567_v15 }
 0x1ce   : > { %v6911_v38 = vcombine.high %v811_v33, %v815_v36  ;;  %v6910_v42 = vcombine.low %v811_v33, %v815_v36  ;;  %v627_v36 = vld [vmem:[#allocation7 + $0x218] sm:$0xff] }
 0x1cf   : > { %2459 = vmatpush1.bf16.msra.mxu0 %v6710_v35  ;;  %v679_v35 = vld [vmem:[#allocation7 + $0x3b8] sm:$0xff] }
 0x1d0   : > { %2512 = vmatpush1.bf16.msra.mxu1 %v6838_v40  ;;  %2460 = vmatprep.subr.bf16.mxu0 %v6703_v39  ;;  %v803_v40 = vld [vmem:[#allocation7 + $0x798] sm:$0xff]  ;;  %v6775_v43 = vcombine.high %v675_v34, %v679_v35 }
 0x1d1   : > { %2513 = vmatprep.subr.bf16.mxu1 %v6831_v41  ;;  %2393 = vmatmul.mubr.bf16.gmra.mxu0 %v8893_v25  ;;  %v807_v39 = vld [vmem:[#allocation7 + $0x7b8] sm:$0xff]  ;;  %v6782_v41 = vcombine.low %v683_v31, %v687_v32 }
 0x1d2   : > { %2446 = vmatmul.mubr.bf16.gmra.mxu1 %v8895_v26  ;;  %2488 = vmatprep.mubr.bf16.mxu0 %v8867_v62  ;;  %v6679_v62 = vcombine.high %v579_v54, %v583_v55  ;;  %v6903_v44 = vcombine.high %v803_v40, %v807_v39  ;;  %v6902_v46 = vcombine.low %v803_v40, %v807_v39 }
 0x1d3   : > { %2541 = vmatprep.mubr.bf16.mxu1 %v8869_v63  ;;  %2461 = vmatpush1.bf16.msra.mxu0 %v6702_v9  ;;  %v6807_v63 = vcombine.high %v707_v56, %v711_v57  ;;  %v671_v9 = vld [vmem:[#allocation7 + $0x378] sm:$0xff] }
 0x1d4   : > { %2514 = vmatpush1.bf16.msra.mxu1 %v6830_v11  ;;  %2462 = vmatprep.subr.bf16.mxu0 %v6695_v13  ;;  %v795_v11 = vld [vmem:[#allocation7 + $0x758] sm:$0xff]  ;;  %v6767_v47 = vcombine.high %v667_v7, %v671_v9 }
 0x1d5   : > { %2515 = vmatprep.subr.bf16.mxu1 %v6823_v45  ;;  %v799_v13 = vld [vmem:[#allocation7 + $0x778] sm:$0xff]  ;;  %v6774_v45 = vcombine.low %v675_v34, %v679_v35 }
 0x1d6   : > { %v6895_v48 = vcombine.high %v795_v11, %v799_v13  ;;  %v6894_v54 = vcombine.low %v795_v11, %v799_v13  ;;  %v651_v57 = vld [vmem:[#allocation7 + $0x2d8] sm:$0xff] }
 0x1d7   : > { %2463 = vmatpush1.bf16.msra.mxu0 %v6694_v50  ;;  %v663_v50 = vld [vmem:[#allocation7 + $0x338] sm:$0xff] }
 0x1d8   : > { %2516 = vmatpush1.bf16.msra.mxu1 %v6822_v51  ;;  %2464 = vmatprep.subr.bf16.mxu0 %v6687_v52  ;;  %v787_v51 = vld [vmem:[#allocation7 + $0x718] sm:$0xff]  ;;  %v6759_v55 = vcombine.high %v659_v49, %v663_v50 }
 0x1d9   : > { %2517 = vmatprep.subr.bf16.mxu1 %v6815_v53  ;;  %v791_v52 = vld [vmem:[#allocation7 + $0x738] sm:$0xff]  ;;  %v6766_v53 = vcombine.low %v667_v7, %v671_v9  ;;  %v7624_v9 = vld [vmem:[#allocation10 + $0x188] ss:$28 sps:$4 sm:$0xff]  }
 0x1da   : > { %v6887_v56 = vcombine.high %v787_v51, %v791_v52  ;;  %v6886_v60 = vcombine.low %v787_v51, %v791_v52  ;;  %v7627_v51 = vld [vmem:[#allocation10 + $0x150] ss:$28 sps:$4 sm:$0xff]  }
 0x1db   : > { %2465 = vmatpush1.bf16.msra.mxu0 %v6686_v58  ;;  %v655_v58 = vld [vmem:[#allocation7 + $0x2f8] sm:$0xff] }
 0x1dc   : > { %2518 = vmatpush1.bf16.msra.mxu1 %v6814_v59  ;;  %2466 = vmatprep.subr.bf16.mxu0 %v6679_v62  ;;  %v779_v59 = vld [vmem:[#allocation7 + $0x6d8] sm:$0xff]  ;;  %v6751_v61 = vcombine.high %v651_v57, %v655_v58 }
 0x1dd   : > { %2519 = vmatprep.subr.bf16.mxu1 %v6807_v63  ;;  %v783_v62 = vld [vmem:[#allocation7 + $0x6f8] sm:$0xff]  ;;  %v6758_v63 = vcombine.low %v659_v49, %v663_v50 }
 0x1de   : > { %v6879_v0 = vcombine.high %v779_v59, %v783_v62  ;;  %v6878_v14 = vcombine.low %v779_v59, %v783_v62  ;;  %v7635_v62 = vld [vmem:[#allocation10 + $0xe4] ss:$28 sps:$4 sm:$0xff]  }
 0x1df   : > { %2467 = vmatpush1.bf16.msra.mxu0 %v6678_v4  ;;  %v647_v4 = vld [vmem:[#allocation7 + $0x2b8] sm:$0xff] }
 0x1e0   : > { %2520 = vmatpush1.bf16.msra.mxu1 %v6806_v5  ;;  %2468 = vmatprep.subr.bf16.mxu0 %v6671_v6  ;;  %v771_v5 = vld [vmem:[#allocation7 + $0x698] sm:$0xff]  ;;  %v6743_v15 = vcombine.high %v643_v1, %v647_v4 }
 0x1e1   : > { %2521 = vmatprep.subr.bf16.mxu1 %v6799_v10  ;;  %v775_v6 = vld [vmem:[#allocation7 + $0x6b8] sm:$0xff]  ;;  %v6750_v10 = vcombine.low %v651_v57, %v655_v58 }
 0x1e2   : > { %v6871_v19 = vcombine.high %v771_v5, %v775_v6  ;;  %v6870_v31 = vcombine.low %v771_v5, %v775_v6  ;;  %v7630_v57 = vld [vmem:[#allocation10 + $0x118] ss:$28 sps:$4 sm:$0xff]   ;;  %v7638_v5 = vld [vmem:[#allocation10 + $0xac] ss:$28 sps:$4 sm:$0xff]  }
 0x1e3   : > { %2469 = vmatpush1.bf16.msra.mxu0 %v6670_v24  ;;  %v639_v24 = vld [vmem:[#allocation7 + $0x278] sm:$0xff]  ;;  %v7665_v6 = vld [vmem:[#allocation10 + $0x42c] ss:$28 sps:$4 sm:$0xff]  }
 0x1e4   : > { %2522 = vmatpush1.bf16.msra.mxu1 %v6798_v28  ;;  %2470 = vmatprep.subr.bf16.mxu0 %v6663_v29  ;;  %v763_v28 = vld [vmem:[#allocation7 + $0x658] sm:$0xff]  ;;  %v6735_v32 = vcombine.high %v635_v23, %v639_v24 }
 0x1e5   : > { %2523 = vmatprep.subr.bf16.mxu1 %v6791_v30  ;;  %v767_v29 = vld [vmem:[#allocation7 + $0x678] sm:$0xff]  ;;  %v6742_v30 = vcombine.low %v643_v1, %v647_v4  ;;  %v7657_v1 = vld [vmem:[#allocation10 + $0x460] ss:$28 sps:$4 sm:$0xff]  }
 0x1e6   : > { %v6863_v33 = vcombine.high %v763_v28, %v767_v29  ;;  %v6862_v34 = vcombine.low %v763_v28, %v767_v29  ;;  %v7651_v58 = vld [vmem:[#allocation10 + $0x498] ss:$28 sps:$4 sm:$0xff]  }
 0x1e7   : > { %2471 = vmatpush1.bf16.msra.mxu0 %v6662_v37  ;;  %v631_v37 = vld [vmem:[#allocation7 + $0x238] sm:$0xff] }
 0x1e8   : > { %2524 = vmatpush1.bf16.msra.mxu1 %v6790_v22  ;;  %2472 = vmatprep.subr.bf16.mxu0 %v6783_v27  ;;  %v755_v22 = vld [vmem:[#allocation7 + $0x618] sm:$0xff]  ;;  %v6727_v35 = vcombine.high %v627_v36, %v631_v37  ;;  %v6726_v39 = vcombine.low %v627_v36, %v631_v37  ;;  %v7662_v36 = vld [vmem:[#allocation10 + $0x34c] ss:$28 sps:$4 sm:$0xff]  }
 0x1e9   : > { %2525 = vmatprep.subr.bf16.mxu1 %v6911_v38  ;;  %v759_v27 = vld [vmem:[#allocation7 + $0x638] sm:$0xff]  ;;  %v6734_v38 = vcombine.low %v635_v23, %v639_v24  ;;  %v7650_v23 = vld [vmem:[#allocation10 + $0x3c] ss:$28 sps:$4 sm:$0xff]   ;;  %v7689_v37 = vld [vmem:[#allocation10 + $0x6cc] ss:$28 sps:$4 sm:$0xff]  }
 0x1ea   : > { %v6855_v40 = vcombine.high %v755_v22, %v759_v27  ;;  %v7677_v24 = vld [vmem:[#allocation10 + $0x3bc] ss:$28 sps:$4 sm:$0xff]  }
 0x1eb   : > { %2473 = vmatpush2.bf16.msra.mxu0 %v6782_v41  ;;  %v6854_v41 = vcombine.low %v755_v22, %v759_v27  ;;  %v7648_v28 = vld [vmem:[#allocation10 + $0x38] ss:$28 sps:$4 sm:$0xff]   ;;  %v7660_v22 = vld [vmem:[#allocation10 + $0x348] ss:$28 sps:$4 sm:$0xff]  }
 0x1ec   : > { %2526 = vmatpush2.bf16.msra.mxu1 %v6910_v42  ;;  %2474 = vmatprep.subr.bf16.mxu0 %v6775_v43  ;;  %v7626_v42 = vld [vmem:[#allocation10 + $0x18c] ss:$28 sps:$4 sm:$0xff]   ;;  %v7675_v29 = vld [vmem:[#allocation10 + $0x3b8] ss:$28 sps:$4 sm:$0xff]  }
 0x1ed   : > { %2527 = vmatprep.subr.bf16.mxu1 %v6903_v44  ;;  %v7641_v43 = vld [vmem:[#allocation10 + $0x50c] ss:$28 sps:$4 sm:$0xff]   ;;  %v8923_v44 = vld [vmem:[#allocation8] sm:$0xff] }
 0x1ee   : > { %v8927_v7 = vrot.slane %v8923_v44, %v8835_v18  ;;  %v7687_v27 = vld [vmem:[#allocation10 + $0x6c8] ss:$28 sps:$4 sm:$0xff]  }
 0x1ef   : > { %2475 = vmatpush2.bf16.msra.mxu0 %v6774_v45  ;;  %v7639_v45 = vld [vmem:[#allocation10 + $0x508] ss:$28 sps:$4 sm:$0xff]  }
 0x1f0   : > { %2528 = vmatpush2.bf16.msra.mxu1 %v6902_v46  ;;  %2476 = vmatprep.subr.bf16.mxu0 %v6767_v47  ;;  %v7629_v46 = vld [vmem:[#allocation10 + $0x154] ss:$28 sps:$4 sm:$0xff]  }
 0x1f1   : > { %2529 = vmatprep.subr.bf16.mxu1 %v6895_v48  ;;  %v7647_v47 = vld [vmem:[#allocation10 + $0x4d4] ss:$28 sps:$4 sm:$0xff]  }
 0x1f3   : > { %2477 = vmatpush2.bf16.msra.mxu0 %v6766_v53 }
 0x1f4   : > { %2530 = vmatpush2.bf16.msra.mxu1 %v6894_v54  ;;  %2478 = vmatprep.subr.bf16.mxu0 %v6759_v55  ;;  %v7645_v54 = vld [vmem:[#allocation10 + $0x4d0] ss:$28 sps:$4 sm:$0xff]  }
 0x1f5   : > { %2531 = vmatprep.subr.bf16.mxu1 %v6887_v56 }
 0x1f7   : > { %2479 = vmatpush2.bf16.msra.mxu0 %v6758_v63  ;;  %v7659_v63 = vld [vmem:[#allocation10 + $0x464] ss:$28 sps:$4 sm:$0xff]  }
 0x1f8   : > { %2532 = vmatpush2.bf16.msra.mxu1 %v6886_v60  ;;  %2480 = vmatprep.subr.bf16.mxu0 %v6751_v61 }
 0x1f9   : > { %2533 = vmatprep.subr.bf16.mxu1 %v6879_v0  ;;  %v7633_v0 = vld [vmem:[#allocation10 + $0xe0] ss:$28 sps:$4 sm:$0xff]  }
 0x1fb   : > { %2481 = vmatpush2.bf16.msra.mxu0 %v6750_v10  ;;  %v7636_v10 = vld [vmem:[#allocation10 + $0xa8] ss:$28 sps:$4 sm:$0xff]  }
 0x1fc   : > { %2534 = vmatpush2.bf16.msra.mxu1 %v6878_v14  ;;  %2482 = vmatprep.subr.bf16.mxu0 %v6743_v15  ;;  %v7671_v14 = vld [vmem:[#allocation10 + $0x3f4] ss:$28 sps:$4 sm:$0xff]  }
 0x1fd   : > { %2535 = vmatprep.subr.bf16.mxu1 %v6871_v19  ;;  %v7642_v15 = vld [vmem:[#allocation10 + $0x70] ss:$28 sps:$4 sm:$0xff]  }
 0x1fe   : > { %v7669_v19 = vld [vmem:[#allocation10 + $0x3f0] ss:$28 sps:$4 sm:$0xff]  }
 0x1ff   : > { %2483 = vmatpush2.bf16.msra.mxu0 %v6742_v30  ;;  %v7656_v30 = vld [vmem:[#allocation10 + $0x4] ss:$28 sps:$4 sm:$0xff]  }
 0x200   : > { %2536 = vmatpush2.bf16.msra.mxu1 %v6870_v31  ;;  %2484 = vmatprep.subr.bf16.mxu0 %v6735_v32  ;;  %v7683_v31 = vld [vmem:[#allocation10 + $0x384] ss:$28 sps:$4 sm:$0xff]  }
 0x201   : > { %2537 = vmatprep.subr.bf16.mxu1 %v6863_v33  ;;  %v7654_v32 = vld [vmem:[#allocation10] ss:$28 sps:$4 sm:$0xff]  }
 0x202   : > { %v7681_v33 = vld [vmem:[#allocation10 + $0x380] ss:$28 sps:$4 sm:$0xff]  }
 0x203   : > { %2485 = vmatpush2.bf16.msra.mxu0 %v6734_v38  ;;  %v7668_v38 = vld [vmem:[#allocation10 + $0x314] ss:$28 sps:$4 sm:$0xff]  }
 0x204   : > { %2538 = vmatpush2.bf16.msra.mxu1 %v6862_v34  ;;  %2486 = vmatprep.subr.bf16.mxu0 %v6727_v35  ;;  %v7695_v34 = vld [vmem:[#allocation10 + $0x694] ss:$28 sps:$4 sm:$0xff]  }
 0x205   : > { %2539 = vmatprep.subr.bf16.mxu1 %v6855_v40  ;;  %v7666_v35 = vld [vmem:[#allocation10 + $0x310] ss:$28 sps:$4 sm:$0xff]  }
 0x206   : > { %v7693_v40 = vld [vmem:[#allocation10 + $0x690] ss:$28 sps:$4 sm:$0xff]  }
 0x207   : > { %2487 = vmatpush2.bf16.msra.mxu0 %v6726_v39  ;;  %v7674_v39 = vld [vmem:[#allocation10 + $0x2dc] ss:$28 sps:$4 sm:$0xff]  }
 0x208   : > { %2540 = vmatpush2.bf16.msra.mxu1 %v6854_v41  ;;  %5463 = vmatprep.subr.bf16.mxu0 %v7626_v42  ;;  %v8929_v11 = vpop.f32.mrf.mxu0  ;;  %v8931_v13 = vpop.f32.mrf.mxu1  ;;  %v7701_v41 = vld [vmem:[#allocation10 + $0x65c] ss:$28 sps:$4 sm:$0xff]  }
 0x209   : > { %5516 = vmatprep.subr.bf16.mxu1 %v7641_v43  ;;  %v7672_v43 = vld [vmem:[#allocation10 + $0x2d8] ss:$28 sps:$4 sm:$0xff]  }
 0x20a   : > { %2489 = vmatmul.mubr.bf16.vlgmr.msra.gmra.mxu0 %v8873_v2  ;;  %v2174_v48 = vpop.f32.mrf.mxu0  ;;  %v2227_v49 = vpop.f32.mrf.mxu1  ;;  %v7632_v2 = vld [vmem:[#allocation10 + $0x11c] ss:$28 sps:$4 sm:$0xff]  }
 0x20b   : > { %2542 = vmatmul.mubr.bf16.vlgmr.msra.gmra.mxu1 %v8875_v3  ;;  %2498 = vmatprep.mubr.bf16.mxu0 %v8897_v8  ;;  %v2175_v50 = vadd.f32 %v2174_v48, %v8927_v7  ;;  %v7653_v3 = vld [vmem:[#allocation10 + $0x49c] ss:$28 sps:$4 sm:$0xff]  }
 0x20c   : > { %2551 = vmatprep.mubr.bf16.mxu1 %v8899_v12  ;;  %5464 = vmatpush1.bf16.msra.mxu0 %v7624_v9  ;;  %v8938_v52 = vpop.f32.mrf.mxu0  ;;  %v8940_v53 = vpop.f32.mrf.mxu1  ;;  %v7699_v9 = vld [vmem:[#allocation10 + $0x658] ss:$28 sps:$4 sm:$0xff]  }
 0x20d   : > { %5517 = vmatpush1.bf16.msra.mxu1 %v7639_v45  ;;  %5465 = vmatprep.subr.bf16.mxu0 %v7629_v46  ;;  %v2228_v56 = vadd.f32 %v2227_v49, %v2175_v50  ;;  %v7680_v45 = vld [vmem:[#allocation10 + $0x2a4] ss:$28 sps:$4 sm:$0xff]  }
 0x20e   : > { %5518 = vmatprep.subr.bf16.mxu1 %v7647_v47  ;;  %v2178_v55 = vpop.f32.mrf.mxu0  ;;  %v2231_v12 = vpop.f32.mrf.mxu1  ;;  %v7707_v46 = vld [vmem:[#allocation10 + $0x624] ss:$28 sps:$4 sm:$0xff]  }
 0x20f   : > { %v2179_v8 = vadd.f32 %v2178_v55, %v8927_v7  ;;  %v2563_v60 = vmax.f32 %v2228_v56, 0.0  ;;  %v7678_v49 = vld [vmem:[#allocation10 + $0x2a0] ss:$28 sps:$4 sm:$0xff]   ;;  %v7684_v55 = vld [vmem:[#allocation10 + $0x268] ss:$28 sps:$4 sm:$0xff]  }
 0x210   : > { %5466 = vmatpush1.bf16.msra.mxu0 %v7627_v51  ;;  %v2182_v42 = vpop.f32.mrf.mxu0  ;;  %v7705_v50 = vld [vmem:[#allocation10 + $0x620] ss:$28 sps:$4 sm:$0xff]   ;;  %v7686_v51 = vld [vmem:[#allocation10 + $0x26c] ss:$28 sps:$4 sm:$0xff]  }
 0x211   : > { %5519 = vmatpush1.bf16.msra.mxu1 %v7645_v54  ;;  %v2232_v59 = vadd.f32 %v2231_v12, %v2179_v8  ;;  %5467 = vmatprep.subr.bf16.mxu0 %v7632_v2  ;;  %v8948_v48 = vpop.f32.mrf.mxu1  ;;  %v7710_v54 = vld [vmem:[#allocation10 + $0x5ec] ss:$28 sps:$4 sm:$0xff]   ;;  %v7692_v8 = vld [vmem:[#allocation10 + $0x234] ss:$28 sps:$4 sm:$0xff]  }
 0x212   : > { %5520 = vmatprep.subr.bf16.mxu1 %v7653_v3  ;;  %2499 = vmatmul.mubr.bf16.gmra.mxu0 %v8893_v25  ;;  %v7663_v25 = vld [vmem:[#allocation10 + $0x428] ss:$28 sps:$4 sm:$0xff]   ;;  %v2184_v47 = vpop.f32.mrf.mxu0  ;;  %v7713_v12 = vld [vmem:[#allocation10 + $0x5b4] ss:$28 sps:$4 sm:$0xff]  }
 0x213   : > { %2552 = vmatmul.mubr.bf16.gmra.mxu1 %v8895_v26  ;;  %v2571_v61 = vmax.f32 %v2232_v59, 0.0  ;;  %v7644_v26 = vld [vmem:[#allocation10 + $0x74] ss:$28 sps:$4 sm:$0xff]   ;;  %v2237_v3 = vpop.f32.mrf.mxu1  ;;  %v7708_v56 = vld [vmem:[#allocation10 + $0x5e8] ss:$28 sps:$4 sm:$0xff]  }
 0x214   : > { %5468 = vmatpush1.bf16.msra.mxu0 %v7630_v57  ;;  %v2186_v2 = vpop.f32.mrf.mxu0  ;;  %v821_v57 = vrot.slane %v8923_v44, %v8832_v17 }
 0x215   : > { %5521 = vmatpush1.bf16.msra.mxu1 %v7651_v58  ;;  %v8945_v4 = vpack.c.bf16 %v2571_v61, %v2563_v60  ;;  %5469 = vmatprep.subr.bf16.mxu0 %v7635_v62  ;;  %v2239_v59 = vpop.f32.mrf.mxu1  ;;  %v7690_v62 = vld [vmem:[#allocation10 + $0x230] ss:$28 sps:$4 sm:$0xff]   ;;  %v7698_v61 = vld [vmem:[#allocation10 + $0x1fc] ss:$28 sps:$4 sm:$0xff]  }
 0x216   : > { %5522 = vmatprep.subr.bf16.mxu1 %v7659_v63  ;;  %v2188_v58 = vpop.f32.mrf.mxu0  ;;  %v7711_v63 = vld [vmem:[#allocation10 + $0x5b0] ss:$28 sps:$4 sm:$0xff]   ;;  %v2177_v60 = vadd.f32 %v8938_v52, %v821_v57  ;;  %v7719_v52 = vld [vmem:[#allocation10 + $0x544] ss:$28 sps:$4 sm:$0xff]  }
 0x217   : > { %5495 = vmatprep.mubr.bf16.mxu0 %v8945_v4 }
 0x218   : > { %5470 = vmatpush1.bf16.msra.mxu0 %v7633_v0  ;;  %v7716_v0 = vld [vmem:[#allocation10 + $0x57c] ss:$28 sps:$4 sm:$0xff]  }
 0x219   : > { %5523 = vmatpush1.bf16.msra.mxu1 %v7657_v1  ;;  %5471 = vmatprep.subr.bf16.mxu0 %v7638_v5  ;;  %v2185_v1 = vadd.f32 %v2184_v47, %v8927_v7  ;;  %v2189_v5 = vadd.f32 %v2188_v58, %v8927_v7  ;;  %v7717_v7 = vld [vmem:[#allocation10 + $0x540] ss:$28 sps:$4 sm:$0xff]  }
 0x21a   : > { %5524 = vmatprep.subr.bf16.mxu1 %v7665_v6  ;;  %v2173_v6 = vadd.f32 %v8929_v11, %v821_v57 }
 0x21c   : > { %5472 = vmatpush1.bf16.msra.mxu0 %v7636_v10  ;;  %v2241_v10 = vpop.f32.mrf.mxu1 }
 0x21d   : > { %5525 = vmatpush1.bf16.msra.mxu1 %v7663_v25  ;;  %5473 = vmatprep.subr.bf16.mxu0 %v7644_v26  ;;  %v7696_v25 = vld [vmem:[#allocation10 + $0x1f8] ss:$28 sps:$4 sm:$0xff]  }
 0x21e   : > { %5526 = vmatprep.subr.bf16.mxu1 %v7671_v14  ;;  %v7714_v26 = vld [vmem:[#allocation10 + $0x578] ss:$28 sps:$4 sm:$0xff]   ;;  %v2230_v14 = vadd.f32 %v8940_v53, %v2177_v60  ;;  %v7731_v60 = vld [vmem:[#allocation10 + $0x7e4] ss:$28 sps:$4 sm:$0xff]  }
 0x220   : > { %5474 = vmatpush1.bf16.msra.mxu0 %v7642_v15  ;;  %v7704_v15 = vld [vmem:[#allocation10 + $0x1c4] ss:$28 sps:$4 sm:$0xff]   ;;  %v2570_v11 = vmax.f32 %v2230_v14, 0.0 }
 0x221   : > { %5527 = vmatpush1.bf16.msra.mxu1 %v7669_v19  ;;  %5475 = vmatprep.subr.bf16.mxu0 %v7650_v23  ;;  %v2238_v19 = vadd.f32 %v2237_v3, %v2185_v1  ;;  %v2242_v23 = vadd.f32 %v2241_v10, %v2189_v5 }
 0x222   : > { %5528 = vmatprep.subr.bf16.mxu1 %v7677_v24  ;;  %v2226_v24 = vadd.f32 %v8931_v13, %v2173_v6  ;;  %v829_v13 = vrot.slane %v8923_v44, %v8838_v20 }
 0x223   : > { %v2579_v53 = vmax.f32 %v2238_v19, 0.0 }
 0x224   : > { %5476 = vmatpush1.bf16.msra.mxu0 %v7648_v28  ;;  %v7702_v28 = vld [vmem:[#allocation10 + $0x1c0] ss:$28 sps:$4 sm:$0xff]  }
 0x225   : > { %5529 = vmatpush1.bf16.msra.mxu1 %v7675_v29  ;;  %5477 = vmatprep.subr.bf16.mxu0 %v7656_v30  ;;  %v2183_v29 = vadd.f32 %v2182_v42, %v821_v57  ;;  %v2187_v30 = vadd.f32 %v2186_v2, %v821_v57 }
 0x226   : > { %5530 = vmatprep.subr.bf16.mxu1 %v7683_v31  ;;  %v7722_v31 = vld [vmem:[#allocation10 + $0x88c] ss:$28 sps:$4 sm:$0xff]  }
 0x228   : > { %5478 = vmatpush1.bf16.msra.mxu0 %v7654_v32  ;;  %v7770_v32 = vld [vmem:[#allocation10 + $0xc0c] ss:$28 sps:$4 sm:$0xff]  }
 0x229   : > { %5531 = vmatpush1.bf16.msra.mxu1 %v7681_v33  ;;  %5479 = vmatprep.subr.bf16.mxu0 %v7662_v36  ;;  %v2587_v33 = vmax.f32 %v2242_v23, 0.0  ;;  %v2562_v36 = vmax.f32 %v2226_v24, 0.0  ;;  %v7734_v24 = vld [vmem:[#allocation10 + $0x7ac] ss:$28 sps:$4 sm:$0xff]  }
 0x22a   : > { %5532 = vmatprep.subr.bf16.mxu1 %v7689_v37  ;;  %v8960_v37 = vrot.slane %v8923_v44, %v8841_v21 }
 0x22c   : > { %5480 = vmatpush2.bf16.msra.mxu0 %v7660_v22 }
 0x22d   : > { %5533 = vmatpush2.bf16.msra.mxu1 %v7687_v27  ;;  %5481 = vmatprep.subr.bf16.mxu0 %v7668_v38  ;;  %v7720_v38 = vld [vmem:[#allocation10 + $0x888] ss:$28 sps:$4 sm:$0xff]  }
 0x22e   : > { %5534 = vmatprep.subr.bf16.mxu1 %v7695_v34  ;;  %v8964_v34 = vpack.c.bf16 %v2570_v11, %v2562_v36  ;;  %v7732_v36 = vld [vmem:[#allocation10 + $0x7a8] ss:$28 sps:$4 sm:$0xff]  }
 0x230   : > { %5482 = vmatpush2.bf16.msra.mxu0 %v7666_v35  ;;  %v2236_v35 = vadd.f32 %v8948_v48, %v2183_v29  ;;  %v7776_v29 = vld [vmem:[#allocation10 + $0xbd4] ss:$28 sps:$4 sm:$0xff]  }
 0x231   : > { %5535 = vmatpush2.bf16.msra.mxu1 %v7693_v40  ;;  %5483 = vmatprep.subr.bf16.mxu0 %v7674_v39  ;;  %v2240_v40 = vadd.f32 %v2239_v59, %v2187_v30  ;;  %v7725_v39 = vld [vmem:[#allocation10 + $0x854] ss:$28 sps:$4 sm:$0xff]  }
 0x232   : > { %5536 = vmatprep.subr.bf16.mxu1 %v7701_v41  ;;  %v8967_v41 = vpack.c.bf16 %v2587_v33, %v2579_v53  ;;  %v2578_v48 = vmax.f32 %v2236_v35, 0.0  ;;  %v7726_v59 = vld [vmem:[#allocation10 + $0x818] ss:$28 sps:$4 sm:$0xff]  }
 0x233   : > { %v7782_v35 = vld [vmem:[#allocation10 + $0xb9c] ss:$28 sps:$4 sm:$0xff]  }
 0x234   : > { %5484 = vmatpush2.bf16.msra.mxu0 %v7672_v43 }
 0x235   : > { %5537 = vmatpush2.bf16.msra.mxu1 %v7699_v9  ;;  %5485 = vmatprep.subr.bf16.mxu0 %v7680_v45 }
 0x236   : > { %5538 = vmatprep.subr.bf16.mxu1 %v7707_v46 }
 0x238   : > { %5486 = vmatpush2.bf16.msra.mxu0 %v7678_v49  ;;  %v7723_v49 = vld [vmem:[#allocation10 + $0x850] ss:$28 sps:$4 sm:$0xff]  }
 0x239   : > { %5539 = vmatpush2.bf16.msra.mxu1 %v7705_v50  ;;  %5487 = vmatprep.subr.bf16.mxu0 %v7686_v51  ;;  %v2586_v50 = vmax.f32 %v2240_v40, 0.0 }
 0x23a   : > { %5540 = vmatprep.subr.bf16.mxu1 %v7710_v54  ;;  %v7728_v54 = vld [vmem:[#allocation10 + $0x81c] ss:$28 sps:$4 sm:$0xff]  }
 0x23c   : > { %5488 = vmatpush2.bf16.msra.mxu0 %v7684_v55 }
 0x23d   : > { %5541 = vmatpush2.bf16.msra.mxu1 %v7708_v56  ;;  %5489 = vmatprep.subr.bf16.mxu0 %v7692_v8 }
 0x23e   : > { %5542 = vmatprep.subr.bf16.mxu1 %v7713_v12 }
 0x240   : > { %5490 = vmatpush2.bf16.msra.mxu0 %v7690_v62  ;;  %v8973_v62 = vpack.c.bf16 %v2586_v50, %v2578_v48  ;;  %v7743_v48 = vld [vmem:[#allocation10 + $0x704] ss:$28 sps:$4 sm:$0xff]  }
 0x241   : > { %5543 = vmatpush2.bf16.msra.mxu1 %v7711_v63  ;;  %5491 = vmatprep.subr.bf16.mxu0 %v7698_v61  ;;  %v7786_v50 = vld [vmem:[#allocation10 + $0xb60] ss:$28 sps:$4 sm:$0xff]  }
 0x242   : > { %5544 = vmatprep.subr.bf16.mxu1 %v7716_v0 }
 0x244   : > { %5492 = vmatpush2.bf16.msra.mxu0 %v7696_v25 }
 0x245   : > { %5545 = vmatpush2.bf16.msra.mxu1 %v7714_v26  ;;  %5493 = vmatprep.subr.bf16.mxu0 %v7704_v15 }
 0x246   : > { %5546 = vmatprep.subr.bf16.mxu1 %v7719_v52  ;;  %v7729_v52 = vld [vmem:[#allocation10 + $0x7e0] ss:$28 sps:$4 sm:$0xff]  }
 0x248   : > { %5494 = vmatpush2.bf16.msra.mxu0 %v7702_v28  ;;  %v2278_v22 = vpop.f32.mrf.mxu0  ;;  %v7768_v28 = vld [vmem:[#allocation10 + $0xc08] ss:$28 sps:$4 sm:$0xff]  }
 0x249   : > { %v2331_v27 = vpop.f32.mrf.mxu1  ;;  %5547 = vmatpush2.bf16.msra.mxu1 %v7717_v7  ;;  %5569 = vmatprep.subr.bf16.mxu0 %v7722_v31  ;;  %v2279_v45 = vadd.f32 %v2278_v22, %v829_v13  ;;  %v7737_v22 = vld [vmem:[#allocation10 + $0x774] ss:$28 sps:$4 sm:$0xff]  }
 0x24a   : > { %5622 = vmatprep.subr.bf16.mxu1 %v7770_v32  ;;  %v2280_v42 = vpop.f32.mrf.mxu0 }
 0x24b   : > { %v2333_v43 = vpop.f32.mrf.mxu1  ;;  %5496 = vmatmul.mubr.bf16.vlgmr.msra.gmra.mxu0 %v8964_v34  ;;  %v2281_v9 = vadd.f32 %v2280_v42, %v8960_v37  ;;  %v2332_v12 = vadd.f32 %v2331_v27, %v2279_v45  ;;  %v7774_v27 = vld [vmem:[#allocation10 + $0xbd0] ss:$28 sps:$4 sm:$0xff]   ;;  %v7780_v45 = vld [vmem:[#allocation10 + $0xb98] ss:$28 sps:$4 sm:$0xff]  }
 0x24c   : > { %5505 = vmatprep.mubr.bf16.mxu0 %v8967_v41  ;;  %v2282_v46 = vpop.f32.mrf.mxu0  ;;  %5570 = vmatpush1.bf16.msra.mxu0 %v7720_v38 }
 0x24d   : > { %v2335_v47 = vpop.f32.mrf.mxu1  ;;  %v2283_v51 = vadd.f32 %v2282_v46, %v829_v13  ;;  %5571 = vmatprep.subr.bf16.mxu0 %v7725_v39  ;;  %v2334_v55 = vadd.f32 %v2333_v43, %v2281_v9  ;;  %v2564_v25 = vmax.f32 %v2332_v12, 0.0  ;;  %v7740_v9 = vld [vmem:[#allocation10 + $0x73c] ss:$28 sps:$4 sm:$0xff]   ;;  %v7798_v12 = vld [vmem:[#allocation10 + $0xaf0] ss:$28 sps:$4 sm:$0xff]  }
 0x24e   : > { %v2284_v2 = vpop.f32.mrf.mxu0 }
 0x24f   : > { %v2337_v3 = vpop.f32.mrf.mxu1  ;;  %v2336_v56 = vadd.f32 %v2335_v47, %v2283_v51  ;;  %v2285_v8 = vadd.f32 %v2284_v2, %v8960_v37  ;;  %v2565_v5 = vmax.f32 %v2334_v55, 0.0  ;;  %v7788_v47 = vld [vmem:[#allocation10 + $0xb64] ss:$28 sps:$4 sm:$0xff]   ;;  %v7794_v51 = vld [vmem:[#allocation10 + $0xb2c] ss:$28 sps:$4 sm:$0xff]  }
 0x250   : > { %v2288_v57 = vpop.f32.mrf.mxu0  ;;  %5572 = vmatpush1.bf16.msra.mxu0 %v7723_v49  ;;  %v7738_v49 = vld [vmem:[#allocation10 + $0x738] ss:$28 sps:$4 sm:$0xff]   ;;  %v7746_v2 = vld [vmem:[#allocation10 + $0xa4c] ss:$28 sps:$4 sm:$0xff]  }
 0x251   : > { %v2341_v58 = vpop.f32.mrf.mxu1  ;;  %v2338_v63 = vadd.f32 %v2337_v3, %v2285_v8  ;;  %5573 = vmatprep.subr.bf16.mxu0 %v7728_v54  ;;  %v2572_v61 = vmax.f32 %v2336_v56, 0.0  ;;  %v2289_v26 = vadd.f32 %v2288_v57, %v829_v13  ;;  %v7741_v54 = vld [vmem:[#allocation10 + $0x700] ss:$28 sps:$4 sm:$0xff]   ;;  %v7792_v3 = vld [vmem:[#allocation10 + $0xb28] ss:$28 sps:$4 sm:$0xff]  }
 0x252   : > { %v2290_v0 = vpop.f32.mrf.mxu0  ;;  %v7800_v55 = vld [vmem:[#allocation10 + $0xaf4] ss:$28 sps:$4 sm:$0xff]   ;;  %v7744_v56 = vld [vmem:[#allocation10 + $0xa48] ss:$28 sps:$4 sm:$0xff]   ;;  %v7806_v57 = vld [vmem:[#allocation10 + $0xabc] ss:$28 sps:$4 sm:$0xff]  }
 0x253   : > { %v2343_v1 = vpop.f32.mrf.mxu1  ;;  %v2573_v6 = vmax.f32 %v2338_v63, 0.0  ;;  %5506 = vmatmul.mubr.bf16.gmra.mxu0 %v8973_v62  ;;  %v2291_v10 = vadd.f32 %v2290_v0, %v8960_v37  ;;  %v8979_v7 = vpack.c.bf16 %v2572_v61, %v2564_v25  ;;  %v2342_v53 = vadd.f32 %v2341_v58, %v2289_v26  ;;  %v7749_v8 = vld [vmem:[#allocation10 + $0xa14] ss:$28 sps:$4 sm:$0xff]   ;;  %v7755_v0 = vld [vmem:[#allocation10 + $0x9a4] ss:$28 sps:$4 sm:$0xff]  }
 0x254   : > { %v2292_v14 = vpop.f32.mrf.mxu0  ;;  %5574 = vmatpush1.bf16.msra.mxu0 %v7726_v59  ;;  %v7747_v58 = vld [vmem:[#allocation10 + $0xa10] ss:$28 sps:$4 sm:$0xff]   ;;  %v7752_v59 = vld [vmem:[#allocation10 + $0x9dc] ss:$28 sps:$4 sm:$0xff]   ;;  %v7816_v25 = vld [vmem:[#allocation10 + $0xdc8] ss:$28 sps:$4 sm:$0xff]  }
 0x255   : > { %v2345_v15 = vpop.f32.mrf.mxu1  ;;  %v8977_v19 = vpack.c.bf16 %v2573_v6, %v2565_v5  ;;  %v2293_v23 = vadd.f32 %v2292_v14, %v829_v13  ;;  %5575 = vmatprep.subr.bf16.mxu0 %v7731_v60  ;;  %v2344_v30 = vadd.f32 %v2343_v1, %v2291_v10  ;;  %v2580_v42 = vmax.f32 %v2342_v53, 0.0  ;;  %v7804_v63 = vld [vmem:[#allocation10 + $0xab8] ss:$28 sps:$4 sm:$0xff]   ;;  %v7812_v60 = vld [vmem:[#allocation10 + $0xa84] ss:$28 sps:$4 sm:$0xff]  }
 0x256   : > { %v2294_v11 = vpop.f32.mrf.mxu0  ;;  %v7750_v61 = vld [vmem:[#allocation10 + $0x9d8] ss:$28 sps:$4 sm:$0xff]   ;;  %v7810_v1 = vld [vmem:[#allocation10 + $0xa80] ss:$28 sps:$4 sm:$0xff]   ;;  %v7818_v5 = vld [vmem:[#allocation10 + $0xdcc] ss:$28 sps:$4 sm:$0xff]  }
 0x257   : > { %v2346_v31 = vadd.f32 %v2345_v15, %v2293_v23  ;;  %v2295_v32 = vadd.f32 %v2294_v11, %v8960_v37  ;;  %5548 = vmatprep.mubr.bf16.mxu1 %v8977_v19  ;;  %v2347_v33 = vpop.f32.mrf.mxu1  ;;  %v2581_v40 = vmax.f32 %v2344_v30, 0.0  ;;  %v7735_v37 = vld [vmem:[#allocation10 + $0x770] ss:$28 sps:$4 sm:$0xff]   ;;  %v7753_v6 = vld [vmem:[#allocation10 + $0x9a0] ss:$28 sps:$4 sm:$0xff]  }
 0x258   : > { %5549 = vmatmul.mubr.bf16.vlgmr.msra.gmra.mxu1 %v8979_v7  ;;  %5576 = vmatpush1.bf16.msra.mxu0 %v7729_v52  ;;  %v7758_v10 = vld [vmem:[#allocation10 + $0x96c] ss:$28 sps:$4 sm:$0xff]   ;;  %v7824_v26 = vld [vmem:[#allocation10 + $0xd94] ss:$28 sps:$4 sm:$0xff]   ;;  %v7830_v23 = vld [vmem:[#allocation10 + $0xd5c] ss:$28 sps:$4 sm:$0xff]  }
 0x259   : > { %v2348_v13 = vadd.f32 %v2347_v33, %v2295_v32  ;;  %5577 = vmatprep.subr.bf16.mxu0 %v7734_v24  ;;  %5623 = vmatpush1.bf16.msra.mxu1 %v7768_v28  ;;  %v2588_v38 = vmax.f32 %v2346_v31, 0.0  ;;  %v7756_v14 = vld [vmem:[#allocation10 + $0x968] ss:$28 sps:$4 sm:$0xff]   ;;  %v7761_v15 = vld [vmem:[#allocation10 + $0x934] ss:$28 sps:$4 sm:$0xff]   ;;  %v840_v33 = vsub.s32 5, %v8829_v16 }
 0x25a   : > { %5624 = vmatprep.subr.bf16.mxu1 %v7776_v29  ;;  %v7822_v52 = vld [vmem:[#allocation10 + $0xd90] ss:$28 sps:$4 sm:$0xff]   ;;  %v7764_v28 = vld [vmem:[#allocation10 + $0x8fc] ss:$28 sps:$4 sm:$0xff]   ;;  %v7836_v29 = vld [vmem:[#allocation10 + $0xd24] ss:$28 sps:$4 sm:$0xff]  }
 0x25b   : > { %v2589_v39 = vmax.f32 %v2348_v13, 0.0  ;;  %v8986_v46 = vpack.c.bf16 %v2588_v38, %v2580_v42  ;;  %v7759_v24 = vld [vmem:[#allocation10 + $0x930] ss:$28 sps:$4 sm:$0xff]   ;;  %v7828_v11 = vld [vmem:[#allocation10 + $0xd58] ss:$28 sps:$4 sm:$0xff]   ;;  %v836_v13 = vsub.s32 4, %v8829_v16 }
 0x25c   : > { %5578 = vmatpush1.bf16.msra.mxu0 %v7732_v36  ;;  %v7762_v30 = vld [vmem:[#allocation10 + $0x8f8] ss:$28 sps:$4 sm:$0xff]   ;;  %v7767_v31 = vld [vmem:[#allocation10 + $0x8c4] ss:$28 sps:$4 sm:$0xff]   ;;  %v7842_v53 = vld [vmem:[#allocation10 + $0xcec] ss:$28 sps:$4 sm:$0xff]  }
 0x25d   : > { %v8984_v43 = vpack.c.bf16 %v2589_v39, %v2581_v40  ;;  %5579 = vmatprep.subr.bf16.mxu0 %v7737_v22  ;;  %5625 = vmatpush1.bf16.msra.mxu1 %v7774_v27  ;;  %v7834_v32 = vld [vmem:[#allocation10 + $0xd20] ss:$28 sps:$4 sm:$0xff]   ;;  %v7773_v22 = vld [vmem:[#allocation10 + $0x194] ss:$28 sps:$4 sm:$0xff]   ;;  %v7840_v27 = vld [vmem:[#allocation10 + $0xce8] ss:$28 sps:$4 sm:$0xff]   ;;  %v837_v40 = vrot.slane %v8923_v44, %v836_v13 }
 0x25e   : > { %5626 = vmatprep.subr.bf16.mxu1 %v7782_v35  ;;  %v7765_v36 = vld [vmem:[#allocation10 + $0x8c0] ss:$28 sps:$4 sm:$0xff]   ;;  %v7848_v38 = vld [vmem:[#allocation10 + $0xcb4] ss:$28 sps:$4 sm:$0xff]   ;;  %v841_v35 = vrot.slane %v8923_v44, %v840_v33 }
 0x25f   : > { %5558 = vmatprep.mubr.bf16.mxu1 %v8984_v43 }
 0x260   : > { %5559 = vmatmul.mubr.bf16.gmra.mxu1 %v8986_v46  ;;  %5580 = vmatpush1.bf16.msra.mxu0 %v7735_v37  ;;  %v7846_v37 = vld [vmem:[#allocation10 + $0xcb0] ss:$28 sps:$4 sm:$0xff]  }
 0x261   : > { %5581 = vmatprep.subr.bf16.mxu0 %v7740_v9  ;;  %5627 = vmatpush1.bf16.msra.mxu1 %v7780_v45  ;;  %v7854_v9 = vld [vmem:[#allocation10 + $0xc7c] ss:$28 sps:$4 sm:$0xff]  }
 0x262   : > { %5628 = vmatprep.subr.bf16.mxu1 %v7788_v47 }
 0x264   : > { %5582 = vmatpush1.bf16.msra.mxu0 %v7738_v49 }
 0x265   : > { %5583 = vmatprep.subr.bf16.mxu0 %v7743_v48  ;;  %5629 = vmatpush1.bf16.msra.mxu1 %v7786_v50 }
 0x266   : > { %5630 = vmatprep.subr.bf16.mxu1 %v7794_v51 }
 0x268   : > { %5584 = vmatpush1.bf16.msra.mxu0 %v7741_v54  ;;  %v7852_v54 = vld [vmem:[#allocation10 + $0xc78] ss:$28 sps:$4 sm:$0xff]  }
 0x269   : > { %5585 = vmatprep.subr.bf16.mxu0 %v7746_v2  ;;  %5631 = vmatpush1.bf16.msra.mxu1 %v7792_v3  ;;  %v7860_v3 = vld [vmem:[#allocation10 + $0xc44] ss:$28 sps:$4 sm:$0xff]  }
 0x26a   : > { %5632 = vmatprep.subr.bf16.mxu1 %v7800_v55 }
 0x26c   : > { %5586 = vmatpush2.bf16.msra.mxu0 %v7744_v56 }
 0x26d   : > { %5587 = vmatprep.subr.bf16.mxu0 %v7749_v8  ;;  %5633 = vmatpush1.bf16.msra.mxu1 %v7798_v12 }
 0x26e   : > { %5634 = vmatprep.subr.bf16.mxu1 %v7806_v57 }
 0x270   : > { %5588 = vmatpush2.bf16.msra.mxu0 %v7747_v58 }
 0x271   : > { %5589 = vmatprep.subr.bf16.mxu0 %v7752_v59  ;;  %5635 = vmatpush1.bf16.msra.mxu1 %v7804_v63 }
 0x272   : > { %5636 = vmatprep.subr.bf16.mxu1 %v7812_v60  ;;  %v7858_v60 = vld [vmem:[#allocation10 + $0xc40] ss:$28 sps:$4 sm:$0xff]  }
 0x274   : > { %5590 = vmatpush2.bf16.msra.mxu0 %v7750_v61 }
 0x275   : > { %5591 = vmatprep.subr.bf16.mxu0 %v7755_v0  ;;  %5637 = vmatpush1.bf16.msra.mxu1 %v7810_v1  ;;  %v7866_v0 = vld [vmem:[#allocation10 + $0x514] ss:$28 sps:$4 sm:$0xff]  }
 0x276   : > { %5638 = vmatprep.subr.bf16.mxu1 %v7818_v5 }
 0x278   : > { %5592 = vmatpush2.bf16.msra.mxu0 %v7753_v6 }
 0x279   : > { %5593 = vmatprep.subr.bf16.mxu0 %v7758_v10  ;;  %5639 = vmatpush2.bf16.msra.mxu1 %v7816_v25 }
 0x27a   : > { %5640 = vmatprep.subr.bf16.mxu1 %v7824_v26 }
 0x27c   : > { %5594 = vmatpush2.bf16.msra.mxu0 %v7756_v14 }
 0x27d   : > { %5595 = vmatprep.subr.bf16.mxu0 %v7761_v15  ;;  %5641 = vmatpush2.bf16.msra.mxu1 %v7822_v52 }
 0x27e   : > { %5642 = vmatprep.subr.bf16.mxu1 %v7830_v23 }
 0x280   : > { %5596 = vmatpush2.bf16.msra.mxu0 %v7759_v24 }
 0x281   : > { %5597 = vmatprep.subr.bf16.mxu0 %v7764_v28  ;;  %5643 = vmatpush2.bf16.msra.mxu1 %v7828_v11  ;;  %v7771_v11 = vld [vmem:[#allocation10 + $0x190] ss:$28 sps:$4 sm:$0xff]  }
 0x282   : > { %5644 = vmatprep.subr.bf16.mxu1 %v7836_v29 }
 0x284   : > { %5598 = vmatpush2.bf16.msra.mxu0 %v7762_v30 }
 0x285   : > { %5599 = vmatprep.subr.bf16.mxu0 %v7767_v31  ;;  %5645 = vmatpush2.bf16.msra.mxu1 %v7834_v32  ;;  %v7779_v31 = vld [vmem:[#allocation10 + $0x15c] ss:$28 sps:$4 sm:$0xff]  }
 0x286   : > { %5646 = vmatprep.subr.bf16.mxu1 %v7842_v53 }
 0x288   : > { %5600 = vmatpush2.bf16.msra.mxu0 %v7765_v36 }
 0x289   : > { %v2384_v39 = vpop.f32.mrf.mxu0  ;;  %5675 = vmatprep.subr.bf16.mxu0 %v7773_v22  ;;  %5647 = vmatpush2.bf16.msra.mxu1 %v7840_v27 }
 0x28a   : > { %v2437_v42 = vpop.f32.mrf.mxu1  ;;  %5648 = vmatprep.subr.bf16.mxu1 %v7848_v38  ;;  %v2385_v48 = vadd.f32 %v2384_v39, %v837_v40  ;;  %v7777_v39 = vld [vmem:[#allocation10 + $0x158] ss:$28 sps:$4 sm:$0xff]  }
 0x28b   : > { %v2386_v45 = vpop.f32.mrf.mxu0 }
 0x28c   : > { %v2439_v47 = vpop.f32.mrf.mxu1  ;;  %v2387_v49 = vadd.f32 %v2386_v45, %v841_v35  ;;  %v2438_v58 = vadd.f32 %v2437_v42, %v2385_v48  ;;  %v7791_v48 = vld [vmem:[#allocation10 + $0xec] ss:$28 sps:$4 sm:$0xff]  }
 0x28d   : > { %v2388_v50 = vpop.f32.mrf.mxu0  ;;  %5649 = vmatpush2.bf16.msra.mxu1 %v7846_v37 }
 0x28e   : > { %v2441_v51 = vpop.f32.mrf.mxu1  ;;  %v2389_v2 = vadd.f32 %v2388_v50, %v837_v40  ;;  %5650 = vmatprep.subr.bf16.mxu1 %v7854_v9  ;;  %v2440_v8 = vadd.f32 %v2439_v47, %v2387_v49  ;;  %v2566_v14 = vmax.f32 %v2438_v58, 0.0  ;;  %v7783_v49 = vld [vmem:[#allocation10 + $0x120] ss:$28 sps:$4 sm:$0xff]   ;;  %v7789_v50 = vld [vmem:[#allocation10 + $0xe8] ss:$28 sps:$4 sm:$0xff]  }
 0x28f   : > { %v2390_v55 = vpop.f32.mrf.mxu0  ;;  %v7819_v58 = vld [vmem:[#allocation10 + $0x350] ss:$28 sps:$4 sm:$0xff]  }
 0x290   : > { %v2443_v56 = vpop.f32.mrf.mxu1  ;;  %v2442_v12 = vadd.f32 %v2441_v51, %v2389_v2  ;;  %v2391_v57 = vadd.f32 %v2390_v55, %v841_v35  ;;  %v2567_v10 = vmax.f32 %v2440_v8, 0.0  ;;  %v7797_v51 = vld [vmem:[#allocation10 + $0xb4] ss:$28 sps:$4 sm:$0xff]   ;;  %v7803_v2 = vld [vmem:[#allocation10 + $0x7c] ss:$28 sps:$4 sm:$0xff]  }
 0x291   : > { %v2394_v59 = vpop.f32.mrf.mxu0  ;;  %5651 = vmatpush2.bf16.msra.mxu1 %v7852_v54  ;;  %v7795_v54 = vld [vmem:[#allocation10 + $0xb0] ss:$28 sps:$4 sm:$0xff]   ;;  %v7809_v55 = vld [vmem:[#allocation10 + $0x44] ss:$28 sps:$4 sm:$0xff]  }
 0x292   : > { %v2447_v63 = vpop.f32.mrf.mxu1  ;;  %v2444_v61 = vadd.f32 %v2443_v56, %v2391_v57  ;;  %5652 = vmatprep.subr.bf16.mxu1 %v7860_v3  ;;  %v2574_v1 = vmax.f32 %v2442_v12, 0.0  ;;  %v2395_v15 = vadd.f32 %v2394_v59, %v837_v40  ;;  %v7801_v3 = vld [vmem:[#allocation10 + $0x78] ss:$28 sps:$4 sm:$0xff]   ;;  %v7807_v56 = vld [vmem:[#allocation10 + $0x40] ss:$28 sps:$4 sm:$0xff]  }
 0x293   : > { %v2396_v5 = vpop.f32.mrf.mxu0  ;;  %v7815_v8 = vld [vmem:[#allocation10 + $0xc] ss:$28 sps:$4 sm:$0xff]   ;;  %v7821_v57 = vld [vmem:[#allocation10 + $0x354] ss:$28 sps:$4 sm:$0xff]   ;;  %v7827_v59 = vld [vmem:[#allocation10 + $0x31c] ss:$28 sps:$4 sm:$0xff]  }
 0x294   : > { %v2449_v6 = vpop.f32.mrf.mxu1  ;;  %v2575_v25 = vmax.f32 %v2444_v61, 0.0  ;;  %v2397_v26 = vadd.f32 %v2396_v5, %v841_v35  ;;  %v9000_v29 = vpack.c.bf16 %v2574_v1, %v2566_v14  ;;  %v2448_v22 = vadd.f32 %v2447_v63, %v2395_v15  ;;  %v7813_v12 = vld [vmem:[#allocation10 + $0x8] ss:$28 sps:$4 sm:$0xff]   ;;  %v7825_v63 = vld [vmem:[#allocation10 + $0x318] ss:$28 sps:$4 sm:$0xff]  }
 0x295   : > { %v2398_v52 = vpop.f32.mrf.mxu0  ;;  %5653 = vmatpush2.bf16.msra.mxu1 %v7858_v60  ;;  %v7833_v60 = vld [vmem:[#allocation10 + $0x2e4] ss:$28 sps:$4 sm:$0xff]   ;;  %v7845_v5 = vld [vmem:[#allocation10 + $0x274] ss:$28 sps:$4 sm:$0xff]  }
 0x296   : > { %v2451_v23 = vpop.f32.mrf.mxu1  ;;  %v8998_v24 = vpack.c.bf16 %v2575_v25, %v2567_v10  ;;  %v2399_v28 = vadd.f32 %v2398_v52, %v837_v40  ;;  %5728 = vmatprep.subr.bf16.mxu1 %v7866_v0  ;;  %v2450_v32 = vadd.f32 %v2449_v6, %v2397_v26  ;;  %v7785_v40 = vld [vmem:[#allocation10 + $0x124] ss:$28 sps:$4 sm:$0xff]   ;;  %v2582_v45 = vmax.f32 %v2448_v22, 0.0  ;;  %v7839_v0 = vld [vmem:[#allocation10 + $0x2ac] ss:$28 sps:$4 sm:$0xff]  }
 0x297   : > { %v2400_v30 = vpop.f32.mrf.mxu0  ;;  %v7831_v61 = vld [vmem:[#allocation10 + $0x2e0] ss:$28 sps:$4 sm:$0xff]   ;;  %v7837_v1 = vld [vmem:[#allocation10 + $0x2a8] ss:$28 sps:$4 sm:$0xff]   ;;  %v848_v6 = vsub.s32 7, %v8829_v16  ;;  %v844_v25 = vsub.s32 6, %v8829_v16 }
 0x298   : > { %v2452_v53 = vadd.f32 %v2451_v23, %v2399_v28  ;;  %v2401_v36 = vadd.f32 %v2400_v30, %v841_v35  ;;  %5601 = vmatprep.mubr.bf16.mxu0 %v8998_v24  ;;  %v2453_v27 = vpop.f32.mrf.mxu1  ;;  %v2583_v37 = vmax.f32 %v2450_v32, 0.0  ;;  %v7843_v10 = vld [vmem:[#allocation10 + $0x270] ss:$28 sps:$4 sm:$0xff]   ;;  %v7851_v26 = vld [vmem:[#allocation10 + $0x23c] ss:$28 sps:$4 sm:$0xff]  }
 0x299   : > { %5602 = vmatmul.mubr.bf16.vlgmr.msra.gmra.mxu0 %v9000_v29  ;;  %v849_v14 = vrot.slane %v8923_v44, %v848_v6  ;;  %v845_v15 = vrot.slane %v8923_v44, %v844_v25  ;;  %v7849_v28 = vld [vmem:[#allocation10 + $0x238] ss:$28 sps:$4 sm:$0xff]  }
 0x29a   : > { %v2454_v38 = vadd.f32 %v2453_v27, %v2401_v36  ;;  %5676 = vmatpush1.bf16.msra.mxu0 %v7771_v11  ;;  %v2590_v42 = vmax.f32 %v2452_v53, 0.0  ;;  %v7857_v11 = vld [vmem:[#allocation10 + $0x204] ss:$28 sps:$4 sm:$0xff]  }
 0x29b   : > { %5677 = vmatprep.subr.bf16.mxu0 %v7779_v31  ;;  %v7855_v27 = vld [vmem:[#allocation10 + $0x200] ss:$28 sps:$4 sm:$0xff]  }
 0x29c   : > { %v2591_v9 = vmax.f32 %v2454_v38, 0.0  ;;  %v9006_v35 = vpack.c.bf16 %v2590_v42, %v2582_v45 }
 0x29e   : > { %v9004_v47 = vpack.c.bf16 %v2591_v9, %v2583_v37  ;;  %5678 = vmatpush1.bf16.msra.mxu0 %v7777_v39  ;;  %v7863_v39 = vld [vmem:[#allocation10 + $0x1cc] ss:$28 sps:$4 sm:$0xff]  }
 0x29f   : > { %5679 = vmatprep.subr.bf16.mxu0 %v7785_v40 }
 0x2a0   : > { %5611 = vmatprep.mubr.bf16.mxu0 %v9004_v47 }
 0x2a1   : > { %5612 = vmatmul.mubr.bf16.gmra.mxu0 %v9006_v35 }
 0x2a2   : > { %5680 = vmatpush1.bf16.msra.mxu0 %v7783_v49  ;;  %5707 = vmatprep.mubr.bf16.mxu0 %v8945_v4 }
 0x2a3   : > { %5681 = vmatprep.subr.bf16.mxu0 %v7791_v48 }
 0x2a6   : > { %5682 = vmatpush1.bf16.msra.mxu0 %v7789_v50  ;;  %v7861_v50 = vld [vmem:[#allocation10 + $0x1c8] ss:$28 sps:$4 sm:$0xff]  }
 0x2a7   : > { %5683 = vmatprep.subr.bf16.mxu0 %v7797_v51 }
 0x2aa   : > { %5684 = vmatpush1.bf16.msra.mxu0 %v7795_v54  ;;  %v7869_v54 = vld [vmem:[#allocation10 + $0x894] ss:$28 sps:$4 sm:$0xff]  }
 0x2ab   : > { %5685 = vmatprep.subr.bf16.mxu0 %v7803_v2 }
 0x2ae   : > { %5686 = vmatpush1.bf16.msra.mxu0 %v7801_v3 }
 0x2af   : > { %5687 = vmatprep.subr.bf16.mxu0 %v7809_v55 }
 0x2b2   : > { %5688 = vmatpush1.bf16.msra.mxu0 %v7807_v56 }
 0x2b3   : > { %5689 = vmatprep.subr.bf16.mxu0 %v7815_v8 }
 0x2b6   : > { %5690 = vmatpush1.bf16.msra.mxu0 %v7813_v12 }
 0x2b7   : > { %5691 = vmatprep.subr.bf16.mxu0 %v7821_v57 }
 0x2ba   : > { %5692 = vmatpush2.bf16.msra.mxu0 %v7819_v58 }
 0x2bb   : > { %5693 = vmatprep.subr.bf16.mxu0 %v7827_v59 }
 0x2be   : > { %5694 = vmatpush2.bf16.msra.mxu0 %v7825_v63 }
 0x2bf   : > { %5695 = vmatprep.subr.bf16.mxu0 %v7833_v60 }
 0x2c2   : > { %5696 = vmatpush2.bf16.msra.mxu0 %v7831_v61 }
 0x2c3   : > { %5697 = vmatprep.subr.bf16.mxu0 %v7839_v0  ;;  %v7864_v0 = vld [vmem:[#allocation10 + $0x510] ss:$28 sps:$4 sm:$0xff]  }
 0x2c6   : > { %5698 = vmatpush2.bf16.msra.mxu0 %v7837_v1  ;;  %v7867_v1 = vld [vmem:[#allocation10 + $0x890] ss:$28 sps:$4 sm:$0xff]  }
 0x2c7   : > { %5699 = vmatprep.subr.bf16.mxu0 %v7845_v5 }
 0x2ca   : > { %v2490_v52 = vpop.f32.mrf.mxu0  ;;  %5700 = vmatpush2.bf16.msra.mxu0 %v7843_v10  ;;  %v7872_v10 = vld [vmem:[#allocation10 + $0x4dc] ss:$28 sps:$4 sm:$0xff]  }
 0x2cb   : > { %v2543_v23 = vpop.f32.mrf.mxu1  ;;  %5701 = vmatprep.subr.bf16.mxu0 %v7851_v26  ;;  %v2491_v53 = vadd.f32 %v2490_v52, %v845_v15  ;;  %v7875_v26 = vld [vmem:[#allocation10 + $0x85c] ss:$28 sps:$4 sm:$0xff]  }
 0x2cc   : > { %v2492_v30 = vpop.f32.mrf.mxu0 }
 0x2cd   : > { %v2545_v31 = vpop.f32.mrf.mxu1  ;;  %v2493_v32 = vadd.f32 %v2492_v30, %v849_v14  ;;  %v2544_v45 = vadd.f32 %v2543_v23, %v2491_v53 }
 0x2ce   : > { %v2494_v36 = vpop.f32.mrf.mxu0  ;;  %5702 = vmatpush2.bf16.msra.mxu0 %v7849_v28 }
 0x2cf   : > { %v2547_v22 = vpop.f32.mrf.mxu1  ;;  %v2495_v38 = vadd.f32 %v2494_v36, %v845_v15  ;;  %5703 = vmatprep.subr.bf16.mxu0 %v7857_v11  ;;  %v2546_v44 = vadd.f32 %v2545_v31, %v2493_v32  ;;  %v2568_v57 = vmax.f32 %v2544_v45, 0.0  ;;  %v7870_v31 = vld [vmem:[#allocation10 + $0x4d8] ss:$28 sps:$4 sm:$0xff]   ;;  %v7878_v36 = vld [vmem:[#allocation10 + $0x4a4] ss:$28 sps:$4 sm:$0xff]  }
 0x2d0   : > { %v2496_v42 = vpop.f32.mrf.mxu0  ;;  %v7873_v32 = vld [vmem:[#allocation10 + $0x858] ss:$28 sps:$4 sm:$0xff]   ;;  %v7882_v45 = vld [vmem:[#allocation10 + $0x468] ss:$28 sps:$4 sm:$0xff]  }
 0x2d1   : > { %v2549_v40 = vpop.f32.mrf.mxu1  ;;  %v2548_v37 = vadd.f32 %v2547_v22, %v2495_v38  ;;  %v2497_v9 = vadd.f32 %v2496_v42, %v849_v14  ;;  %v2569_v56 = vmax.f32 %v2546_v44, 0.0  ;;  %v7876_v42 = vld [vmem:[#allocation10 + $0x4a0] ss:$28 sps:$4 sm:$0xff]  }
 0x2d2   : > { %v2500_v49 = vpop.f32.mrf.mxu0  ;;  %5704 = vmatpush2.bf16.msra.mxu0 %v7855_v27 }
 0x2d3   : > { %v2553_v48 = vpop.f32.mrf.mxu1  ;;  %v2550_v51 = vadd.f32 %v2549_v40, %v2497_v9  ;;  %5705 = vmatprep.subr.bf16.mxu0 %v7863_v39  ;;  %v2576_v2 = vmax.f32 %v2548_v37, 0.0  ;;  %v2501_v58 = vadd.f32 %v2500_v49, %v845_v15  ;;  %v7879_v40 = vld [vmem:[#allocation10 + $0x820] ss:$28 sps:$4 sm:$0xff]   ;;  %v7884_v37 = vld [vmem:[#allocation10 + $0x46c] ss:$28 sps:$4 sm:$0xff]  }
 0x2d4   : > { %v2502_v3 = vpop.f32.mrf.mxu0  ;;  %v7887_v9 = vld [vmem:[#allocation10 + $0x7ec] ss:$28 sps:$4 sm:$0xff]  }
 0x2d5   : > { %v2555_v55 = vpop.f32.mrf.mxu1  ;;  %v2577_v8 = vmax.f32 %v2550_v51, 0.0  ;;  %v2503_v12 = vadd.f32 %v2502_v3, %v849_v14  ;;  %v9019_v5 = vpack.c.bf16 %v2576_v2, %v2568_v57  ;;  %v2554_v11 = vadd.f32 %v2553_v48, %v2501_v58  ;;  %v7885_v49 = vld [vmem:[#allocation10 + $0x7e8] ss:$28 sps:$4 sm:$0xff]   ;;  %v7890_v48 = vld [vmem:[#allocation10 + $0x434] ss:$28 sps:$4 sm:$0xff]  }
 0x2d6   : > { %v2504_v59 = vpop.f32.mrf.mxu0  ;;  %5706 = vmatpush2.bf16.msra.mxu0 %v7861_v50  ;;  %v7893_v50 = vld [vmem:[#allocation10 + $0x7b4] ss:$28 sps:$4 sm:$0xff]   ;;  %v7896_v2 = vld [vmem:[#allocation10 + $0x3fc] ss:$28 sps:$4 sm:$0xff]  }
 0x2d7   : > { %v2557_v63 = vpop.f32.mrf.mxu1  ;;  %v9017_v60 = vpack.c.bf16 %v2577_v8, %v2569_v56  ;;  %v2505_v61 = vadd.f32 %v2504_v59, %v845_v15  ;;  %5781 = vmatprep.subr.bf16.mxu0 %v7869_v54  ;;  %v2556_v52 = vadd.f32 %v2555_v55, %v2503_v12  ;;  %v2584_v38 = vmax.f32 %v2554_v11, 0.0  ;;  %v7888_v51 = vld [vmem:[#allocation10 + $0x430] ss:$28 sps:$4 sm:$0xff]   ;;  %v7899_v3 = vld [vmem:[#allocation10 + $0x77c] ss:$28 sps:$4 sm:$0xff]  }
 0x2d8   : > { %v2506_v6 = vpop.f32.mrf.mxu0  ;;  %v7891_v54 = vld [vmem:[#allocation10 + $0x7b0] ss:$28 sps:$4 sm:$0xff]   ;;  %v7894_v55 = vld [vmem:[#allocation10 + $0x3f8] ss:$28 sps:$4 sm:$0xff]   ;;  %v7902_v8 = vld [vmem:[#allocation10 + $0x3c4] ss:$28 sps:$4 sm:$0xff]  }
 0x2d9   : > { %v2558_v23 = vadd.f32 %v2557_v63, %v2505_v61  ;;  %v2507_v28 = vadd.f32 %v2506_v6, %v849_v14  ;;  %5654 = vmatprep.mubr.bf16.mxu1 %v9017_v60  ;;  %5708 = vmatmul.mubr.bf16.vlgmr.msra.gmra.mxu0 %v8964_v34  ;;  %v2559_v30 = vpop.f32.mrf.mxu1  ;;  %v7881_v14 = vld [vmem:[#allocation10 + $0x824] ss:$28 sps:$4 sm:$0xff]   ;;  %v2585_v22 = vmax.f32 %v2556_v52, 0.0  ;;  %v7897_v56 = vld [vmem:[#allocation10 + $0x778] ss:$28 sps:$4 sm:$0xff]  }
 0x2da   : > { %5655 = vmatmul.mubr.bf16.vlgmr.msra.gmra.mxu1 %v9019_v5  ;;  %5717 = vmatprep.mubr.bf16.mxu0 %v8967_v41  ;;  %v7905_v12 = vld [vmem:[#allocation10 + $0x744] ss:$28 sps:$4 sm:$0xff]   ;;  %v7908_v59 = vld [vmem:[#allocation10 + $0x38c] ss:$28 sps:$4 sm:$0xff]   ;;  %v7917_v6 = vld [vmem:[#allocation10 + $0xa54] ss:$28 sps:$4 sm:$0xff]  }
 0x2db   : > { %v2560_v15 = vadd.f32 %v2559_v30, %v2507_v28  ;;  %5729 = vmatpush1.bf16.msra.mxu1 %v7864_v0  ;;  %5782 = vmatpush1.bf16.msra.mxu0 %v7867_v1  ;;  %v2592_v53 = vmax.f32 %v2558_v23, 0.0  ;;  %v7900_v57 = vld [vmem:[#allocation10 + $0x3c0] ss:$28 sps:$4 sm:$0xff]   ;;  %v7911_v63 = vld [vmem:[#allocation10 + $0x70c] ss:$28 sps:$4 sm:$0xff]  }
 0x2dc   : > { %5730 = vmatprep.subr.bf16.mxu1 %v7872_v10  ;;  %5783 = vmatprep.subr.bf16.mxu0 %v7875_v26  ;;  %v7903_v58 = vld [vmem:[#allocation10 + $0x740] ss:$28 sps:$4 sm:$0xff]   ;;  %v7906_v61 = vld [vmem:[#allocation10 + $0x388] ss:$28 sps:$4 sm:$0xff]   ;;  %v7914_v1 = vld [vmem:[#allocation10 + $0x6d4] ss:$28 sps:$4 sm:$0xff]  }
 0x2dd   : > { %v2593_v27 = vmax.f32 %v2560_v15, 0.0  ;;  %v9027_v44 = vpack.c.bf16 %v2592_v53, %v2584_v38  ;;  %v7909_v0 = vld [vmem:[#allocation10 + $0x708] ss:$28 sps:$4 sm:$0xff]   ;;  %v7912_v10 = vld [vmem:[#allocation10 + $0x6d0] ss:$28 sps:$4 sm:$0xff]  }
 0x2de   : > { %v7915_v26 = vld [vmem:[#allocation10 + $0xa50] ss:$28 sps:$4 sm:$0xff]   ;;  %v7920_v52 = vld [vmem:[#allocation10 + $0x69c] ss:$28 sps:$4 sm:$0xff]   ;;  %v7926_v30 = vld [vmem:[#allocation10 + $0x664] ss:$28 sps:$4 sm:$0xff]  }
 0x2df   : > { %v9025_v39 = vpack.c.bf16 %v2593_v27, %v2585_v22  ;;  %5731 = vmatpush1.bf16.msra.mxu1 %v7870_v31  ;;  %5784 = vmatpush1.bf16.msra.mxu0 %v7873_v32  ;;  %v7923_v23 = vld [vmem:[#allocation10 + $0xa1c] ss:$28 sps:$4 sm:$0xff]   ;;  %v7929_v15 = vld [vmem:[#allocation10 + $0x9e4] ss:$28 sps:$4 sm:$0xff]   ;;  %v7932_v53 = vld [vmem:[#allocation10 + $0x62c] ss:$28 sps:$4 sm:$0xff]  }
 0x2e0   : > { %5732 = vmatprep.subr.bf16.mxu1 %v7878_v36  ;;  %5785 = vmatprep.subr.bf16.mxu0 %v7881_v14  ;;  %v7918_v28 = vld [vmem:[#allocation10 + $0x698] ss:$28 sps:$4 sm:$0xff]   ;;  %v7924_v31 = vld [vmem:[#allocation10 + $0x660] ss:$28 sps:$4 sm:$0xff]   ;;  %v7935_v36 = vld [vmem:[#allocation10 + $0x9ac] ss:$28 sps:$4 sm:$0xff]  }
 0x2e1   : > { %5664 = vmatprep.mubr.bf16.mxu1 %v9025_v39  ;;  %5718 = vmatmul.mubr.bf16.gmra.mxu0 %v8973_v62  ;;  %v7921_v11 = vld [vmem:[#allocation10 + $0xa18] ss:$28 sps:$4 sm:$0xff]   ;;  %v7927_v32 = vld [vmem:[#allocation10 + $0x9e0] ss:$28 sps:$4 sm:$0xff]   ;;  %v7930_v14 = vld [vmem:[#allocation10 + $0x628] ss:$28 sps:$4 sm:$0xff]  }
 0x2e2   : > { %5665 = vmatmul.mubr.bf16.gmra.mxu1 %v9027_v44  ;;  %5813 = vmatprep.mubr.bf16.mxu0 %v8998_v24  ;;  %v7933_v22 = vld [vmem:[#allocation10 + $0x9a8] ss:$28 sps:$4 sm:$0xff]   ;;  %v7938_v27 = vld [vmem:[#allocation10 + $0x5f4] ss:$28 sps:$4 sm:$0xff]  }
 0x2e3   : > { %5733 = vmatpush1.bf16.msra.mxu1 %v7876_v42  ;;  %5786 = vmatpush1.bf16.msra.mxu0 %v7879_v40  ;;  %v7941_v38 = vld [vmem:[#allocation10 + $0x974] ss:$28 sps:$4 sm:$0xff]  }
 0x2e4   : > { %5760 = vmatprep.mubr.bf16.mxu1 %v8977_v19  ;;  %5734 = vmatprep.subr.bf16.mxu1 %v7884_v37  ;;  %v7936_v42 = vld [vmem:[#allocation10 + $0x5f0] ss:$28 sps:$4 sm:$0xff]   ;;  %v7944_v37 = vld [vmem:[#allocation10 + $0x5bc] ss:$28 sps:$4 sm:$0xff]  }
 0x2e5   : > { %5787 = vmatprep.subr.bf16.mxu0 %v7887_v9  ;;  %v7939_v40 = vld [vmem:[#allocation10 + $0x970] ss:$28 sps:$4 sm:$0xff]   ;;  %v7947_v9 = vld [vmem:[#allocation10 + $0x93c] ss:$28 sps:$4 sm:$0xff]  }
 0x2e7   : > { %5735 = vmatpush1.bf16.msra.mxu1 %v7882_v45  ;;  %5788 = vmatpush1.bf16.msra.mxu0 %v7885_v49  ;;  %v7942_v45 = vld [vmem:[#allocation10 + $0x5b8] ss:$28 sps:$4 sm:$0xff]  }
 0x2e8   : > { %5736 = vmatprep.subr.bf16.mxu1 %v7890_v48  ;;  %5789 = vmatprep.subr.bf16.mxu0 %v7893_v50  ;;  %v7945_v49 = vld [vmem:[#allocation10 + $0x938] ss:$28 sps:$4 sm:$0xff]   ;;  %v7950_v48 = vld [vmem:[#allocation10 + $0x584] ss:$28 sps:$4 sm:$0xff]  }
 0x2e9   : > { %v7953_v50 = vld [vmem:[#allocation10 + $0x904] ss:$28 sps:$4 sm:$0xff]  }
 0x2eb   : > { %5737 = vmatpush1.bf16.msra.mxu1 %v7888_v51  ;;  %5790 = vmatpush1.bf16.msra.mxu0 %v7891_v54  ;;  %v7948_v51 = vld [vmem:[#allocation10 + $0x580] ss:$28 sps:$4 sm:$0xff]  }
 0x2ec   : > { %5738 = vmatprep.subr.bf16.mxu1 %v7896_v2  ;;  %5791 = vmatprep.subr.bf16.mxu0 %v7899_v3  ;;  %v7951_v54 = vld [vmem:[#allocation10 + $0x900] ss:$28 sps:$4 sm:$0xff]   ;;  %v7956_v2 = vld [vmem:[#allocation10 + $0x54c] ss:$28 sps:$4 sm:$0xff]  }
 0x2ed   : > { %v7959_v3 = vld [vmem:[#allocation10 + $0x8cc] ss:$28 sps:$4 sm:$0xff]  }
 0x2ef   : > { %5739 = vmatpush1.bf16.msra.mxu1 %v7894_v55  ;;  %5792 = vmatpush1.bf16.msra.mxu0 %v7897_v56  ;;  %v7954_v55 = vld [vmem:[#allocation10 + $0x548] ss:$28 sps:$4 sm:$0xff]  }
 0x2f0   : > { %5740 = vmatprep.subr.bf16.mxu1 %v7902_v8  ;;  %5793 = vmatprep.subr.bf16.mxu0 %v7905_v12  ;;  %v7957_v56 = vld [vmem:[#allocation10 + $0x8c8] ss:$28 sps:$4 sm:$0xff]   ;;  %v7962_v8 = vld [vmem:[#allocation10 + $0xc14] ss:$28 sps:$4 sm:$0xff]   ;;  %v7965_v12 = vld [vmem:[#allocation10 + $0x19c] ss:$28 sps:$4 sm:$0xff]  }
 0x2f3   : > { %5741 = vmatpush1.bf16.msra.mxu1 %v7900_v57  ;;  %5794 = vmatpush1.bf16.msra.mxu0 %v7903_v58  ;;  %v7960_v57 = vld [vmem:[#allocation10 + $0xc10] ss:$28 sps:$4 sm:$0xff]   ;;  %v7963_v58 = vld [vmem:[#allocation10 + $0x198] ss:$28 sps:$4 sm:$0xff]  }
 0x2f4   : > { %5742 = vmatprep.subr.bf16.mxu1 %v7908_v59  ;;  %5795 = vmatprep.subr.bf16.mxu0 %v7911_v63  ;;  %v7968_v59 = vld [vmem:[#allocation10 + $0xbdc] ss:$28 sps:$4 sm:$0xff]   ;;  %v7971_v63 = vld [vmem:[#allocation10 + $0x164] ss:$28 sps:$4 sm:$0xff]  }
 0x2f7   : > { %5743 = vmatpush1.bf16.msra.mxu1 %v7906_v61  ;;  %5796 = vmatpush1.bf16.msra.mxu0 %v7909_v0  ;;  %v7966_v61 = vld [vmem:[#allocation10 + $0xbd8] ss:$28 sps:$4 sm:$0xff]   ;;  %v7969_v0 = vld [vmem:[#allocation10 + $0x160] ss:$28 sps:$4 sm:$0xff]  }
 0x2f8   : > { %5744 = vmatprep.subr.bf16.mxu1 %v7914_v1  ;;  %5797 = vmatprep.subr.bf16.mxu0 %v7917_v6  ;;  %v7974_v1 = vld [vmem:[#allocation10 + $0xba4] ss:$28 sps:$4 sm:$0xff]   ;;  %v7977_v6 = vld [vmem:[#allocation10 + $0x12c] ss:$28 sps:$4 sm:$0xff]  }
 0x2fb   : > { %5745 = vmatpush2.bf16.msra.mxu1 %v7912_v10  ;;  %5798 = vmatpush2.bf16.msra.mxu0 %v7915_v26  ;;  %v7972_v10 = vld [vmem:[#allocation10 + $0xba0] ss:$28 sps:$4 sm:$0xff]   ;;  %v7975_v26 = vld [vmem:[#allocation10 + $0x128] ss:$28 sps:$4 sm:$0xff]  }
 0x2fc   : > { %5746 = vmatprep.subr.bf16.mxu1 %v7920_v52  ;;  %5799 = vmatprep.subr.bf16.mxu0 %v7923_v23  ;;  %v7980_v52 = vld [vmem:[#allocation10 + $0xb6c] ss:$28 sps:$4 sm:$0xff]   ;;  %v7983_v23 = vld [vmem:[#allocation10 + $0xf4] ss:$28 sps:$4 sm:$0xff]  }
 0x2ff   : > { %5747 = vmatpush2.bf16.msra.mxu1 %v7918_v28  ;;  %5800 = vmatpush2.bf16.msra.mxu0 %v7921_v11  ;;  %v7978_v28 = vld [vmem:[#allocation10 + $0xb68] ss:$28 sps:$4 sm:$0xff]   ;;  %v7981_v11 = vld [vmem:[#allocation10 + $0xf0] ss:$28 sps:$4 sm:$0xff]  }
 0x300   : > { %5748 = vmatprep.subr.bf16.mxu1 %v7926_v30  ;;  %5801 = vmatprep.subr.bf16.mxu0 %v7929_v15  ;;  %v7986_v30 = vld [vmem:[#allocation10 + $0xb34] ss:$28 sps:$4 sm:$0xff]   ;;  %v7989_v15 = vld [vmem:[#allocation10 + $0xbc] ss:$28 sps:$4 sm:$0xff]  }
 0x303   : > { %5749 = vmatpush2.bf16.msra.mxu1 %v7924_v31  ;;  %5802 = vmatpush2.bf16.msra.mxu0 %v7927_v32  ;;  %v7984_v31 = vld [vmem:[#allocation10 + $0xb30] ss:$28 sps:$4 sm:$0xff]   ;;  %v7987_v32 = vld [vmem:[#allocation10 + $0xb8] ss:$28 sps:$4 sm:$0xff]  }
 0x304   : > { %5750 = vmatprep.subr.bf16.mxu1 %v7932_v53  ;;  %5803 = vmatprep.subr.bf16.mxu0 %v7935_v36  ;;  %v7992_v53 = vld [vmem:[#allocation10 + $0xafc] ss:$28 sps:$4 sm:$0xff]   ;;  %v7995_v36 = vld [vmem:[#allocation10 + $0x84] ss:$28 sps:$4 sm:$0xff]  }
 0x307   : > { %5751 = vmatpush2.bf16.msra.mxu1 %v7930_v14  ;;  %5804 = vmatpush2.bf16.msra.mxu0 %v7933_v22  ;;  %v7990_v14 = vld [vmem:[#allocation10 + $0xaf8] ss:$28 sps:$4 sm:$0xff]   ;;  %v7993_v22 = vld [vmem:[#allocation10 + $0x80] ss:$28 sps:$4 sm:$0xff]  }
 0x308   : > { %5752 = vmatprep.subr.bf16.mxu1 %v7938_v27  ;;  %5805 = vmatprep.subr.bf16.mxu0 %v7941_v38  ;;  %v7998_v27 = vld [vmem:[#allocation10 + $0xac4] ss:$28 sps:$4 sm:$0xff]   ;;  %v8001_v38 = vld [vmem:[#allocation10 + $0x4c] ss:$28 sps:$4 sm:$0xff]  }
 0x30b   : > { %5753 = vmatpush2.bf16.msra.mxu1 %v7936_v42  ;;  %5806 = vmatpush2.bf16.msra.mxu0 %v7939_v40  ;;  %v7996_v42 = vld [vmem:[#allocation10 + $0xac0] ss:$28 sps:$4 sm:$0xff]   ;;  %v7999_v40 = vld [vmem:[#allocation10 + $0x48] ss:$28 sps:$4 sm:$0xff]  }
 0x30c   : > { %5754 = vmatprep.subr.bf16.mxu1 %v7944_v37  ;;  %5807 = vmatprep.subr.bf16.mxu0 %v7947_v9  ;;  %v8004_v37 = vld [vmem:[#allocation10 + $0xa8c] ss:$28 sps:$4 sm:$0xff]   ;;  %v8007_v9 = vld [vmem:[#allocation10 + $0x14] ss:$28 sps:$4 sm:$0xff]  }
 0x30f   : > { %5755 = vmatpush2.bf16.msra.mxu1 %v7942_v45  ;;  %5808 = vmatpush2.bf16.msra.mxu0 %v7945_v49  ;;  %v8002_v45 = vld [vmem:[#allocation10 + $0xa88] ss:$28 sps:$4 sm:$0xff]   ;;  %v8005_v49 = vld [vmem:[#allocation10 + $0x10] ss:$28 sps:$4 sm:$0xff]  }
 0x310   : > { %5756 = vmatprep.subr.bf16.mxu1 %v7950_v48  ;;  %5809 = vmatprep.subr.bf16.mxu0 %v7953_v50  ;;  %v8010_v48 = vld [vmem:[#allocation10 + $0xdd4] ss:$28 sps:$4 sm:$0xff]   ;;  %v8013_v50 = vld [vmem:[#allocation10 + $0x35c] ss:$28 sps:$4 sm:$0xff]  }
 0x313   : > { %5757 = vmatpush2.bf16.msra.mxu1 %v7948_v51  ;;  %5810 = vmatpush2.bf16.msra.mxu0 %v7951_v54  ;;  %v8008_v51 = vld [vmem:[#allocation10 + $0xdd0] ss:$28 sps:$4 sm:$0xff]   ;;  %v8011_v54 = vld [vmem:[#allocation10 + $0x358] ss:$28 sps:$4 sm:$0xff]  }
 0x314   : > { %5758 = vmatprep.subr.bf16.mxu1 %v7956_v2  ;;  %5811 = vmatprep.subr.bf16.mxu0 %v7959_v3  ;;  %v8016_v2 = vld [vmem:[#allocation10 + $0xd9c] ss:$28 sps:$4 sm:$0xff]   ;;  %v8019_v3 = vld [vmem:[#allocation10 + $0x324] ss:$28 sps:$4 sm:$0xff]  }
 0x317   : > { %5759 = vmatpush2.bf16.msra.mxu1 %v7954_v55  ;;  %5812 = vmatpush2.bf16.msra.mxu0 %v7957_v56  ;;  %v8014_v55 = vld [vmem:[#allocation10 + $0xd98] ss:$28 sps:$4 sm:$0xff]   ;;  %v8017_v56 = vld [vmem:[#allocation10 + $0x320] ss:$28 sps:$4 sm:$0xff]  }
 0x318   : > { %5834 = vmatprep.subr.bf16.mxu1 %v7962_v8  ;;  %5887 = vmatprep.subr.bf16.mxu0 %v7965_v12  ;;  %v8022_v8 = vld [vmem:[#allocation10 + $0xd64] ss:$28 sps:$4 sm:$0xff]   ;;  %v8025_v12 = vld [vmem:[#allocation10 + $0x2ec] ss:$28 sps:$4 sm:$0xff]  }
 0x31a   : > { %5761 = vmatmul.mubr.bf16.vlgmr.msra.gmra.mxu1 %v8979_v7  ;;  %5814 = vmatmul.mubr.bf16.vlgmr.msra.gmra.mxu0 %v9000_v29 }
 0x31b   : > { %5770 = vmatprep.mubr.bf16.mxu1 %v8984_v43  ;;  %5823 = vmatprep.mubr.bf16.mxu0 %v9004_v47 }
 0x31c   : > { %5835 = vmatpush1.bf16.msra.mxu1 %v7960_v57  ;;  %5888 = vmatpush1.bf16.msra.mxu0 %v7963_v58  ;;  %v8020_v57 = vld [vmem:[#allocation10 + $0xd60] ss:$28 sps:$4 sm:$0xff]   ;;  %v8023_v58 = vld [vmem:[#allocation10 + $0x2e8] ss:$28 sps:$4 sm:$0xff]  }
 0x31d   : > { %5836 = vmatprep.subr.bf16.mxu1 %v7968_v59  ;;  %5889 = vmatprep.subr.bf16.mxu0 %v7971_v63  ;;  %v8028_v59 = vld [vmem:[#allocation10 + $0xd2c] ss:$28 sps:$4 sm:$0xff]   ;;  %v8031_v63 = vld [vmem:[#allocation10 + $0x2b4] ss:$28 sps:$4 sm:$0xff]  }
 0x320   : > { %5837 = vmatpush1.bf16.msra.mxu1 %v7966_v61  ;;  %5890 = vmatpush1.bf16.msra.mxu0 %v7969_v0  ;;  %v8026_v61 = vld [vmem:[#allocation10 + $0xd28] ss:$28 sps:$4 sm:$0xff]   ;;  %v8029_v0 = vld [vmem:[#allocation10 + $0x2b0] ss:$28 sps:$4 sm:$0xff]  }
 0x321   : > { %5838 = vmatprep.subr.bf16.mxu1 %v7974_v1  ;;  %5891 = vmatprep.subr.bf16.mxu0 %v7977_v6  ;;  %v8034_v1 = vld [vmem:[#allocation10 + $0xcf4] ss:$28 sps:$4 sm:$0xff]   ;;  %v8037_v6 = vld [vmem:[#allocation10 + $0x27c] ss:$28 sps:$4 sm:$0xff]  }
 0x322   : > { %5771 = vmatmul.mubr.bf16.gmra.mxu1 %v8986_v46  ;;  %5824 = vmatmul.mubr.bf16.gmra.mxu0 %v9006_v35 }
 0x323   : > { %5866 = vmatprep.mubr.bf16.mxu1 %v9017_v60  ;;  %5919 = vmatprep.mubr.bf16.mxu0 %v8945_v4 }
 0x324   : > { %5839 = vmatpush1.bf16.msra.mxu1 %v7972_v10  ;;  %5892 = vmatpush1.bf16.msra.mxu0 %v7975_v26  ;;  %v8032_v10 = vld [vmem:[#allocation10 + $0xcf0] ss:$28 sps:$4 sm:$0xff]   ;;  %v8035_v26 = vld [vmem:[#allocation10 + $0x278] ss:$28 sps:$4 sm:$0xff]  }
 0x325   : > { %5840 = vmatprep.subr.bf16.mxu1 %v7980_v52  ;;  %5893 = vmatprep.subr.bf16.mxu0 %v7983_v23  ;;  %v8040_v52 = vld [vmem:[#allocation10 + $0xcbc] ss:$28 sps:$4 sm:$0xff]   ;;  %v8043_v23 = vld [vmem:[#allocation10 + $0x244] ss:$28 sps:$4 sm:$0xff]  }
 0x328   : > { %5841 = vmatpush1.bf16.msra.mxu1 %v7978_v28  ;;  %5894 = vmatpush1.bf16.msra.mxu0 %v7981_v11  ;;  %v8038_v28 = vld [vmem:[#allocation10 + $0xcb8] ss:$28 sps:$4 sm:$0xff]   ;;  %v8041_v11 = vld [vmem:[#allocation10 + $0x240] ss:$28 sps:$4 sm:$0xff]  }
 0x329   : > { %5842 = vmatprep.subr.bf16.mxu1 %v7986_v30  ;;  %5895 = vmatprep.subr.bf16.mxu0 %v7989_v15  ;;  %v8046_v30 = vld [vmem:[#allocation10 + $0xc84] ss:$28 sps:$4 sm:$0xff]   ;;  %v8049_v15 = vld [vmem:[#allocation10 + $0x20c] ss:$28 sps:$4 sm:$0xff]  }
 0x32c   : > { %5843 = vmatpush1.bf16.msra.mxu1 %v7984_v31  ;;  %5896 = vmatpush1.bf16.msra.mxu0 %v7987_v32  ;;  %v8044_v31 = vld [vmem:[#allocation10 + $0xc80] ss:$28 sps:$4 sm:$0xff]   ;;  %v8047_v32 = vld [vmem:[#allocation10 + $0x208] ss:$28 sps:$4 sm:$0xff]  }
 0x32d   : > { %5844 = vmatprep.subr.bf16.mxu1 %v7992_v53  ;;  %5897 = vmatprep.subr.bf16.mxu0 %v7995_v36  ;;  %v8052_v53 = vld [vmem:[#allocation10 + $0xc4c] ss:$28 sps:$4 sm:$0xff]   ;;  %v8055_v36 = vld [vmem:[#allocation10 + $0x1d4] ss:$28 sps:$4 sm:$0xff]  }
 0x330   : > { %5845 = vmatpush1.bf16.msra.mxu1 %v7990_v14  ;;  %5898 = vmatpush1.bf16.msra.mxu0 %v7993_v22  ;;  %v8050_v14 = vld [vmem:[#allocation10 + $0xc48] ss:$28 sps:$4 sm:$0xff]   ;;  %v8053_v22 = vld [vmem:[#allocation10 + $0x1d0] ss:$28 sps:$4 sm:$0xff]  }
 0x331   : > { %5846 = vmatprep.subr.bf16.mxu1 %v7998_v27  ;;  %5899 = vmatprep.subr.bf16.mxu0 %v8001_v38  ;;  %v8058_v27 = vld [vmem:[#allocation10 + $0x51c] ss:$28 sps:$4 sm:$0xff]  }
 0x332   : > { %v8061_v38 = vld [vmem:[#allocation10 + $0x89c] ss:$28 sps:$4 sm:$0xff]  }
 0x334   : > { %5847 = vmatpush1.bf16.msra.mxu1 %v7996_v42  ;;  %5900 = vmatpush1.bf16.msra.mxu0 %v7999_v40  ;;  %v8056_v42 = vld [vmem:[#allocation10 + $0x518] ss:$28 sps:$4 sm:$0xff]  }
 0x335   : > { %5848 = vmatprep.subr.bf16.mxu1 %v8004_v37  ;;  %5901 = vmatprep.subr.bf16.mxu0 %v8007_v9  ;;  %v8059_v40 = vld [vmem:[#allocation10 + $0x898] ss:$28 sps:$4 sm:$0xff]   ;;  %v8064_v37 = vld [vmem:[#allocation10 + $0x4e4] ss:$28 sps:$4 sm:$0xff]  }
 0x336   : > { %v8067_v9 = vld [vmem:[#allocation10 + $0x864] ss:$28 sps:$4 sm:$0xff]  }
 0x338   : > { %5849 = vmatpush1.bf16.msra.mxu1 %v8002_v45  ;;  %5902 = vmatpush1.bf16.msra.mxu0 %v8005_v49  ;;  %v8062_v45 = vld [vmem:[#allocation10 + $0x4e0] ss:$28 sps:$4 sm:$0xff]  }
 0x339   : > { %5850 = vmatprep.subr.bf16.mxu1 %v8010_v48  ;;  %5903 = vmatprep.subr.bf16.mxu0 %v8013_v50  ;;  %v8065_v49 = vld [vmem:[#allocation10 + $0x860] ss:$28 sps:$4 sm:$0xff]   ;;  %v8070_v48 = vld [vmem:[#allocation10 + $0x4ac] ss:$28 sps:$4 sm:$0xff]  }
 0x33a   : > { %v8073_v50 = vld [vmem:[#allocation10 + $0x82c] ss:$28 sps:$4 sm:$0xff]  }
 0x33c   : > { %5851 = vmatpush2.bf16.msra.mxu1 %v8008_v51  ;;  %5904 = vmatpush2.bf16.msra.mxu0 %v8011_v54  ;;  %v8068_v51 = vld [vmem:[#allocation10 + $0x4a8] ss:$28 sps:$4 sm:$0xff]  }
 0x33d   : > { %5852 = vmatprep.subr.bf16.mxu1 %v8016_v2  ;;  %5905 = vmatprep.subr.bf16.mxu0 %v8019_v3  ;;  %v8071_v54 = vld [vmem:[#allocation10 + $0x828] ss:$28 sps:$4 sm:$0xff]   ;;  %v8076_v2 = vld [vmem:[#allocation10 + $0x474] ss:$28 sps:$4 sm:$0xff]  }
 0x33e   : > { %v8079_v3 = vld [vmem:[#allocation10 + $0x7f4] ss:$28 sps:$4 sm:$0xff]  }
 0x340   : > { %5853 = vmatpush2.bf16.msra.mxu1 %v8014_v55  ;;  %5906 = vmatpush2.bf16.msra.mxu0 %v8017_v56  ;;  %v8074_v55 = vld [vmem:[#allocation10 + $0x470] ss:$28 sps:$4 sm:$0xff]  }
 0x341   : > { %5854 = vmatprep.subr.bf16.mxu1 %v8022_v8  ;;  %5907 = vmatprep.subr.bf16.mxu0 %v8025_v12  ;;  %v8077_v56 = vld [vmem:[#allocation10 + $0x7f0] ss:$28 sps:$4 sm:$0xff]   ;;  %v8082_v8 = vld [vmem:[#allocation10 + $0x43c] ss:$28 sps:$4 sm:$0xff]  }
 0x342   : > { %v8085_v12 = vld [vmem:[#allocation10 + $0x7bc] ss:$28 sps:$4 sm:$0xff]  }
 0x344   : > { %5855 = vmatpush2.bf16.msra.mxu1 %v8020_v57  ;;  %5908 = vmatpush2.bf16.msra.mxu0 %v8023_v58  ;;  %v8080_v57 = vld [vmem:[#allocation10 + $0x438] ss:$28 sps:$4 sm:$0xff]  }
 0x345   : > { %5856 = vmatprep.subr.bf16.mxu1 %v8028_v59  ;;  %5909 = vmatprep.subr.bf16.mxu0 %v8031_v63  ;;  %v8083_v58 = vld [vmem:[#allocation10 + $0x7b8] ss:$28 sps:$4 sm:$0xff]   ;;  %v9050_v59 = vpop.f32.mrf.mxu0  ;;  %v8088_v63 = vld [vmem:[#allocation10 + $0x404] ss:$28 sps:$4 sm:$0xff]  }
 0x348   : > { %5857 = vmatpush2.bf16.msra.mxu1 %v8026_v61  ;;  %5910 = vmatpush2.bf16.msra.mxu0 %v8029_v0  ;;  %v8091_v61 = vld [vmem:[#allocation10 + $0x784] ss:$28 sps:$4 sm:$0xff]  }
 0x349   : > { %5858 = vmatprep.subr.bf16.mxu1 %v8034_v1  ;;  %5911 = vmatprep.subr.bf16.mxu0 %v8037_v6  ;;  %v8086_v0 = vld [vmem:[#allocation10 + $0x400] ss:$28 sps:$4 sm:$0xff]   ;;  %v9052_v6 = vpop.f32.mrf.mxu0 }
 0x34a   : > { %v8089_v1 = vld [vmem:[#allocation10 + $0x780] ss:$28 sps:$4 sm:$0xff]  }
 0x34c   : > { %5859 = vmatpush2.bf16.msra.mxu1 %v8032_v10  ;;  %5912 = vmatpush2.bf16.msra.mxu0 %v8035_v26  ;;  %v8094_v10 = vld [vmem:[#allocation10 + $0x3cc] ss:$28 sps:$4 sm:$0xff]  }
 0x34d   : > { %5860 = vmatprep.subr.bf16.mxu1 %v8040_v52  ;;  %5913 = vmatprep.subr.bf16.mxu0 %v8043_v23  ;;  %v8097_v26 = vld [vmem:[#allocation10 + $0x74c] ss:$28 sps:$4 sm:$0xff]  }
 0x34e   : > { %v8092_v52 = vld [vmem:[#allocation10 + $0x3c8] ss:$28 sps:$4 sm:$0xff]  }
 0x34f   : > { %v8095_v23 = vld [vmem:[#allocation10 + $0x748] ss:$28 sps:$4 sm:$0xff]  }
 0x350   : > { %5861 = vmatpush2.bf16.msra.mxu1 %v8038_v28  ;;  %5914 = vmatpush2.bf16.msra.mxu0 %v8041_v11  ;;  %v9054_v28 = vpop.f32.mrf.mxu0  ;;  %v8100_v11 = vld [vmem:[#allocation10 + $0x394] ss:$28 sps:$4 sm:$0xff]  }
 0x351   : > { %5862 = vmatprep.subr.bf16.mxu1 %v8046_v30  ;;  %5915 = vmatprep.subr.bf16.mxu0 %v8049_v15  ;;  %v8103_v30 = vld [vmem:[#allocation10 + $0x714] ss:$28 sps:$4 sm:$0xff]  }
 0x352   : > { %v8098_v15 = vld [vmem:[#allocation10 + $0x390] ss:$28 sps:$4 sm:$0xff]  }
 0x354   : > { %5863 = vmatpush2.bf16.msra.mxu1 %v8044_v31  ;;  %5916 = vmatpush2.bf16.msra.mxu0 %v8047_v32  ;;  %v8101_v31 = vld [vmem:[#allocation10 + $0x710] ss:$28 sps:$4 sm:$0xff]   ;;  %v9056_v32 = vpop.f32.mrf.mxu0 }
 0x355   : > { %5864 = vmatprep.subr.bf16.mxu1 %v8052_v53  ;;  %5917 = vmatprep.subr.bf16.mxu0 %v8055_v36  ;;  %v8106_v53 = vld [vmem:[#allocation10 + $0x6dc] ss:$28 sps:$4 sm:$0xff]  }
 0x356   : > { %v8109_v36 = vld [vmem:[#allocation10 + $0xa5c] ss:$28 sps:$4 sm:$0xff]  }
 0x358   : > { %5865 = vmatpush2.bf16.msra.mxu1 %v8050_v14  ;;  %5918 = vmatpush2.bf16.msra.mxu0 %v8053_v22  ;;  %v8104_v14 = vld [vmem:[#allocation10 + $0x6d8] ss:$28 sps:$4 sm:$0xff]  }
 0x359   : > { %5940 = vmatprep.subr.bf16.mxu1 %v8058_v27  ;;  %5993 = vmatprep.subr.bf16.mxu0 %v8061_v38  ;;  %v8107_v22 = vld [vmem:[#allocation10 + $0xa58] ss:$28 sps:$4 sm:$0xff]   ;;  %v9058_v27 = vpop.f32.mrf.mxu0  ;;  %v8112_v38 = vld [vmem:[#allocation10 + $0x6a4] ss:$28 sps:$4 sm:$0xff]  }
 0x35b   : > { %5867 = vmatmul.mubr.bf16.vlgmr.msra.gmra.mxu1 %v9019_v5  ;;  %5920 = vmatmul.mubr.bf16.vlgmr.msra.gmra.mxu0 %v8964_v34 }
 0x35c   : > { %5876 = vmatprep.mubr.bf16.mxu1 %v9025_v39  ;;  %5929 = vmatprep.mubr.bf16.mxu0 %v8967_v41 }
 0x35d   : > { %5941 = vmatpush1.bf16.msra.mxu1 %v8056_v42  ;;  %5994 = vmatpush1.bf16.msra.mxu0 %v8059_v40  ;;  %v8115_v42 = vld [vmem:[#allocation10 + $0xa24] ss:$28 sps:$4 sm:$0xff]   ;;  %v9060_v40 = vpop.f32.mrf.mxu1 }
 0x35e   : > { %5942 = vmatprep.subr.bf16.mxu1 %v8064_v37  ;;  %5995 = vmatprep.subr.bf16.mxu0 %v8067_v9  ;;  %v8110_v37 = vld [vmem:[#allocation10 + $0x6a0] ss:$28 sps:$4 sm:$0xff]  }
 0x35f   : > { %v8113_v9 = vld [vmem:[#allocation10 + $0xa20] ss:$28 sps:$4 sm:$0xff]  }
 0x361   : > { %5943 = vmatpush1.bf16.msra.mxu1 %v8062_v45  ;;  %5996 = vmatpush1.bf16.msra.mxu0 %v8065_v49  ;;  %v9062_v45 = vpop.f32.mrf.mxu0  ;;  %v8118_v49 = vld [vmem:[#allocation10 + $0x66c] ss:$28 sps:$4 sm:$0xff]  }
 0x362   : > { %5944 = vmatprep.subr.bf16.mxu1 %v8070_v48  ;;  %5997 = vmatprep.subr.bf16.mxu0 %v8073_v50  ;;  %v8121_v48 = vld [vmem:[#allocation10 + $0x9ec] ss:$28 sps:$4 sm:$0xff]   ;;  %v9064_v50 = vpop.f32.mrf.mxu1 }
 0x363   : > { %5877 = vmatmul.mubr.bf16.gmra.mxu1 %v9027_v44  ;;  %5930 = vmatmul.mubr.bf16.gmra.mxu0 %v8973_v62 }
 0x364   : > { %5972 = vmatprep.mubr.bf16.mxu1 %v8977_v19  ;;  %6025 = vmatprep.mubr.bf16.mxu0 %v8998_v24 }
 0x365   : > { %5945 = vmatpush1.bf16.msra.mxu1 %v8068_v51  ;;  %5998 = vmatpush1.bf16.msra.mxu0 %v8071_v54  ;;  %v8116_v51 = vld [vmem:[#allocation10 + $0x668] ss:$28 sps:$4 sm:$0xff]  }
 0x366   : > { %5946 = vmatprep.subr.bf16.mxu1 %v8076_v2  ;;  %5999 = vmatprep.subr.bf16.mxu0 %v8079_v3  ;;  %v8119_v54 = vld [vmem:[#allocation10 + $0x9e8] ss:$28 sps:$4 sm:$0xff]   ;;  %v9066_v2 = vpop.f32.mrf.mxu0  ;;  %v8124_v3 = vld [vmem:[#allocation10 + $0x634] ss:$28 sps:$4 sm:$0xff]  }
 0x369   : > { %5947 = vmatpush1.bf16.msra.mxu1 %v8074_v55  ;;  %6000 = vmatpush1.bf16.msra.mxu0 %v8077_v56  ;;  %v8127_v55 = vld [vmem:[#allocation10 + $0x9b4] ss:$28 sps:$4 sm:$0xff]   ;;  %v9068_v56 = vpop.f32.mrf.mxu1 }
 0x36a   : > { %5948 = vmatprep.subr.bf16.mxu1 %v8082_v8  ;;  %6001 = vmatprep.subr.bf16.mxu0 %v8085_v12  ;;  %v8122_v8 = vld [vmem:[#allocation10 + $0x630] ss:$28 sps:$4 sm:$0xff]  }
 0x36b   : > { %v8125_v12 = vld [vmem:[#allocation10 + $0x9b0] ss:$28 sps:$4 sm:$0xff]  }
 0x36d   : > { %5949 = vmatpush1.bf16.msra.mxu1 %v8080_v57  ;;  %6002 = vmatpush1.bf16.msra.mxu0 %v8083_v58  ;;  %v9070_v57 = vpop.f32.mrf.mxu0  ;;  %v8130_v58 = vld [vmem:[#allocation10 + $0x5fc] ss:$28 sps:$4 sm:$0xff]  }
 0x36e   : > { %5950 = vmatprep.subr.bf16.mxu1 %v8088_v63  ;;  %6003 = vmatprep.subr.bf16.mxu0 %v8091_v61  ;;  %v8133_v63 = vld [vmem:[#allocation10 + $0x97c] ss:$28 sps:$4 sm:$0xff]   ;;  %v9072_v61 = vpop.f32.mrf.mxu1 }
 0x371   : > { %5951 = vmatpush1.bf16.msra.mxu1 %v8086_v0  ;;  %6004 = vmatpush1.bf16.msra.mxu0 %v8089_v1  ;;  %v5603_v0 = vpop.f32.mrf.mxu0  ;;  %v8128_v1 = vld [vmem:[#allocation10 + $0x5f8] ss:$28 sps:$4 sm:$0xff]  }
 0x372   : > { %5952 = vmatprep.subr.bf16.mxu1 %v8094_v10  ;;  %6005 = vmatprep.subr.bf16.mxu0 %v8097_v26  ;;  %v8131_v10 = vld [vmem:[#allocation10 + $0x978] ss:$28 sps:$4 sm:$0xff]   ;;  %v8136_v26 = vld [vmem:[#allocation10 + $0x5c4] ss:$28 sps:$4 sm:$0xff]  }
 0x375   : > { %5953 = vmatpush1.bf16.msra.mxu1 %v8092_v52  ;;  %6006 = vmatpush1.bf16.msra.mxu0 %v8095_v23  ;;  %v8139_v52 = vld [vmem:[#allocation10 + $0x944] ss:$28 sps:$4 sm:$0xff]   ;;  %v9074_v23 = vpop.f32.mrf.mxu1 }
 0x376   : > { %5954 = vmatprep.subr.bf16.mxu1 %v8100_v11  ;;  %6007 = vmatprep.subr.bf16.mxu0 %v8103_v30  ;;  %v5605_v11 = vpop.f32.mrf.mxu0  ;;  %v8134_v30 = vld [vmem:[#allocation10 + $0x5c0] ss:$28 sps:$4 sm:$0xff]  }
 0x379   : > { %5955 = vmatpush1.bf16.msra.mxu1 %v8098_v15  ;;  %6008 = vmatpush1.bf16.msra.mxu0 %v8101_v31  ;;  %v8137_v15 = vld [vmem:[#allocation10 + $0x940] ss:$28 sps:$4 sm:$0xff]  }
 0x37a   : > { %5956 = vmatprep.subr.bf16.mxu1 %v8106_v53  ;;  %6009 = vmatprep.subr.bf16.mxu0 %v8109_v36  ;;  %v9076_v31 = vld [vmem:[#allocation11] sm:$0xff]  ;;  %v8142_v53 = vld [vmem:[#allocation10 + $0x58c] ss:$28 sps:$4 sm:$0xff]  }
 0x37b   : > { %v8145_v36 = vld [vmem:[#allocation10 + $0x90c] ss:$28 sps:$4 sm:$0xff]  }
 0x37d   : > { %5957 = vmatpush2.bf16.msra.mxu1 %v8104_v14  ;;  %6010 = vmatpush2.bf16.msra.mxu0 %v8107_v22  ;;  %v9078_v14 = vpop.f32.mrf.mxu1  ;;  %v5607_v22 = vpop.f32.mrf.mxu0 }
 0x37e   : > { %5958 = vmatprep.subr.bf16.mxu1 %v8112_v38  ;;  %6011 = vmatprep.subr.bf16.mxu0 %v8115_v42  ;;  %v9082_v38 = vrot.slane %v9076_v31, %v8832_v17  ;;  %v8140_v42 = vld [vmem:[#allocation10 + $0x588] ss:$28 sps:$4 sm:$0xff]   ;;  %v8146_v17 = vld [vmem:[#allocation10 + $0x550] ss:$28 sps:$4 sm:$0xff]  }
 0x381   : > { %5959 = vmatpush2.bf16.msra.mxu1 %v8110_v37  ;;  %6012 = vmatpush2.bf16.msra.mxu0 %v8113_v9  ;;  %v8143_v37 = vld [vmem:[#allocation10 + $0x908] ss:$28 sps:$4 sm:$0xff]   ;;  %v8148_v9 = vld [vmem:[#allocation10 + $0x554] ss:$28 sps:$4 sm:$0xff]  }
 0x382   : > { %5960 = vmatprep.subr.bf16.mxu1 %v8118_v49  ;;  %6013 = vmatprep.subr.bf16.mxu0 %v8121_v48  ;;  %v8151_v49 = vld [vmem:[#allocation10 + $0x8d4] ss:$28 sps:$4 sm:$0xff]   ;;  %v9086_v48 = vrot.slane %v9076_v31, %v8835_v18 }
 0x385   : > { %5961 = vmatpush2.bf16.msra.mxu1 %v8116_v51  ;;  %6014 = vmatpush2.bf16.msra.mxu0 %v8119_v54  ;;  %v9088_v51 = vpop.f32.mrf.mxu1  ;;  %v5609_v54 = vpop.f32.mrf.mxu0 }
 0x386   : > { %5962 = vmatprep.subr.bf16.mxu1 %v8124_v3  ;;  %6015 = vmatprep.subr.bf16.mxu0 %v8127_v55  ;;  %v5498_v3 = vadd.f32 %v9050_v59, %v9082_v38  ;;  %v8149_v55 = vld [vmem:[#allocation10 + $0x8d0] ss:$28 sps:$4 sm:$0xff]  }
 0x388   : > { %v5551_v18 = vadd.f32 %v9060_v40, %v5498_v3 }
 0x389   : > { %5963 = vmatpush2.bf16.msra.mxu1 %v8122_v8  ;;  %6016 = vmatpush2.bf16.msra.mxu0 %v8125_v12  ;;  %v8154_v8 = vld [vmem:[#allocation10 + $0xc1c] ss:$28 sps:$4 sm:$0xff]  }
 0x38a   : > { %5964 = vmatprep.subr.bf16.mxu1 %v8130_v58  ;;  %6017 = vmatprep.subr.bf16.mxu0 %v8133_v63  ;;  %v8155_v12 = vld [vmem:[#allocation10 + $0x360] ss:$28 sps:$4 sm:$0xff]   ;;  %v5500_v58 = vadd.f32 %v9052_v6, %v9086_v48  ;;  %v9095_v63 = vpop.f32.mrf.mxu1  ;;  %v5504_v6 = vadd.f32 %v9056_v32, %v9086_v48 }
 0x38c   : > { %v5553_v59 = vadd.f32 %v9064_v50, %v5500_v58  ;;  %v8165_v58 = vld [vmem:[#allocation10 + $0x2f0] ss:$28 sps:$4 sm:$0xff]  }
 0x38d   : > { %5965 = vmatpush2.bf16.msra.mxu1 %v8128_v1  ;;  %6018 = vmatpush2.bf16.msra.mxu0 %v8131_v10  ;;  %v5613_v1 = vpop.f32.mrf.mxu0  ;;  %v5502_v10 = vadd.f32 %v9054_v28, %v9082_v38  ;;  %v5508_v28 = vadd.f32 %v9058_v27, %v9082_v38 }
 0x38e   : > { %5966 = vmatprep.subr.bf16.mxu1 %v8136_v26  ;;  %6019 = vmatprep.subr.bf16.mxu0 %v8139_v52  ;;  %v5604_v26 = vadd.f32 %v5603_v0, %v5551_v18  ;;  %v8152_v52 = vld [vmem:[#allocation10 + $0xc18] ss:$28 sps:$4 sm:$0xff]   ;;  %v5512_v18 = vadd.f32 %v9066_v2, %v9082_v38 }
 0x38f   : > { %v5555_v40 = vadd.f32 %v9068_v56, %v5502_v10  ;;  %v5615_v50 = vpop.f32.mrf.mxu0  ;;  %v5510_v56 = vadd.f32 %v9062_v45, %v9086_v48  ;;  %v5561_v27 = vadd.f32 %v9074_v23, %v5508_v28  ;;  %v8169_v38 = vld [vmem:[#allocation10 + $0xb74] ss:$28 sps:$4 sm:$0xff]  }
 0x390   : > { %v8167_v28 = vld [vmem:[#allocation10 + $0xb70] ss:$28 sps:$4 sm:$0xff]  }
 0x391   : > { %5967 = vmatpush2.bf16.msra.mxu1 %v8134_v30  ;;  %6020 = vmatpush2.bf16.msra.mxu0 %v8137_v15  ;;  %v8156_v15 = vld [vmem:[#allocation10 + $0x1a0] ss:$28 sps:$4 sm:$0xff]   ;;  %v5563_v45 = vadd.f32 %v9078_v14, %v5510_v56  ;;  %v5617_v10 = vpop.f32.mrf.mxu0 }
 0x392   : > { %5968 = vmatprep.subr.bf16.mxu1 %v8142_v53  ;;  %6021 = vmatprep.subr.bf16.mxu0 %v8145_v36  ;;  %v5606_v53 = vadd.f32 %v5605_v11, %v5553_v59  ;;  %v8157_v11 = vld [vmem:[#allocation10 + $0xbe0] ss:$28 sps:$4 sm:$0xff]   ;;  %v5614_v59 = vadd.f32 %v5613_v1, %v5561_v27  ;;  %v8170_v1 = vld [vmem:[#allocation10 + $0x2b8] ss:$28 sps:$4 sm:$0xff]  }
 0x395   : > { %5969 = vmatpush2.bf16.msra.mxu1 %v8140_v42  ;;  %6022 = vmatpush2.bf16.msra.mxu0 %v8143_v37  ;;  %v8159_v42 = vld [vmem:[#allocation10 + $0xbe4] ss:$28 sps:$4 sm:$0xff]  }
 0x396   : > { %5970 = vmatprep.subr.bf16.mxu1 %v8148_v9  ;;  %6023 = vmatprep.subr.bf16.mxu0 %v8151_v49  ;;  %v8160_v37 = vld [vmem:[#allocation10 + $0x328] ss:$28 sps:$4 sm:$0xff]   ;;  %v5557_v9 = vadd.f32 %v9072_v61, %v5504_v6  ;;  %v5608_v49 = vadd.f32 %v5607_v22, %v5555_v40  ;;  %v8166_v40 = vld [vmem:[#allocation10 + $0x130] ss:$28 sps:$4 sm:$0xff]  }
 0x399   : > { %5971 = vmatpush2.bf16.msra.mxu1 %v8146_v17  ;;  %6024 = vmatpush2.bf16.msra.mxu0 %v8149_v55  ;;  %v8161_v55 = vld [vmem:[#allocation10 + $0x168] ss:$28 sps:$4 sm:$0xff]  }
 0x39a   : > { %6046 = vmatprep.subr.bf16.mxu1 %v8154_v8  ;;  %7393 = vmatprep.subr.bf16.mxu0 %v8155_v12  ;;  %v5656_v30 = vpop.f32.mrf.mxu1  ;;  %v5610_v8 = vadd.f32 %v5609_v54, %v5557_v9  ;;  %v8164_v12 = vld [vmem:[#allocation10 + $0xbac] ss:$28 sps:$4 sm:$0xff]   ;;  %v5514_v54 = vadd.f32 %v9070_v57, %v9086_v48 }
 0x39b   : > { %v5657_v36 = vadd.f32 %v5656_v30, %v5604_v26  ;;  %v5565_v30 = vadd.f32 %v9088_v51, %v5512_v18  ;;  %v8177_v18 = vld [vmem:[#allocation10 + $0xb00] ss:$28 sps:$4 sm:$0xff]  }
 0x39c   : > { %5973 = vmatmul.mubr.bf16.vlgmr.msra.gmra.mxu1 %v8979_v7  ;;  %6026 = vmatmul.mubr.bf16.vlgmr.msra.gmra.mxu0 %v9000_v29  ;;  %v5658_v0 = vpop.f32.mrf.mxu1 }
 0x39d   : > { %v7360_v3 = vmul.f32 -1.442695, %v5657_v36  ;;  %5982 = vmatprep.mubr.bf16.mxu1 %v8984_v43  ;;  %6035 = vmatprep.mubr.bf16.mxu0 %v9004_v47  ;;  %v5659_v32 = vadd.f32 %v5658_v0, %v5606_v53  ;;  %v5616_v53 = vadd.f32 %v5615_v50, %v5563_v45  ;;  %v5567_v36 = vadd.f32 %v9095_v63, %v5514_v54  ;;  %v8171_v0 = vld [vmem:[#allocation10 + $0xf8] ss:$28 sps:$4 sm:$0xff]   ;;  %v8181_v45 = vld [vmem:[#allocation10 + $0x88] ss:$28 sps:$4 sm:$0xff]  }
 0x39e   : > { %6047 = vmatpush1.bf16.msra.mxu1 %v8152_v52  ;;  %7394 = vmatpush3.bf16.msra.mxu0 %v8156_v15  ;;  %v5660_v17 = vpop.f32.mrf.mxu1  ;;  %v8162_v15 = vld [vmem:[#allocation10 + $0xba8] ss:$28 sps:$4 sm:$0xff]   ;;  %v5618_v48 = vadd.f32 %v5617_v10, %v5565_v30 }
 0x39f   : > { %8264 = vpow2.f32 %v7360_v3  ;;  %v7361_v61 = vmul.f32 -1.442695, %v5659_v32  ;;  %6048 = vmatprep.subr.bf16.mxu1 %v8159_v42  ;;  %7395 = vmatprep.subr.bf16.mxu0 %v8160_v37  ;;  %v5661_v22 = vadd.f32 %v5660_v17, %v5608_v49  ;;  %v5619_v42 = vpop.f32.mrf.mxu0  ;;  %v8174_v3 = vld [vmem:[#allocation10 + $0xb3c] ss:$28 sps:$4 sm:$0xff]   ;;  %v8182_v30 = vld [vmem:[#allocation10 + $0xac8] ss:$28 sps:$4 sm:$0xff]  }
 0x3a0   : > { %v5662_v23 = vpop.f32.mrf.mxu1  ;;  %v5620_v63 = vadd.f32 %v5619_v42, %v5567_v36  ;;  %v8175_v32 = vld [vmem:[#allocation10 + $0x280] ss:$28 sps:$4 sm:$0xff]   ;;  %v8191_v36 = vld [vmem:[#allocation10 + $0x18] ss:$28 sps:$4 sm:$0xff]  }
 0x3a1   : > { %8266 = vpow2.f32 %v7361_v61  ;;  %v7367_v26 = vmul.f32 -1.442695, %v5661_v22  ;;  %v5663_v52 = vadd.f32 %v5662_v23, %v5610_v8  ;;  %v8176_v17 = vld [vmem:[#allocation10 + $0xc0] ss:$28 sps:$4 sm:$0xff]   ;;  %v8180_v61 = vld [vmem:[#allocation10 + $0x248] ss:$28 sps:$4 sm:$0xff]  }
 0x3a2   : > { %6049 = vmatpush1.bf16.msra.mxu1 %v8157_v11  ;;  %7396 = vmatpush3.bf16.msra.mxu0 %v8161_v55  ;;  %v5666_v6 = vpop.f32.mrf.mxu1  ;;  %v8179_v8 = vld [vmem:[#allocation10 + $0xb04] ss:$28 sps:$4 sm:$0xff]   ;;  %v8184_v23 = vld [vmem:[#allocation10 + $0xacc] ss:$28 sps:$4 sm:$0xff]  }
 0x3a3   : > { %8268 = vpow2.f32 %v7367_v26  ;;  %v7368_v2 = vmul.f32 -1.442695, %v5663_v52  ;;  %6050 = vmatprep.subr.bf16.mxu1 %v8164_v12  ;;  %7397 = vmatprep.subr.bf16.mxu0 %v8165_v58  ;;  %v5667_v14 = vadd.f32 %v5666_v6, %v5614_v59  ;;  %v8185_v59 = vld [vmem:[#allocation10 + $0x210] ss:$28 sps:$4 sm:$0xff]  }
 0x3a4   : > { %5983 = vmatmul.mubr.bf16.gmra.mxu1 %v8986_v46  ;;  %6036 = vmatmul.mubr.bf16.gmra.mxu0 %v9006_v35  ;;  %v5668_v57 = vpop.f32.mrf.mxu1 }
 0x3a5   : > { %8270 = vpow2.f32 %v7368_v2  ;;  %v7374_v51 = vmul.f32 -1.442695, %v5667_v14  ;;  %6078 = vmatprep.mubr.bf16.mxu1 %v9017_v60  ;;  %6131 = vmatprep.mubr.bf16.mxu0 %v8945_v4  ;;  %v5669_v37 = vadd.f32 %v5668_v57, %v5616_v53  ;;  %v8172_v4 = vld [vmem:[#allocation10 + $0xb38] ss:$28 sps:$4 sm:$0xff]  }
 0x3a6   : > { %6051 = vmatpush1.bf16.msra.mxu1 %v8162_v15  ;;  %7398 = vmatpush3.bf16.msra.mxu0 %v8166_v40  ;;  %v5670_v50 = vpop.f32.mrf.mxu1  ;;  %v8186_v15 = vld [vmem:[#allocation10 + $0x50] ss:$28 sps:$4 sm:$0xff]   ;;  %v8190_v53 = vld [vmem:[#allocation10 + $0x1d8] ss:$28 sps:$4 sm:$0xff]  }
 0x3a7   : > { %8272 = vpow2.f32 %v7374_v51  ;;  %v7375_v9 = vmul.f32 -1.442695, %v5669_v37  ;;  %6052 = vmatprep.subr.bf16.mxu1 %v8169_v38  ;;  %7399 = vmatprep.subr.bf16.mxu0 %v8170_v1  ;;  %v5671_v49 = vadd.f32 %v5670_v50, %v5618_v48  ;;  %v8189_v40 = vld [vmem:[#allocation10 + $0xa94] ss:$28 sps:$4 sm:$0xff]   ;;  %v8194_v57 = vld [vmem:[#allocation10 + $0xddc] ss:$28 sps:$4 sm:$0xff]  }
 0x3a8   : > { %v5672_v56 = vpop.f32.mrf.mxu1  ;;  %v8187_v1 = vld [vmem:[#allocation10 + $0xa90] ss:$28 sps:$4 sm:$0xff]   ;;  %v8195_v48 = vld [vmem:[#allocation10 + $0xa60] ss:$28 sps:$4 sm:$0xff]   ;;  %v8192_v50 = vld [vmem:[#allocation10 + $0xdd8] ss:$28 sps:$4 sm:$0xff]  }
 0x3a9   : > { %8274 = vpow2.f32 %v7375_v9  ;;  %v7381_v27 = vmul.f32 -1.442695, %v5671_v49  ;;  %v5673_v11 = vadd.f32 %v5672_v56, %v5620_v63  ;;  %v8196_v63 = vld [vmem:[#allocation10 + $0x8a0] ss:$28 sps:$4 sm:$0xff]  }
 0x3aa   : > { %6053 = vmatpush1.bf16.msra.mxu1 %v8167_v28  ;;  %7400 = vmatpush3.bf16.msra.mxu0 %v8171_v0  ;;  %v8199_v9 = vld [vmem:[#allocation10 + $0xda4] ss:$28 sps:$4 sm:$0xff]  }
 0x3ab   : > { %8276 = vpow2.f32 %v7381_v27  ;;  %v7382_v55 = vmul.f32 -1.442695, %v5673_v11  ;;  %6054 = vmatprep.subr.bf16.mxu1 %v8174_v3  ;;  %7401 = vmatprep.subr.bf16.mxu0 %v8175_v32  ;;  %v8200_v3 = vld [vmem:[#allocation10 + $0xa28] ss:$28 sps:$4 sm:$0xff]   ;;  %v8197_v56 = vld [vmem:[#allocation10 + $0xda0] ss:$28 sps:$4 sm:$0xff]  }
 0x3ac   : > { %v8265_v22 = vpop.eup %8264  ;;  %v8201_v27 = vld [vmem:[#allocation10 + $0x868] ss:$28 sps:$4 sm:$0xff]  }
 0x3ad   : > { %v6379_v12 = vadd.f32 1.0, %v8265_v22  ;;  %8278 = vpow2.f32 %v7382_v55  ;;  %v8204_v11 = vld [vmem:[#allocation10 + $0xd6c] ss:$28 sps:$4 sm:$0xff]   ;;  %v8210_v22 = vld [vmem:[#allocation10 + $0x9b8] ss:$28 sps:$4 sm:$0xff]  }
 0x3ae   : > { %v8267_v58 = vpop.eup %8266  ;;  %6055 = vmatpush1.bf16.msra.mxu1 %v8172_v4  ;;  %7402 = vmatpush3.bf16.msra.mxu0 %v8176_v17  ;;  %v8205_v17 = vld [vmem:[#allocation10 + $0x9f0] ss:$28 sps:$4 sm:$0xff]  }
 0x3af   : > { %8280 = vrcp.f32 %v6379_v12  ;;  %v6380_v10 = vadd.f32 1.0, %v8267_v58  ;;  %6056 = vmatprep.subr.bf16.mxu1 %v8179_v8  ;;  %7403 = vmatprep.subr.bf16.mxu0 %v8180_v61  ;;  %v8206_v8 = vld [vmem:[#allocation10 + $0x830] ss:$28 sps:$4 sm:$0xff]  }
 0x3b0   : > { %v8269_v26 = vpop.eup %8268  ;;  %v8207_v58 = vld [vmem:[#allocation10 + $0xd30] ss:$28 sps:$4 sm:$0xff]  }
 0x3b1   : > { %8282 = vrcp.f32 %v6380_v10  ;;  %v6386_v52 = vadd.f32 1.0, %v8269_v26  ;;  %v8212_v26 = vld [vmem:[#allocation10 + $0xcf8] ss:$28 sps:$4 sm:$0xff]  }
 0x3b2   : > { %v8271_v54 = vpop.eup %8270  ;;  %6057 = vmatpush1.bf16.msra.mxu1 %v8177_v18  ;;  %7404 = vmatpush3.bf16.msra.mxu0 %v8181_v45  ;;  %v8211_v18 = vld [vmem:[#allocation10 + $0x7f8] ss:$28 sps:$4 sm:$0xff]  }
 0x3b3   : > { %8284 = vrcp.f32 %v6386_v52  ;;  %v6387_v6 = vadd.f32 1.0, %v8271_v54  ;;  %6058 = vmatprep.subr.bf16.mxu1 %v8184_v23  ;;  %7405 = vmatprep.subr.bf16.mxu0 %v8185_v59  ;;  %v8214_v45 = vld [vmem:[#allocation10 + $0xcfc] ss:$28 sps:$4 sm:$0xff]   ;;  %v8219_v52 = vld [vmem:[#allocation10 + $0xcc4] ss:$28 sps:$4 sm:$0xff]  }
 0x3b4   : > { %v8273_v2 = vpop.eup %8272  ;;  %v8215_v23 = vld [vmem:[#allocation10 + $0x980] ss:$28 sps:$4 sm:$0xff]  }
 0x3b5   : > { %8286 = vrcp.f32 %v6387_v6  ;;  %v6393_v14 = vadd.f32 1.0, %v8273_v2  ;;  %v8217_v54 = vld [vmem:[#allocation10 + $0xcc0] ss:$28 sps:$4 sm:$0xff]   ;;  %v8225_v6 = vld [vmem:[#allocation10 + $0x910] ss:$28 sps:$4 sm:$0xff]  }
 0x3b6   : > { %v8275_v38 = vpop.eup %8274  ;;  %6059 = vmatpush1.bf16.msra.mxu1 %v8182_v30  ;;  %7406 = vmatpush3.bf16.msra.mxu0 %v8186_v15  ;;  %v8221_v30 = vld [vmem:[#allocation10 + $0x788] ss:$28 sps:$4 sm:$0xff]   ;;  %v8229_v2 = vld [vmem:[#allocation10 + $0xc54] ss:$28 sps:$4 sm:$0xff]  }
 0x3b7   : > { %8288 = vrcp.f32 %v6393_v14  ;;  %v6394_v42 = vadd.f32 1.0, %v8275_v38  ;;  %6060 = vmatprep.subr.bf16.mxu1 %v8189_v40  ;;  %7407 = vmatprep.subr.bf16.mxu0 %v8190_v53  ;;  %v8224_v15 = vld [vmem:[#allocation10 + $0xc8c] ss:$28 sps:$4 sm:$0xff]   ;;  %v8230_v14 = vld [vmem:[#allocation10 + $0x8d8] ss:$28 sps:$4 sm:$0xff]  }
 0x3b8   : > { %v8277_v51 = vpop.eup %8276  ;;  %v8222_v40 = vld [vmem:[#allocation10 + $0xc88] ss:$28 sps:$4 sm:$0xff]   ;;  %v8226_v53 = vld [vmem:[#allocation10 + $0x750] ss:$28 sps:$4 sm:$0xff]  }
 0x3b9   : > { %8290 = vrcp.f32 %v6394_v42  ;;  %v6400_v37 = vadd.f32 1.0, %v8277_v51  ;;  %v8227_v38 = vld [vmem:[#allocation10 + $0xc50] ss:$28 sps:$4 sm:$0xff]   ;;  %v8233_v42 = vld [vmem:[#allocation10 + $0x520] ss:$28 sps:$4 sm:$0xff]  }
 0x3ba   : > { %v8279_v28 = vpop.eup %8278  ;;  %6061 = vmatpush1.bf16.msra.mxu1 %v8187_v1  ;;  %7408 = vmatpush3.bf16.msra.mxu0 %v8191_v36  ;;  %v8231_v1 = vld [vmem:[#allocation10 + $0x718] ss:$28 sps:$4 sm:$0xff]   ;;  %v8232_v36 = vld [vmem:[#allocation10 + $0x6e0] ss:$28 sps:$4 sm:$0xff]   ;;  %v8236_v51 = vld [vmem:[#allocation10 + $0x670] ss:$28 sps:$4 sm:$0xff]  }
 0x3bb   : > { %8292 = vrcp.f32 %v6400_v37  ;;  %v6401_v0 = vadd.f32 1.0, %v8279_v28  ;;  %6062 = vmatprep.subr.bf16.mxu1 %v8194_v57  ;;  %7449 = vmatprep.subr.bf16.mxu0 %v8195_v48  ;;  %v8234_v57 = vld [vmem:[#allocation10 + $0x6a8] ss:$28 sps:$4 sm:$0xff]   ;;  %v8237_v37 = vld [vmem:[#allocation10 + $0x4b0] ss:$28 sps:$4 sm:$0xff]  }
 0x3bc   : > { %v8281_v49 = vpop.eup %8280  ;;  %v8235_v48 = vld [vmem:[#allocation10 + $0x4e8] ss:$28 sps:$4 sm:$0xff]   ;;  %v8238_v28 = vld [vmem:[#allocation10 + $0x638] ss:$28 sps:$4 sm:$0xff]  }
 0x3bd   : > { %6463 = vst [vmem:[%s9127_s29] sm:$0xff] %v8281_v49  ;;  %8294 = vrcp.f32 %v6401_v0  ;;  %6132 = vmatmul.mubr.bf16.vlgmr.msra.gmra.mxu0 %v8964_v34  ;;  %v8202_v34 = vld [vmem:[#allocation10 + $0xd68] ss:$28 sps:$4 sm:$0xff]   ;;  %v8241_v0 = vld [vmem:[#allocation10 + $0x440] ss:$28 sps:$4 sm:$0xff]   ;;  %v8244_v49 = vld [vmem:[#allocation10 + $0x590] ss:$28 sps:$4 sm:$0xff]  }
 0x3be   : > { %v8283_v32 = vpop.eup %8282  ;;  %6063 = vmatpush2.bf16.msra.mxu1 %v8192_v50  ;;  %6139 = vmatprep.mubr.bf16.mxu0 %v8967_v41  ;;  %v8209_v41 = vld [vmem:[#allocation10 + $0xd34] ss:$28 sps:$4 sm:$0xff]   ;;  %v8240_v50 = vld [vmem:[#allocation10 + $0x600] ss:$28 sps:$4 sm:$0xff]  }
 0x3bf   : > { %6464 = vst [vmem:[%s9127_s29 + $0x8] sm:$0xff] %v8283_v32  ;;  %7450 = vmatpush3.bf16.msra.mxu0 %v8196_v63  ;;  %6064 = vmatprep.subr.bf16.mxu1 %v8199_v9  ;;  %v5709_v63 = vpop.f32.mrf.mxu0  ;;  %v8243_v9 = vld [vmem:[#allocation10 + $0x408] ss:$28 sps:$4 sm:$0xff]   ;;  %v8245_v32 = vld [vmem:[#allocation10 + $0x3d0] ss:$28 sps:$4 sm:$0xff]  }
 0x3c0   : > { %v8285_v4 = vpop.eup %8284  ;;  %7451 = vmatprep.subr.bf16.mxu0 %v8200_v3 }
 0x3c1   : > { %6470 = vst [vmem:[%s9127_s29 + $0x38] sm:$0xff] %v8285_v4  ;;  %v5711_v3 = vpop.f32.mrf.mxu0  ;;  %v8249_v4 = vld [vmem:[#allocation10 + $0xc20] ss:$28 sps:$4 sm:$0xff]  }
 0x3c2   : > { %v8287_v55 = vpop.eup %8286  ;;  %6065 = vmatpush2.bf16.msra.mxu1 %v8197_v56 }
 0x3c3   : > { %6471 = vst [vmem:[%s9127_s29 + $0x40] sm:$0xff] %v8287_v55  ;;  %7452 = vmatpush3.bf16.msra.mxu0 %v8201_v27  ;;  %6066 = vmatprep.subr.bf16.mxu1 %v8204_v11  ;;  %v5713_v56 = vpop.f32.mrf.mxu0  ;;  %v8248_v27 = vld [vmem:[#allocation10 + $0xde0] ss:$28 sps:$4 sm:$0xff]  }
 0x3c4   : > { %v8289_v61 = vpop.eup %8288  ;;  %7453 = vmatprep.subr.bf16.mxu0 %v8205_v17  ;;  %v8250_v17 = vld [vmem:[#allocation10 + $0xda8] ss:$28 sps:$4 sm:$0xff]  }
 0x3c5   : > { %6477 = vst [vmem:[%s9127_s29 + $0x70] sm:$0xff] %v8289_v61  ;;  %6140 = vmatmul.mubr.bf16.gmra.mxu0 %v8973_v62  ;;  %v8216_v62 = vld [vmem:[#allocation10 + $0x7c0] ss:$28 sps:$4 sm:$0xff]   ;;  %v5715_v11 = vpop.f32.mrf.mxu0 }
 0x3c6   : > { %v8291_v12 = vpop.eup %8290  ;;  %6067 = vmatpush2.bf16.msra.mxu1 %v8202_v34  ;;  %6229 = vmatprep.mubr.bf16.mxu0 %v8998_v24  ;;  %v8220_v24 = vld [vmem:[#allocation10 + $0x948] ss:$28 sps:$4 sm:$0xff]  }
 0x3c7   : > { %6478 = vst [vmem:[%s9127_s29 + $0x78] sm:$0xff] %v8291_v12  ;;  %7454 = vmatpush3.bf16.msra.mxu0 %v8206_v8  ;;  %6068 = vmatprep.subr.bf16.mxu1 %v8209_v41  ;;  %v5719_v55 = vpop.f32.mrf.mxu0  ;;  %v8251_v8 = vld [vmem:[#allocation10 + $0xbe8] ss:$28 sps:$4 sm:$0xff]   ;;  %v8252_v41 = vld [vmem:[#allocation10 + $0xd70] ss:$28 sps:$4 sm:$0xff]  }
 0x3c8   : > { %v8293_v10 = vpop.eup %8292  ;;  %7455 = vmatprep.subr.bf16.mxu0 %v8210_v22  ;;  %v8253_v12 = vld [vmem:[#allocation10 + $0xbb0] ss:$28 sps:$4 sm:$0xff]  }
 0x3c9   : > { %6484 = vst [vmem:[%s9127_s29 + $0xa8] sm:$0xff] %v8293_v10  ;;  %v5721_v61 = vpop.f32.mrf.mxu0 }
 0x3ca   : > { %v8295_v59 = vpop.eup %8294  ;;  %6069 = vmatpush2.bf16.msra.mxu1 %v8207_v58  ;;  %v8254_v58 = vld [vmem:[#allocation10 + $0xd38] ss:$28 sps:$4 sm:$0xff]  }
 0x3cb   : > { %6485 = vst [vmem:[%s9127_s29 + $0xb0] sm:$0xff] %v8295_v59  ;;  %7456 = vmatpush3.bf16.msra.mxu0 %v8211_v18  ;;  %6070 = vmatprep.subr.bf16.mxu1 %v8214_v45  ;;  %v5723_v18 = vpop.f32.mrf.mxu0 }
 0x3cc   : > { %7457 = vmatprep.subr.bf16.mxu0 %v8215_v23 }
 0x3cd   : > { %v5725_v10 = vpop.f32.mrf.mxu0 }
 0x3ce   : > { %6071 = vmatpush2.bf16.msra.mxu1 %v8212_v26  ;;  %v8257_v26 = vld [vmem:[#allocation10 + $0xb40] ss:$28 sps:$4 sm:$0xff]  }
 0x3cf   : > { %7458 = vmatpush3.bf16.msra.mxu0 %v8216_v62  ;;  %6072 = vmatprep.subr.bf16.mxu1 %v8219_v52  ;;  %v8258_v62 = vld [vmem:[#allocation10 + $0xcc8] ss:$28 sps:$4 sm:$0xff]  }
 0x3d0   : > { %7459 = vmatprep.subr.bf16.mxu0 %v8220_v24 }
 0x3d2   : > { %6073 = vmatpush2.bf16.msra.mxu1 %v8217_v54  ;;  %v8259_v54 = vld [vmem:[#allocation10 + $0xb08] ss:$28 sps:$4 sm:$0xff]  }
 0x3d3   : > { %7460 = vmatpush3.bf16.msra.mxu0 %v8221_v30  ;;  %6074 = vmatprep.subr.bf16.mxu1 %v8224_v15  ;;  %v8260_v30 = vld [vmem:[#allocation10 + $0xc90] ss:$28 sps:$4 sm:$0xff]   ;;  %v3139_v15 = vrot.slane %v9076_v31, %v8841_v21 }
 0x3d4   : > { %7461 = vmatprep.subr.bf16.mxu0 %v8225_v6 }
 0x3d6   : > { %6075 = vmatpush2.bf16.msra.mxu1 %v8222_v40  ;;  %v8261_v40 = vld [vmem:[#allocation10 + $0xad0] ss:$28 sps:$4 sm:$0xff]  }
 0x3d7   : > { %7462 = vmatpush3.bf16.msra.mxu0 %v8226_v53  ;;  %6076 = vmatprep.subr.bf16.mxu1 %v8229_v2  ;;  %v8262_v2 = vld [vmem:[#allocation10 + $0xc58] ss:$28 sps:$4 sm:$0xff]  }
 0x3d8   : > { %7463 = vmatprep.subr.bf16.mxu0 %v8230_v14 }
 0x3da   : > { %6077 = vmatpush2.bf16.msra.mxu1 %v8227_v38  ;;  %v5762_v34 = vpop.f32.mrf.mxu1  ;;  %v5815_v59 = vpop.f32.mrf.mxu0  ;;  %v5712_v38 = vadd.f32 %v5711_v3, %v3139_v15 }
 0x3db   : > { %7464 = vmatpush3.bf16.msra.mxu0 %v8231_v1  ;;  %7421 = vmatprep.subr.bf16.mxu1 %v8232_v36 }
 0x3dc   : > { %v5764_v22 = vpop.f32.mrf.mxu1  ;;  %v5817_v24 = vpop.f32.mrf.mxu0 }
 0x3dd   : > { %6079 = vmatmul.mubr.bf16.vlgmr.msra.gmra.mxu1 %v9019_v5 }
 0x3de   : > { %6230 = vmatmul.mubr.bf16.vlgmr.msra.gmra.mxu0 %v9000_v29  ;;  %6088 = vmatprep.mubr.bf16.mxu1 %v9025_v39  ;;  %v8239_v29 = vld [vmem:[#allocation10 + $0x478] ss:$28 sps:$4 sm:$0xff]   ;;  %v5766_v45 = vpop.f32.mrf.mxu1  ;;  %v5819_v6 = vpop.f32.mrf.mxu0 }
 0x3df   : > { %7422 = vmatpush3.bf16.msra.mxu1 %v8233_v42  ;;  %6237 = vmatprep.mubr.bf16.mxu0 %v9004_v47  ;;  %v8242_v47 = vld [vmem:[#allocation10 + $0x5c8] ss:$28 sps:$4 sm:$0xff]   ;;  %v8263_v42 = vld [vmem:[#allocation10 + $0xa98] ss:$28 sps:$4 sm:$0xff]  }
 0x3e0   : > { %7423 = vmatprep.subr.bf16.mxu1 %v8234_v57  ;;  %v5768_v23 = vpop.f32.mrf.mxu1  ;;  %v5821_v36 = vpop.f32.mrf.mxu0 }
 0x3e2   : > { %v5772_v52 = vpop.f32.mrf.mxu1 }
 0x3e3   : > { %7424 = vmatpush3.bf16.msra.mxu1 %v8235_v48 }
 0x3e4   : > { %7425 = vmatprep.subr.bf16.mxu1 %v8236_v51  ;;  %v5716_v51 = vadd.f32 %v5715_v11, %v3139_v15 }
 0x3e5   : > { %6089 = vmatmul.mubr.bf16.gmra.mxu1 %v9027_v44 }
 0x3e6   : > { %6238 = vmatmul.mubr.bf16.gmra.mxu0 %v9006_v35  ;;  %6180 = vmatprep.mubr.bf16.mxu1 %v8977_v19  ;;  %v8246_v35 = vld [vmem:[#allocation10 + $0x558] ss:$28 sps:$4 sm:$0xff]  }
 0x3e7   : > { %7426 = vmatpush3.bf16.msra.mxu1 %v8237_v37  ;;  %v8247_v19 = vld [vmem:[#allocation10 + $0x398] ss:$28 sps:$4 sm:$0xff]  }
 0x3e8   : > { %7427 = vmatprep.subr.bf16.mxu1 %v8238_v28 }
 0x3eb   : > { %7428 = vmatpush3.bf16.msra.mxu1 %v8239_v29  ;;  %v5825_v29 = vpop.f32.mrf.mxu0 }
 0x3ec   : > { %7429 = vmatprep.subr.bf16.mxu1 %v8240_v50 }
 0x3ed   : > { %v5827_v11 = vpop.f32.mrf.mxu0 }
 0x3ef   : > { %7430 = vmatpush3.bf16.msra.mxu1 %v8241_v0 }
 0x3f0   : > { %7431 = vmatprep.subr.bf16.mxu1 %v8242_v47  ;;  %v5769_v47 = vadd.f32 %v5768_v23, %v5716_v51 }
 0x3f3   : > { %7432 = vmatpush3.bf16.msra.mxu1 %v8243_v9  ;;  %v5722_v9 = vadd.f32 %v5721_v61, %v3139_v15 }
 0x3f4   : > { %7433 = vmatprep.subr.bf16.mxu1 %v8244_v49 }
 0x3f7   : > { %7434 = vmatpush3.bf16.msra.mxu1 %v8245_v32 }
 0x3f8   : > { %7435 = vmatprep.subr.bf16.mxu1 %v8246_v35 }
 0x3fb   : > { %7436 = vmatpush3.bf16.msra.mxu1 %v8247_v19 }
 0x3fc   : > { %7477 = vmatprep.subr.bf16.mxu1 %v8248_v27 }
 0x3fe   : > { %6181 = vmatmul.mubr.bf16.vlgmr.msra.gmra.mxu1 %v8979_v7  ;;  %v8255_v7 = vld [vmem:[#allocation10 + $0xb78] ss:$28 sps:$4 sm:$0xff]  }
 0x3ff   : > { %6188 = vmatprep.mubr.bf16.mxu1 %v8984_v43  ;;  %7478 = vmatpush3.bf16.msra.mxu1 %v8249_v4  ;;  %v8256_v43 = vld [vmem:[#allocation10 + $0xd00] ss:$28 sps:$4 sm:$0xff]  }
 0x400   : > { %7479 = vmatprep.subr.bf16.mxu1 %v8250_v17  ;;  %v5822_v17 = vadd.f32 %v5821_v36, %v5769_v47 }
 0x403   : > { %7480 = vmatpush3.bf16.msra.mxu1 %v8251_v8  ;;  %v5726_v8 = vadd.f32 %v5725_v10, %v3139_v15 }
 0x404   : > { %7481 = vmatprep.subr.bf16.mxu1 %v8252_v41 }
 0x406   : > { %6189 = vmatmul.mubr.bf16.gmra.mxu1 %v8986_v46  ;;  %v3135_v46 = vrot.slane %v9076_v31, %v8838_v20  ;;  %v5765_v20 = vadd.f32 %v5764_v22, %v5712_v38 }
 0x407   : > { %7482 = vmatpush3.bf16.msra.mxu1 %v8253_v12  ;;  %6278 = vmatprep.mubr.bf16.mxu1 %v9017_v60  ;;  %v5774_v60 = vpop.f32.mrf.mxu1 }
 0x408   : > { %7483 = vmatprep.subr.bf16.mxu1 %v8254_v58  ;;  %v5710_v53 = vadd.f32 %v5709_v63, %v3135_v46  ;;  %v5714_v57 = vadd.f32 %v5713_v56, %v3135_v46  ;;  %v5720_v21 = vadd.f32 %v5719_v55, %v3135_v46  ;;  %v5818_v0 = vadd.f32 %v5817_v24, %v5765_v20 }
 0x409   : > { %v5776_v14 = vpop.f32.mrf.mxu1  ;;  %v5724_v19 = vadd.f32 %v5723_v18, %v3135_v46  ;;  %v5775_v27 = vadd.f32 %v5774_v60, %v5722_v9 }
 0x40a   : > { %v5763_v1 = vadd.f32 %v5762_v34, %v5710_v53  ;;  %v5767_v28 = vadd.f32 %v5766_v45, %v5714_v57  ;;  %v5773_v49 = vadd.f32 %v5772_v52, %v5720_v21 }
 0x40b   : > { %7484 = vmatpush3.bf16.msra.mxu1 %v8255_v7  ;;  %v5778_v48 = vpop.f32.mrf.mxu1  ;;  %v5777_v22 = vadd.f32 %v5776_v14, %v5724_v19  ;;  %v5828_v45 = vadd.f32 %v5827_v11, %v5775_v27 }
 0x40c   : > { %7485 = vmatprep.subr.bf16.mxu1 %v8256_v43  ;;  %v5816_v37 = vadd.f32 %v5815_v59, %v5763_v1  ;;  %v5820_v32 = vadd.f32 %v5819_v6, %v5767_v28  ;;  %v5826_v41 = vadd.f32 %v5825_v29, %v5773_v49  ;;  %v5779_v18 = vadd.f32 %v5778_v48, %v5726_v8 }
 0x40f   : > { %7486 = vmatpush3.bf16.msra.mxu1 %v8257_v26 }
 0x410   : > { %7487 = vmatprep.subr.bf16.mxu1 %v8258_v62 }
 0x413   : > { %7488 = vmatpush3.bf16.msra.mxu1 %v8259_v54 }
 0x414   : > { %7489 = vmatprep.subr.bf16.mxu1 %v8260_v30 }
 0x417   : > { %7490 = vmatpush3.bf16.msra.mxu1 %v8261_v40 }
 0x418   : > { %7491 = vmatprep.subr.bf16.mxu1 %v8262_v2 }
 0x41b   : > { %7492 = vmatpush3.bf16.msra.mxu1 %v8263_v42  ;;  %v5868_v50 = vpop.f32.mrf.mxu1 }
 0x41c   : > { %v5869_v63 = vadd.f32 %v5868_v50, %v5816_v37 }
 0x41d   : > { %v5870_v3 = vpop.f32.mrf.mxu1 }
 0x41e   : > { %v7362_v35 = vmul.f32 -1.442695, %v5869_v63  ;;  %6279 = vmatmul.mubr.bf16.vlgmr.msra.gmra.mxu1 %v9019_v5  ;;  %v5871_v56 = vadd.f32 %v5870_v3, %v5818_v0  ;;  %v5829_v5 = vpop.f32.mrf.mxu0 }
 0x41f   : > { %6286 = vmatprep.mubr.bf16.mxu1 %v9025_v39  ;;  %v5872_v4 = vpop.f32.mrf.mxu1  ;;  %v5830_v59 = vadd.f32 %v5829_v5, %v5777_v22  ;;  %v3147_v5 = vrot.slane %v9076_v31, %v840_v33 }
 0x420   : > { %8296 = vpow2.f32 %v7362_v35  ;;  %v7363_v55 = vmul.f32 -1.442695, %v5871_v56  ;;  %v5873_v34 = vadd.f32 %v5872_v4, %v5820_v32  ;;  %v5831_v62 = vpop.f32.mrf.mxu0 }
 0x421   : > { %v5874_v61 = vpop.f32.mrf.mxu1  ;;  %v5832_v24 = vadd.f32 %v5831_v62, %v5779_v18 }
 0x422   : > { %8298 = vpow2.f32 %v7363_v55  ;;  %v7369_v12 = vmul.f32 -1.442695, %v5873_v34  ;;  %v5875_v58 = vadd.f32 %v5874_v61, %v5822_v17  ;;  %v5921_v32 = vpop.f32.mrf.mxu0 }
 0x423   : > { %v5878_v7 = vpop.f32.mrf.mxu1 }
 0x424   : > { %8300 = vpow2.f32 %v7369_v12  ;;  %v7370_v43 = vmul.f32 -1.442695, %v5875_v58  ;;  %v5879_v23 = vadd.f32 %v5878_v7, %v5826_v41  ;;  %v5923_v35 = vpop.f32.mrf.mxu0  ;;  %v3143_v58 = vrot.slane %v9076_v31, %v836_v13 }
 0x425   : > { %v5880_v39 = vpop.f32.mrf.mxu1 }
 0x426   : > { %8302 = vpow2.f32 %v7370_v43  ;;  %v7376_v26 = vmul.f32 -1.442695, %v5879_v23  ;;  %6287 = vmatmul.mubr.bf16.gmra.mxu1 %v9027_v44  ;;  %v5881_v10 = vadd.f32 %v5880_v39, %v5828_v45  ;;  %v5925_v56 = vpop.f32.mrf.mxu0  ;;  %v5922_v18 = vadd.f32 %v5921_v32, %v3143_v58 }
 0x427   : > { %v5882_v52 = vpop.f32.mrf.mxu1  ;;  %v5924_v23 = vadd.f32 %v5923_v35, %v3147_v5 }
 0x428   : > { %8304 = vpow2.f32 %v7376_v26  ;;  %v7377_v54 = vmul.f32 -1.442695, %v5881_v10  ;;  %v5883_v46 = vadd.f32 %v5882_v52, %v5830_v59  ;;  %v5927_v19 = vpop.f32.mrf.mxu0  ;;  %v5926_v26 = vadd.f32 %v5925_v56, %v3143_v58 }
 0x429   : > { %v5884_v30 = vpop.f32.mrf.mxu1  ;;  %v5928_v52 = vadd.f32 %v5927_v19, %v3147_v5 }
 0x42a   : > { %8306 = vpow2.f32 %v7377_v54  ;;  %v7383_v60 = vmul.f32 -1.442695, %v5883_v46  ;;  %v5885_v15 = vadd.f32 %v5884_v30, %v5832_v24  ;;  %v5931_v27 = vpop.f32.mrf.mxu0 }
 0x42b   : > { %v5932_v46 = vadd.f32 %v5931_v27, %v3143_v58 }
 0x42c   : > { %8308 = vpow2.f32 %v7383_v60  ;;  %v7384_v6 = vmul.f32 -1.442695, %v5885_v15  ;;  %v5933_v4 = vpop.f32.mrf.mxu0 }
 0x42d   : > { %v8297_v40 = vpop.eup %8296 }
 0x42e   : > { %v6381_v53 = vadd.f32 1.0, %v8297_v40  ;;  %8310 = vpow2.f32 %v7384_v6  ;;  %v5935_v55 = vpop.f32.mrf.mxu0  ;;  %v5934_v40 = vadd.f32 %v5933_v4, %v3147_v5 }
 0x42f   : > { %v8299_v2 = vpop.eup %8298 }
 0x430   : > { %8312 = vrcp.f32 %v6381_v53  ;;  %v6382_v14 = vadd.f32 1.0, %v8299_v2  ;;  %v5937_v8 = vpop.f32.mrf.mxu0 }
 0x431   : > { %v8301_v44 = vpop.eup %8300 }
 0x432   : > { %8314 = vrcp.f32 %v6382_v14  ;;  %v6388_v38 = vadd.f32 1.0, %v8301_v44  ;;  %v5936_v44 = vadd.f32 %v5935_v55, %v3143_v58 }
 0x433   : > { %v8303_v1 = vpop.eup %8302 }
 0x434   : > { %8316 = vrcp.f32 %v6388_v38  ;;  %v6389_v36 = vadd.f32 1.0, %v8303_v1 }
 0x435   : > { %v8305_v42 = vpop.eup %8304 }
 0x436   : > { %8318 = vrcp.f32 %v6389_v36  ;;  %v6395_v57 = vadd.f32 1.0, %v8305_v42 }
 0x437   : > { %v8307_v20 = vpop.eup %8306 }
 0x438   : > { %8320 = vrcp.f32 %v6395_v57  ;;  %v6396_v48 = vadd.f32 1.0, %v8307_v20 }
 0x439   : > { %v8309_v51 = vpop.eup %8308 }
 0x43a   : > { %8322 = vrcp.f32 %v6396_v48  ;;  %v6402_v37 = vadd.f32 1.0, %v8309_v51  ;;  %v5938_v48 = vadd.f32 %v5937_v8, %v3147_v5 }
 0x43b   : > { %v8311_v28 = vpop.eup %8310 }
 0x43c   : > { %8324 = vrcp.f32 %v6402_v37  ;;  %v6403_v21 = vadd.f32 1.0, %v8311_v28 }
 0x43d   : > { %v8313_v29 = vpop.eup %8312 }
 0x43e   : > { %6465 = vst [vmem:[%s9127_s29 + $0x10] sm:$0xff] %v8313_v29  ;;  %8326 = vrcp.f32 %v6403_v21 }
 0x43f   : > { %v8315_v50 = vpop.eup %8314 }
 0x440   : > { %6466 = vst [vmem:[%s9127_s29 + $0x18] sm:$0xff] %v8315_v50 }
 0x441   : > { %v8317_v0 = vpop.eup %8316 }
 0x442   : > { %6472 = vst [vmem:[%s9127_s29 + $0x48] sm:$0xff] %v8317_v0 }
 0x443   : > { %v8319_v47 = vpop.eup %8318 }
 0x444   : > { %6473 = vst [vmem:[%s9127_s29 + $0x50] sm:$0xff] %v8319_v47 }
 0x445   : > { %v8321_v63 = vpop.eup %8320 }
 0x446   : > { %6479 = vst [vmem:[%s9127_s29 + $0x80] sm:$0xff] %v8321_v63 }
 0x447   : > { %v8323_v9 = vpop.eup %8322 }
 0x448   : > { %6480 = vst [vmem:[%s9127_s29 + $0x88] sm:$0xff] %v8323_v9 }
 0x449   : > { %v8325_v49 = vpop.eup %8324 }
 0x44a   : > { %6486 = vst [vmem:[%s9127_s29 + $0xb8] sm:$0xff] %v8325_v49 }
 0x44b   : > { %v8327_v3 = vpop.eup %8326 }
 0x44c   : > { %6487 = vst [vmem:[%s9127_s29 + $0xc0] sm:$0xff] %v8327_v3 }
 0x45c   : > { %v5974_v11 = vpop.f32.mrf.mxu1  ;;  %v6027_v61 = vpop.f32.mrf.mxu0 }
 0x45d   : > { %v5975_v39 = vadd.f32 %v5974_v11, %v5922_v18 }
 0x45e   : > { %v5976_v17 = vpop.f32.mrf.mxu1  ;;  %v6029_v12 = vpop.f32.mrf.mxu0 }
 0x45f   : > { %v5977_v10 = vadd.f32 %v5976_v17, %v5924_v23  ;;  %v6028_v24 = vadd.f32 %v6027_v61, %v5975_v39 }
 0x460   : > { %v5978_v34 = vpop.f32.mrf.mxu1  ;;  %v6031_v7 = vpop.f32.mrf.mxu0 }
 0x461   : > { %v5979_v54 = vadd.f32 %v5978_v34, %v5926_v26  ;;  %v6030_v60 = vadd.f32 %v6029_v12, %v5977_v10 }
 0x462   : > { %v5980_v41 = vpop.f32.mrf.mxu1  ;;  %v6033_v59 = vpop.f32.mrf.mxu0 }
 0x463   : > { %v5981_v15 = vadd.f32 %v5980_v41, %v5928_v52  ;;  %v6032_v53 = vadd.f32 %v6031_v7, %v5979_v54 }
 0x464   : > { %v5984_v22 = vpop.f32.mrf.mxu1  ;;  %v6037_v30 = vpop.f32.mrf.mxu0 }
 0x465   : > { %v5985_v33 = vadd.f32 %v5984_v22, %v5932_v46  ;;  %v6034_v42 = vadd.f32 %v6033_v59, %v5981_v15 }
 0x466   : > { %v5986_v45 = vpop.f32.mrf.mxu1  ;;  %v6039_v1 = vpop.f32.mrf.mxu0 }
 0x467   : > { %v5987_v38 = vadd.f32 %v5986_v45, %v5934_v40  ;;  %v6038_v51 = vadd.f32 %v6037_v30, %v5985_v33 }
 0x468   : > { %v5988_v43 = vpop.f32.mrf.mxu1  ;;  %v6041_v0 = vpop.f32.mrf.mxu0 }
 0x469   : > { %v5989_v28 = vadd.f32 %v5988_v43, %v5936_v44  ;;  %v6040_v50 = vadd.f32 %v6039_v1, %v5987_v38 }
 0x46a   : > { %v5990_v62 = vpop.f32.mrf.mxu1  ;;  %v6043_v19 = vpop.f32.mrf.mxu0 }
 0x46b   : > { %v5991_v63 = vadd.f32 %v5990_v62, %v5938_v48  ;;  %v6042_v32 = vadd.f32 %v6041_v0, %v5989_v28 }
 0x46d   : > { %v6044_v11 = vadd.f32 %v6043_v19, %v5991_v63 }
 0x47d   : > { %v7409_v41 = vpop.f32.mrf.mxu0 }
 0x47f   : > { %v7410_v45 = vpop.f32.mrf.mxu0 }
 0x481   : > { %v7412_v23 = vpop.f32.mrf.mxu0 }
 0x483   : > { %v7413_v62 = vpop.f32.mrf.mxu0 }
 0x485   : > { %v7415_v30 = vpop.f32.mrf.mxu0 }
 0x487   : > { %v7416_v40 = vpop.f32.mrf.mxu0 }
 0x49d   : > { %v6080_v13 = vpop.f32.mrf.mxu1 }
 0x49e   : > { %v6081_v6 = vadd.f32 %v6080_v13, %v6028_v24 }
 0x49f   : > { %v6082_v31 = vpop.f32.mrf.mxu1 }
 0x4a0   : > { %v7364_v2 = vmul.f32 -1.442695, %v6081_v6  ;;  %v6083_v14 = vadd.f32 %v6082_v31, %v6030_v60 }
 0x4a1   : > { %v6084_v36 = vpop.f32.mrf.mxu1 }
 0x4a2   : > { %8328 = vpow2.f32 %v7364_v2  ;;  %v7365_v57 = vmul.f32 -1.442695, %v6083_v14  ;;  %v6085_v20 = vadd.f32 %v6084_v36, %v6032_v53  ;;  %v7418_v2 = vpop.f32.mrf.mxu0 }
 0x4a3   : > { %v6086_v37 = vpop.f32.mrf.mxu1 }
 0x4a4   : > { %8330 = vpow2.f32 %v7365_v57  ;;  %v7371_v21 = vmul.f32 -1.442695, %v6085_v20  ;;  %v6087_v29 = vadd.f32 %v6086_v37, %v6034_v42  ;;  %v7419_v1 = vpop.f32.mrf.mxu0 }
 0x4a5   : > { %v6090_v47 = vpop.f32.mrf.mxu1 }
 0x4a6   : > { %8332 = vpow2.f32 %v7371_v21  ;;  %v7372_v9 = vmul.f32 -1.442695, %v6087_v29  ;;  %v6091_v49 = vadd.f32 %v6090_v47, %v6038_v51  ;;  %v7465_v42 = vpop.f32.mrf.mxu0  ;;  %v8376_v21 = vld [vmem:[#allocation11] sm:$0xff] }
 0x4a7   : > { %v6092_v3 = vpop.f32.mrf.mxu1  ;;  %v3151_v29 = vrot.slane %v8376_v21, %v844_v25 }
 0x4a8   : > { %8334 = vpow2.f32 %v7372_v9  ;;  %v7378_v35 = vmul.f32 -1.442695, %v6091_v49  ;;  %v6093_v56 = vadd.f32 %v6092_v3, %v6040_v50  ;;  %v7466_v48 = vpop.f32.mrf.mxu0  ;;  %v7411_v50 = vadd.f32 %v7410_v45, %v7409_v41 }
 0x4a9   : > { %v6094_v27 = vpop.f32.mrf.mxu1  ;;  %v7414_v9 = vadd.f32 %v7413_v62, %v7412_v23 }
 0x4aa   : > { %8336 = vpow2.f32 %v7378_v35  ;;  %v7379_v4 = vmul.f32 -1.442695, %v6093_v56  ;;  %v6095_v17 = vadd.f32 %v6094_v27, %v6042_v32  ;;  %v7468_v37 = vpop.f32.mrf.mxu0  ;;  %v6134_v49 = vadd.f32 %v7411_v50, %v3151_v29 }
 0x4ab   : > { %v6096_v55 = vpop.f32.mrf.mxu1  ;;  %v6137_v19 = vadd.f32 %v7414_v9, %v3151_v29 }
 0x4ac   : > { %8338 = vpow2.f32 %v7379_v4  ;;  %v7385_v34 = vmul.f32 -1.442695, %v6095_v17  ;;  %v6097_v8 = vadd.f32 %v6096_v55, %v6044_v11  ;;  %v7469_v0 = vpop.f32.mrf.mxu0  ;;  %v7417_v11 = vadd.f32 %v7416_v40, %v7415_v30 }
 0x4ad   : > { %v7467_v4 = vadd.f32 %v7466_v48, %v7465_v42  ;;  %v7470_v41 = vadd.f32 %v7469_v0, %v7468_v37 }
 0x4ae   : > { %8340 = vpow2.f32 %v7385_v34  ;;  %v7386_v61 = vmul.f32 -1.442695, %v6097_v8  ;;  %v7471_v3 = vpop.f32.mrf.mxu0 }
 0x4af   : > { %v8329_v22 = vpop.eup %8328 }
 0x4b0   : > { %v6383_v12 = vadd.f32 1.0, %v8329_v22  ;;  %8342 = vpow2.f32 %v7386_v61  ;;  %v7472_v17 = vpop.f32.mrf.mxu0  ;;  %v6142_v22 = vadd.f32 %v7417_v11, %v3151_v29 }
 0x4b1   : > { %v8331_v58 = vpop.eup %8330 }
 0x4b2   : > { %8344 = vrcp.f32 %v6383_v12  ;;  %v6384_v5 = vadd.f32 1.0, %v8331_v58  ;;  %v7420_v12 = vadd.f32 %v7419_v1, %v7418_v2  ;;  %v7474_v45 = vpop.f32.mrf.mxu0 }
 0x4b3   : > { %v8333_v7 = vpop.eup %8332 }
 0x4b4   : > { %8346 = vrcp.f32 %v6384_v5  ;;  %v6390_v18 = vadd.f32 1.0, %v8333_v7 }
 0x4b5   : > { %v8335_v43 = vpop.eup %8334 }
 0x4b6   : > { %8348 = vrcp.f32 %v6390_v18  ;;  %v6391_v39 = vadd.f32 1.0, %v8335_v43 }
 0x4b7   : > { %v8337_v59 = vpop.eup %8336 }
 0x4b8   : > { %8350 = vrcp.f32 %v6391_v39  ;;  %v6397_v26 = vadd.f32 1.0, %v8337_v59 }
 0x4b9   : > { %v8339_v10 = vpop.eup %8338 }
 0x4ba   : > { %8352 = vrcp.f32 %v6397_v26  ;;  %v6398_v52 = vadd.f32 1.0, %v8339_v10  ;;  %v6145_v26 = vadd.f32 %v7420_v12, %v3151_v29  ;;  %v7473_v10 = vadd.f32 %v7472_v17, %v7471_v3 }
 0x4bb   : > { %v8341_v24 = vpop.eup %8340 }
 0x4bc   : > { %8354 = vrcp.f32 %v6398_v52  ;;  %v6404_v54 = vadd.f32 1.0, %v8341_v24  ;;  %v7475_v52 = vpop.f32.mrf.mxu0 }
 0x4bd   : > { %v8343_v46 = vpop.eup %8342 }
 0x4be   : > { %8356 = vrcp.f32 %v6404_v54  ;;  %v6405_v13 = vadd.f32 1.0, %v8343_v46  ;;  %v7437_v15 = vpop.f32.mrf.mxu1 }
 0x4bf   : > { %v8345_v60 = vpop.eup %8344 }
 0x4c0   : > { %6467 = vst [vmem:[%s9127_s29 + $0x20] sm:$0xff] %v8345_v60  ;;  %8358 = vrcp.f32 %v6405_v13  ;;  %v7438_v31 = vpop.f32.mrf.mxu1 }
 0x4c1   : > { %v8347_v6 = vpop.eup %8346  ;;  %v7439_v63 = vadd.f32 %v7438_v31, %v7437_v15  ;;  %v7476_v15 = vadd.f32 %v7475_v52, %v7474_v45 }
 0x4c2   : > { %6468 = vst [vmem:[%s9127_s29 + $0x28] sm:$0xff] %v8347_v6  ;;  %v7440_v44 = vpop.f32.mrf.mxu1 }
 0x4c3   : > { %v8349_v33 = vpop.eup %8348  ;;  %v6183_v56 = vadd.f32 %v7439_v63, %v6134_v49 }
 0x4c4   : > { %6474 = vst [vmem:[%s9127_s29 + $0x58] sm:$0xff] %v8349_v33  ;;  %v7441_v57 = vpop.f32.mrf.mxu1 }
 0x4c5   : > { %v8351_v53 = vpop.eup %8350  ;;  %v7442_v32 = vadd.f32 %v7441_v57, %v7440_v44  ;;  %v6232_v16 = vadd.f32 %v7467_v4, %v6183_v56 }
 0x4c6   : > { %6475 = vst [vmem:[%s9127_s29 + $0x60] sm:$0xff] %v8351_v53  ;;  %v7443_v51 = vpop.f32.mrf.mxu1 }
 0x4c7   : > { %v8353_v14 = vpop.eup %8352  ;;  %v6186_v55 = vadd.f32 %v7442_v32, %v6137_v19 }
 0x4c8   : > { %6481 = vst [vmem:[%s9127_s29 + $0x90] sm:$0xff] %v8353_v14  ;;  %v7444_v28 = vpop.f32.mrf.mxu1 }
 0x4c9   : > { %v8355_v38 = vpop.eup %8354  ;;  %v7445_v8 = vadd.f32 %v7444_v28, %v7443_v51  ;;  %v6235_v5 = vadd.f32 %v7470_v41, %v6186_v55 }
 0x4ca   : > { %6482 = vst [vmem:[%s9127_s29 + $0x98] sm:$0xff] %v8355_v38  ;;  %v7446_v47 = vpop.f32.mrf.mxu1 }
 0x4cb   : > { %v8357_v36 = vpop.eup %8356  ;;  %v6191_v18 = vadd.f32 %v7445_v8, %v6142_v22 }
 0x4cc   : > { %6488 = vst [vmem:[%s9127_s29 + $0xc8] sm:$0xff] %v8357_v36  ;;  %v7447_v35 = vpop.f32.mrf.mxu1 }
 0x4cd   : > { %v8359_v20 = vpop.eup %8358  ;;  %v7448_v43 = vadd.f32 %v7447_v35, %v7446_v47  ;;  %v6240_v30 = vadd.f32 %v7473_v10, %v6191_v18 }
 0x4ce   : > { %6489 = vst [vmem:[%s9127_s29 + $0xd0] sm:$0xff] %v8359_v20 }
 0x4cf   : > { %v6194_v54 = vadd.f32 %v7448_v43, %v6145_v26 }
 0x4d1   : > { %v6243_v31 = vadd.f32 %v7476_v15, %v6194_v54 }
 0x4de   : > { %v7493_v27 = vpop.f32.mrf.mxu1 }
 0x4e0   : > { %v7494_v34 = vpop.f32.mrf.mxu1 }
 0x4e1   : > { %v7495_v25 = vadd.f32 %v7494_v34, %v7493_v27 }
 0x4e2   : > { %v7496_v61 = vpop.f32.mrf.mxu1 }
 0x4e3   : > { %v6281_v58 = vadd.f32 %v7495_v25, %v6232_v16 }
 0x4e4   : > { %v7497_v7 = vpop.f32.mrf.mxu1 }
 0x4e5   : > { %v7366_v23 = vmul.f32 -1.442695, %v6281_v58  ;;  %v7498_v39 = vadd.f32 %v7497_v7, %v7496_v61 }
 0x4e6   : > { %v7499_v59 = vpop.f32.mrf.mxu1 }
 0x4e7   : > { %8360 = vpow2.f32 %v7366_v23  ;;  %v6284_v62 = vadd.f32 %v7498_v39, %v6235_v5 }
 0x4e8   : > { %v7500_v24 = vpop.f32.mrf.mxu1 }
 0x4e9   : > { %v7373_v46 = vmul.f32 -1.442695, %v6284_v62  ;;  %v7501_v13 = vadd.f32 %v7500_v24, %v7499_v59 }
 0x4ea   : > { %v7502_v60 = vpop.f32.mrf.mxu1 }
 0x4eb   : > { %8362 = vpow2.f32 %v7373_v46  ;;  %v6289_v6 = vadd.f32 %v7501_v13, %v6240_v30 }
 0x4ec   : > { %v7503_v40 = vpop.f32.mrf.mxu1 }
 0x4ed   : > { %v7380_v33 = vmul.f32 -1.442695, %v6289_v6  ;;  %v7504_v53 = vadd.f32 %v7503_v40, %v7502_v60 }
 0x4ef   : > { %8364 = vpow2.f32 %v7380_v33  ;;  %v6292_v2 = vadd.f32 %v7504_v53, %v6243_v31 }
 0x4f1   : > { %v7387_v14 = vmul.f32 -1.442695, %v6292_v2 }
 0x4f3   : > { %8366 = vpow2.f32 %v7387_v14 }
 0x4f4   : > { %v8361_v44 = vpop.eup %8360 }
 0x4f5   : > { %v6385_v38 = vadd.f32 1.0, %v8361_v44 }
 0x4f7   : > { %8368 = vrcp.f32 %v6385_v38 }
 0x4f8   : > { %v8363_v1 = vpop.eup %8362 }
 0x4f9   : > { %v6392_v36 = vadd.f32 1.0, %v8363_v1 }
 0x4fb   : > { %8370 = vrcp.f32 %v6392_v36 }
 0x4fc   : > { %v8365_v42 = vpop.eup %8364 }
 0x4fd   : > { %v6399_v57 = vadd.f32 1.0, %v8365_v42 }
 0x4ff   : > { %8372 = vrcp.f32 %v6399_v57 }
 0x500   : > { %v8367_v20 = vpop.eup %8366 }
 0x501   : > { %v6406_v48 = vadd.f32 1.0, %v8367_v20 }
 0x503   : > { %8374 = vrcp.f32 %v6406_v48 }
 0x504   : > { %v8369_v51 = vpop.eup %8368 }
 0x505   : > { %6469 = vst.msk [vmem:[%s9127_s29 + $0x30] sm:$0xff] %vm423_vm0, %v8369_v51 }
 0x508   : > { %v8371_v37 = vpop.eup %8370 }
 0x509   : > { %6476 = vst.msk [vmem:[%s9127_s29 + $0x68] sm:$0xff] %vm423_vm0, %v8371_v37 }
 0x50c   : > { %v8373_v28 = vpop.eup %8372 }
 0x50d   : > { %6483 = vst.msk [vmem:[%s9127_s29 + $0xa0] sm:$0xff] %vm423_vm0, %v8373_v28 }
 0x510   : > { %v8375_v21 = vpop.eup %8374 }
 0x511   : > { %6490 = vst.msk [vmem:[%s9127_s29 + $0xd8] sm:$0xff] %vm423_vm0, %v8375_v21 }
 0x512   : > { %8546 = shalt.err (!%p8543_p10)
}
 0x513   : > { %s8547_s19 = scalar_lea.hbm %s9194_s16, 3584  ;;  %s8551_s8 = scalar_lea.hbm %s9249_s7, 7168 }
 0x514   : > { %p8548_p7 = scmp.ne.s32.totalorder %s9194_s16, %s8547_s19  ;;  %p8552_p11 = scmp.lt.s32.totalorder %s9194_s16, %s9249_s7 }
 0x515   : > { %p8553_p0 = scmp.lt.s32.totalorder %s8551_s8, %s8547_s19 }
 0x516   : > { %p8549_p8 = pnand %p8548_p7, %p9267_p3 }
 0x517   : > { %p8554_p1 = por %p8553_p0, %p8552_p11 }
 0x518   : > { %p8550_p12 = pneg %p8549_p8 }
 0x51a   : > { %p8555_p2 = pnand %p8554_p1, %p8550_p12 }
 0x51c   : > { %8558 = shalt.err (!%p8555_p2)
}
 0x51d   : > { %s8625_s15 = smov 896   ;;  %s8626_s20 = smov 56  }
 0x51e   : > { %7531 = dma.vmem_to_hbm [thread:$0]  (%p9267_p3), %s9196_s14, 3584, %s9194_s16, %s9202_s22, %s8625_s15, %s8625_s15, %s8626_s20  }
 0x51f PF: > { %p7568_p9 = scmp.ge.s32.totalorder %s8609_s27, 2  ;;  %s6521_s28 = sand.u32 1, %s8597_s24  }
 0x520   : > { %p9268_p4 = scmp.ne.s32.totalorder %s9254_s12, 0  ;;  %s6522_s13 = scalar_lea.sflag [#allocation4], %s6521_s28 }
 0x522   : > { %p7553_p5 = pnand %p7568_p9, %p9268_p4 }
 0x524   : > { %p7554_p6 = pneg %p7553_p5 }
 0x526   : > { %8592 = dma.done.wait (%p7554_p6), %s6522_s13, 3584  }
 0x527   : > { %8594 = vsyncadd (%p7554_p6), %s6522_s13, 4294963712  ;;  %p21_p13 = scmp.ge.s32.totalorder %s8692_s30, 4   ;;  %s9269_s24 = smov %s8601_s25 }
 0x528   : > { %s9270_s25 = smov %s8605_s26  ;;  %s9271_s26 = smov %s8703_s10 }
 0x529   : > { %s9272_s27 = smov %s8692_s30  ;;  %23 = sbr.rel (!%p21_p13) target bundleno = 7 (0x7), region = 108 }
 0x52e   :  { %6527 = vsyncpa [#allocation3], 1 }
 0x52f   :  { %6529 = vsyncpa [#allocation3 + $0x1], 1 }
 0x530   :  { %6530 = vsyncpa [#allocation6], 1 }
 0x531   :  { %6531 = vsyncpa [#allocation9], 1 }
 0x532   :  { %6532 = vsyncpa [#allocation12], 1 }
 0x533   :  { %6533 = vsyncpa [#allocation4], 1 }
 0x534   :  { %6535 = vsyncpa [#allocation4 + $0x1], 1 }

</bundles_post_ra>
